<compile_context>
chip_gen: v6e
topology: v6e:2x2x1
jax: 0.10.0
libtpu: 0.0.40
codegen_flags: <defaults>
</compile_context>

<pallas_src>
import jax
import jax.numpy as jnp
from jax.experimental import pallas as pl
from jax.experimental.pallas import tpu as pltpu

C_IN, C_OUT, K = 3, 2, 5
PAD, OUT_PAD = 8, 7
T = C_IN * K * K          # 75 taps
N_ACC = 2                 # partial accumulators per output channel


def convt_sigmoid_kernel(params_ref, taps_ref, o_ref):
    # params_ref: (C_OUT*T + C_OUT,) f32 in SMEM: flipped weights (co,ci,di,dj) then bias
    # taps_ref:   (1, T, Hp, Wp) f32 in VMEM   (im2col taps for one image, tile-aligned)
    # o_ref:      (1, C_OUT, Hp, Wp)
    n_w = C_OUT * T
    h, w = o_ref.shape[2], o_ref.shape[3]

    # Partial accumulators (break the 75-long serial add chain -> 4 independent chains).
    accs = [[jnp.zeros((h, w), jnp.float32) for _ in range(N_ACC)]
            for _ in range(C_OUT)]
    for co in range(C_OUT):
        accs[co][0] = accs[co][0] + params_ref[n_w + co]          # bias (broadcast once)

    for t in range(T):
        v = taps_ref[0, t]            # load each tap plane ONCE, reuse for both channels
        for co in range(C_OUT):
            accs[co][t % N_ACC] = accs[co][t % N_ACC] + v * params_ref[co * T + t]

    for co in range(C_OUT):
        acc = accs[co][0]
        for a in accs[co][1:]:
            acc = acc + a
        o_ref[0, co] = jax.nn.sigmoid(acc).astype(o_ref.dtype)


def _prep_inputs(x, weight):
    """Glue: crop/pad input into correlation form, flip weights."""
    n, cin, h_in, w_in = x.shape
    h_out = (h_in - 1) - 2 * PAD + K + OUT_PAD
    w_out = (w_in - 1) - 2 * PAD + K + OUT_PAD
    assert h_out > 0 and w_out > 0, "input too small for this transposed conv"
    assert PAD >= K - 1, "crop offset would be negative for these PAD/K"
    hp, wp = h_out + K - 1, w_out + K - 1
    crop = PAD - (K - 1)            # rows/cols of x skipped at top/left
    ext = OUT_PAD - PAD + (K - 1)   # extra zero rows/cols needed at bottom/right
    x_ext = jnp.pad(x, ((0, 0), (0, 0), (0, max(ext, 0)), (0, max(ext, 0))))
    x_ext = x_ext[:, :, crop:crop + hp, crop:crop + wp]
    # correlation weights: w_corr[co, ci, di, dj] = weight[ci, co, K-1-di, K-1-dj]
    w_corr = jnp.flip(weight, axis=(2, 3)).transpose(1, 0, 2, 3)
    return x_ext, w_corr, (h_out, w_out)


def model_forward(x, weight, bias):
    # x: (N, C_IN, H, W) f32 ; weight: (C_IN, C_OUT, K, K) (PyTorch layout) ; bias: (C_OUT,)
    n = x.shape[0]
    x_ext, w_corr, (h_out, w_out) = _prep_inputs(x, weight)

    # Wrapper-side im2col: taps[n, (ci*K+di)*K+dj, i, j] = x_ext[n, ci, i+di, j+dj]
    taps = jnp.stack(
        [x_ext[:, ci, di:di + h_out, dj:dj + w_out]
         for ci in range(C_IN) for di in range(K) for dj in range(K)],
        axis=1)  # (N, T, h_out, w_out)

    # Pad spatial dims to the (8, 128) TPU tile so all loads/stores are aligned & unmasked.
    hp_out = -(-h_out // 8) * 8
    wp_out = -(-w_out // 128) * 128
    taps = jnp.pad(taps, ((0, 0), (0, 0), (0, hp_out - h_out), (0, wp_out - w_out)))

    params = jnp.concatenate([w_corr.reshape(-1), bias]).astype(jnp.float32)

    out_padded = pl.pallas_call(
        convt_sigmoid_kernel,
        out_shape=jax.ShapeDtypeStruct((n, C_OUT, hp_out, wp_out), x.dtype),
        grid=(n,),
        in_specs=[
            pl.BlockSpec(memory_space=pltpu.MemorySpace.SMEM),               # params
            pl.BlockSpec((1, T, hp_out, wp_out), lambda i: (i, 0, 0, 0)),    # taps
        ],
        out_specs=pl.BlockSpec((1, C_OUT, hp_out, wp_out), lambda i: (i, 0, 0, 0)),
        compiler_params=pltpu.CompilerParams(dimension_semantics=("parallel",)),
    )(params, taps)

    return out_padded[:, :, :h_out, :w_out]


def reference(x, weight, bias):
    x_ext, w_corr, _ = _prep_inputs(x, weight)
    y = jax.lax.conv_general_dilated(
        x_ext, w_corr, window_strides=(1, 1), padding="VALID",
        dimension_numbers=("NCHW", "OIHW", "NCHW"))
    y = y + bias[None, :, None, None]
    return jax.nn.sigmoid(y)


if __name__ == "__main__":
    key = jax.random.PRNGKey(0)
    kx, kw, kb = jax.random.split(key, 3)

    N, H, W = 2, 16, 16
    x = jax.random.normal(kx, (N, C_IN, H, W), jnp.float32)

    # Deterministic param init (PyTorch-style uniform bound), shapes from the module.
    bound = 1.0 / (C_IN * K * K) ** 0.5
    weight = jax.random.uniform(kw, (C_IN, C_OUT, K, K), jnp.float32, -bound, bound)
    bias = jax.random.uniform(kb, (C_OUT,), jnp.float32, -bound, bound)

    out = jax.block_until_ready(model_forward(x, weight, bias))
    ref = reference(x, weight, bias)

    assert out.shape == (N, C_OUT, H - 5, W - 5), out.shape
    # 1e-5 tolerance also covers the fp reassociation from the partial accumulators.
    assert bool(jnp.allclose(out, ref, atol=1e-5, rtol=1e-5)), "mismatch vs reference"
    print("KERNEL_OK")
</pallas_src>

<mosaic_0001>
module attributes {stable_mosaic.version = 11 : i64} {
  func.func @convt_sigmoid_kernel(%arg0: i32, %arg1: memref<152xf32, #tpu.memory_space<smem>>, %arg2: memref<1x75x16x128xf32, #tpu.memory_space<vmem>>, %arg3: memref<1x2x16x128xf32, #tpu.memory_space<vmem>>) attributes {dimension_semantics = [#tpu.dimension_semantics<parallel>], iteration_bounds = array<i64: 2>, scalar_prefetch = 0 : i64, scratch_operands = 0 : i64, tpu.core_type = #tpu.core_type<tc>, window_params = [{transform_indices = @transform_0, window_bounds = array<i64: 152>}, {transform_indices = @transform_1, window_bounds = array<i64: 1, 75, 16, 128>}, {transform_indices = @transform_2, window_bounds = array<i64: 1, 2, 16, 128>}]} {
    %cst = arith.constant 0.000000e+00 : f32
    %0 = vector.broadcast %cst : f32 to vector<16x128xf32>
    %cst_0 = arith.constant 0.000000e+00 : f32
    %1 = vector.broadcast %cst_0 : f32 to vector<16x128xf32>
    %cst_1 = arith.constant 0.000000e+00 : f32
    %2 = vector.broadcast %cst_1 : f32 to vector<16x128xf32>
    %cst_2 = arith.constant 0.000000e+00 : f32
    %3 = vector.broadcast %cst_2 : f32 to vector<16x128xf32>
    %c150 = arith.constant 150 : index
    %4 = memref.load %arg1[%c150] : memref<152xf32, #tpu.memory_space<smem>>
    %5 = vector.broadcast %4 : f32 to vector<16x128xf32>
    %6 = arith.addf %0, %5 : vector<16x128xf32>
    %c151 = arith.constant 151 : index
    %7 = memref.load %arg1[%c151] : memref<152xf32, #tpu.memory_space<smem>>
    %8 = vector.broadcast %7 : f32 to vector<16x128xf32>
    %9 = arith.addf %2, %8 : vector<16x128xf32>
    %c0 = arith.constant 0 : index
    %c0_3 = arith.constant 0 : index
    %c0_4 = arith.constant 0 : index
    %c0_5 = arith.constant 0 : index
    %10 = vector.load %arg2[%c0, %c0_3, %c0_4, %c0_5] : memref<1x75x16x128xf32, #tpu.memory_space<vmem>>, vector<1x1x16x128xf32>
    %11 = vector.shape_cast %10 : vector<1x1x16x128xf32> to vector<16x128xf32>
    %c0_6 = arith.constant 0 : index
    %12 = memref.load %arg1[%c0_6] : memref<152xf32, #tpu.memory_space<smem>>
    %13 = vector.broadcast %12 : f32 to vector<16x128xf32>
    %14 = arith.mulf %11, %13 : vector<16x128xf32>
    %15 = arith.addf %6, %14 : vector<16x128xf32>
    %c75 = arith.constant 75 : index
    %16 = memref.load %arg1[%c75] : memref<152xf32, #tpu.memory_space<smem>>
    %17 = vector.broadcast %16 : f32 to vector<16x128xf32>
    %18 = arith.mulf %11, %17 : vector<16x128xf32>
    %19 = arith.addf %9, %18 : vector<16x128xf32>
    %c0_7 = arith.constant 0 : index
    %c1 = arith.constant 1 : index
    %c0_8 = arith.constant 0 : index
    %c0_9 = arith.constant 0 : index
    %20 = vector.load %arg2[%c0_7, %c1, %c0_8, %c0_9] : memref<1x75x16x128xf32, #tpu.memory_space<vmem>>, vector<1x1x16x128xf32>
    %21 = vector.shape_cast %20 : vector<1x1x16x128xf32> to vector<16x128xf32>
    %c1_10 = arith.constant 1 : index
    %22 = memref.load %arg1[%c1_10] : memref<152xf32, #tpu.memory_space<smem>>
    %23 = vector.broadcast %22 : f32 to vector<16x128xf32>
    %24 = arith.mulf %21, %23 : vector<16x128xf32>
    %25 = arith.addf %1, %24 : vector<16x128xf32>
    %c76 = arith.constant 76 : index
    %26 = memref.load %arg1[%c76] : memref<152xf32, #tpu.memory_space<smem>>
    %27 = vector.broadcast %26 : f32 to vector<16x128xf32>
    %28 = arith.mulf %21, %27 : vector<16x128xf32>
    %29 = arith.addf %3, %28 : vector<16x128xf32>
    %c0_11 = arith.constant 0 : index
    %c2 = arith.constant 2 : index
    %c0_12 = arith.constant 0 : index
    %c0_13 = arith.constant 0 : index
    %30 = vector.load %arg2[%c0_11, %c2, %c0_12, %c0_13] : memref<1x75x16x128xf32, #tpu.memory_space<vmem>>, vector<1x1x16x128xf32>
    %31 = vector.shape_cast %30 : vector<1x1x16x128xf32> to vector<16x128xf32>
    %c2_14 = arith.constant 2 : index
    %32 = memref.load %arg1[%c2_14] : memref<152xf32, #tpu.memory_space<smem>>
    %33 = vector.broadcast %32 : f32 to vector<16x128xf32>
    %34 = arith.mulf %31, %33 : vector<16x128xf32>
    %35 = arith.addf %15, %34 : vector<16x128xf32>
    %c77 = arith.constant 77 : index
    %36 = memref.load %arg1[%c77] : memref<152xf32, #tpu.memory_space<smem>>
    %37 = vector.broadcast %36 : f32 to vector<16x128xf32>
    %38 = arith.mulf %31, %37 : vector<16x128xf32>
    %39 = arith.addf %19, %38 : vector<16x128xf32>
    %c0_15 = arith.constant 0 : index
    %c3 = arith.constant 3 : index
    %c0_16 = arith.constant 0 : index
    %c0_17 = arith.constant 0 : index
    %40 = vector.load %arg2[%c0_15, %c3, %c0_16, %c0_17] : memref<1x75x16x128xf32, #tpu.memory_space<vmem>>, vector<1x1x16x128xf32>
    %41 = vector.shape_cast %40 : vector<1x1x16x128xf32> to vector<16x128xf32>
    %c3_18 = arith.constant 3 : index
    %42 = memref.load %arg1[%c3_18] : memref<152xf32, #tpu.memory_space<smem>>
    %43 = vector.broadcast %42 : f32 to vector<16x128xf32>
    %44 = arith.mulf %41, %43 : vector<16x128xf32>
    %45 = arith.addf %25, %44 : vector<16x128xf32>
    %c78 = arith.constant 78 : index
    %46 = memref.load %arg1[%c78] : memref<152xf32, #tpu.memory_space<smem>>
    %47 = vector.broadcast %46 : f32 to vector<16x128xf32>
    %48 = arith.mulf %41, %47 : vector<16x128xf32>
    %49 = arith.addf %29, %48 : vector<16x128xf32>
    %c0_19 = arith.constant 0 : index
    %c4 = arith.constant 4 : index
    %c0_20 = arith.constant 0 : index
    %c0_21 = arith.constant 0 : index
    %50 = vector.load %arg2[%c0_19, %c4, %c0_20, %c0_21] : memref<1x75x16x128xf32, #tpu.memory_space<vmem>>, vector<1x1x16x128xf32>
    %51 = vector.shape_cast %50 : vector<1x1x16x128xf32> to vector<16x128xf32>
    %c4_22 = arith.constant 4 : index
    %52 = memref.load %arg1[%c4_22] : memref<152xf32, #tpu.memory_space<smem>>
    %53 = vector.broadcast %52 : f32 to vector<16x128xf32>
    %54 = arith.mulf %51, %53 : vector<16x128xf32>
    %55 = arith.addf %35, %54 : vector<16x128xf32>
    %c79 = arith.constant 79 : index
    %56 = memref.load %arg1[%c79] : memref<152xf32, #tpu.memory_space<smem>>
    %57 = vector.broadcast %56 : f32 to vector<16x128xf32>
    %58 = arith.mulf %51, %57 : vector<16x128xf32>
    %59 = arith.addf %39, %58 : vector<16x128xf32>
    %c0_23 = arith.constant 0 : index
    %c5 = arith.constant 5 : index
    %c0_24 = arith.constant 0 : index
    %c0_25 = arith.constant 0 : index
    %60 = vector.load %arg2[%c0_23, %c5, %c0_24, %c0_25] : memref<1x75x16x128xf32, #tpu.memory_space<vmem>>, vector<1x1x16x128xf32>
    %61 = vector.shape_cast %60 : vector<1x1x16x128xf32> to vector<16x128xf32>
    %c5_26 = arith.constant 5 : index
    %62 = memref.load %arg1[%c5_26] : memref<152xf32, #tpu.memory_space<smem>>
    %63 = vector.broadcast %62 : f32 to vector<16x128xf32>
    %64 = arith.mulf %61, %63 : vector<16x128xf32>
    %65 = arith.addf %45, %64 : vector<16x128xf32>
    %c80 = arith.constant 80 : index
    %66 = memref.load %arg1[%c80] : memref<152xf32, #tpu.memory_space<smem>>
    %67 = vector.broadcast %66 : f32 to vector<16x128xf32>
    %68 = arith.mulf %61, %67 : vector<16x128xf32>
    %69 = arith.addf %49, %68 : vector<16x128xf32>
    %c0_27 = arith.constant 0 : index
    %c6 = arith.constant 6 : index
    %c0_28 = arith.constant 0 : index
    %c0_29 = arith.constant 0 : index
    %70 = vector.load %arg2[%c0_27, %c6, %c0_28, %c0_29] : memref<1x75x16x128xf32, #tpu.memory_space<vmem>>, vector<1x1x16x128xf32>
    %71 = vector.shape_cast %70 : vector<1x1x16x128xf32> to vector<16x128xf32>
    %c6_30 = arith.constant 6 : index
    %72 = memref.load %arg1[%c6_30] : memref<152xf32, #tpu.memory_space<smem>>
    %73 = vector.broadcast %72 : f32 to vector<16x128xf32>
    %74 = arith.mulf %71, %73 : vector<16x128xf32>
    %75 = arith.addf %55, %74 : vector<16x128xf32>
    %c81 = arith.constant 81 : index
    %76 = memref.load %arg1[%c81] : memref<152xf32, #tpu.memory_space<smem>>
    %77 = vector.broadcast %76 : f32 to vector<16x128xf32>
    %78 = arith.mulf %71, %77 : vector<16x128xf32>
    %79 = arith.addf %59, %78 : vector<16x128xf32>
    %c0_31 = arith.constant 0 : index
    %c7 = arith.constant 7 : index
    %c0_32 = arith.constant 0 : index
    %c0_33 = arith.constant 0 : index
    %80 = vector.load %arg2[%c0_31, %c7, %c0_32, %c0_33] : memref<1x75x16x128xf32, #tpu.memory_space<vmem>>, vector<1x1x16x128xf32>
    %81 = vector.shape_cast %80 : vector<1x1x16x128xf32> to vector<16x128xf32>
    %c7_34 = arith.constant 7 : index
    %82 = memref.load %arg1[%c7_34] : memref<152xf32, #tpu.memory_space<smem>>
    %83 = vector.broadcast %82 : f32 to vector<16x128xf32>
    %84 = arith.mulf %81, %83 : vector<16x128xf32>
    %85 = arith.addf %65, %84 : vector<16x128xf32>
    %c82 = arith.constant 82 : index
    %86 = memref.load %arg1[%c82] : memref<152xf32, #tpu.memory_space<smem>>
    %87 = vector.broadcast %86 : f32 to vector<16x128xf32>
    %88 = arith.mulf %81, %87 : vector<16x128xf32>
    %89 = arith.addf %69, %88 : vector<16x128xf32>
    %c0_35 = arith.constant 0 : index
    %c8 = arith.constant 8 : index
    %c0_36 = arith.constant 0 : index
    %c0_37 = arith.constant 0 : index
    %90 = vector.load %arg2[%c0_35, %c8, %c0_36, %c0_37] : memref<1x75x16x128xf32, #tpu.memory_space<vmem>>, vector<1x1x16x128xf32>
    %91 = vector.shape_cast %90 : vector<1x1x16x128xf32> to vector<16x128xf32>
    %c8_38 = arith.constant 8 : index
    %92 = memref.load %arg1[%c8_38] : memref<152xf32, #tpu.memory_space<smem>>
    %93 = vector.broadcast %92 : f32 to vector<16x128xf32>
    %94 = arith.mulf %91, %93 : vector<16x128xf32>
    %95 = arith.addf %75, %94 : vector<16x128xf32>
    %c83 = arith.constant 83 : index
    %96 = memref.load %arg1[%c83] : memref<152xf32, #tpu.memory_space<smem>>
    %97 = vector.broadcast %96 : f32 to vector<16x128xf32>
    %98 = arith.mulf %91, %97 : vector<16x128xf32>
    %99 = arith.addf %79, %98 : vector<16x128xf32>
    %c0_39 = arith.constant 0 : index
    %c9 = arith.constant 9 : index
    %c0_40 = arith.constant 0 : index
    %c0_41 = arith.constant 0 : index
    %100 = vector.load %arg2[%c0_39, %c9, %c0_40, %c0_41] : memref<1x75x16x128xf32, #tpu.memory_space<vmem>>, vector<1x1x16x128xf32>
    %101 = vector.shape_cast %100 : vector<1x1x16x128xf32> to vector<16x128xf32>
    %c9_42 = arith.constant 9 : index
    %102 = memref.load %arg1[%c9_42] : memref<152xf32, #tpu.memory_space<smem>>
    %103 = vector.broadcast %102 : f32 to vector<16x128xf32>
    %104 = arith.mulf %101, %103 : vector<16x128xf32>
    %105 = arith.addf %85, %104 : vector<16x128xf32>
    %c84 = arith.constant 84 : index
    %106 = memref.load %arg1[%c84] : memref<152xf32, #tpu.memory_space<smem>>
    %107 = vector.broadcast %106 : f32 to vector<16x128xf32>
    %108 = arith.mulf %101, %107 : vector<16x128xf32>
    %109 = arith.addf %89, %108 : vector<16x128xf32>
    %c0_43 = arith.constant 0 : index
    %c10 = arith.constant 10 : index
    %c0_44 = arith.constant 0 : index
    %c0_45 = arith.constant 0 : index
    %110 = vector.load %arg2[%c0_43, %c10, %c0_44, %c0_45] : memref<1x75x16x128xf32, #tpu.memory_space<vmem>>, vector<1x1x16x128xf32>
    %111 = vector.shape_cast %110 : vector<1x1x16x128xf32> to vector<16x128xf32>
    %c10_46 = arith.constant 10 : index
    %112 = memref.load %arg1[%c10_46] : memref<152xf32, #tpu.memory_space<smem>>
    %113 = vector.broadcast %112 : f32 to vector<16x128xf32>
    %114 = arith.mulf %111, %113 : vector<16x128xf32>
    %115 = arith.addf %95, %114 : vector<16x128xf32>
    %c85 = arith.constant 85 : index
    %116 = memref.load %arg1[%c85] : memref<152xf32, #tpu.memory_space<smem>>
    %117 = vector.broadcast %116 : f32 to vector<16x128xf32>
    %118 = arith.mulf %111, %117 : vector<16x128xf32>
    %119 = arith.addf %99, %118 : vector<16x128xf32>
    %c0_47 = arith.constant 0 : index
    %c11 = arith.constant 11 : index
    %c0_48 = arith.constant 0 : index
    %c0_49 = arith.constant 0 : index
    %120 = vector.load %arg2[%c0_47, %c11, %c0_48, %c0_49] : memref<1x75x16x128xf32, #tpu.memory_space<vmem>>, vector<1x1x16x128xf32>
    %121 = vector.shape_cast %120 : vector<1x1x16x128xf32> to vector<16x128xf32>
    %c11_50 = arith.constant 11 : index
    %122 = memref.load %arg1[%c11_50] : memref<152xf32, #tpu.memory_space<smem>>
    %123 = vector.broadcast %122 : f32 to vector<16x128xf32>
    %124 = arith.mulf %121, %123 : vector<16x128xf32>
    %125 = arith.addf %105, %124 : vector<16x128xf32>
    %c86 = arith.constant 86 : index
    %126 = memref.load %arg1[%c86] : memref<152xf32, #tpu.memory_space<smem>>
    %127 = vector.broadcast %126 : f32 to vector<16x128xf32>
    %128 = arith.mulf %121, %127 : vector<16x128xf32>
    %129 = arith.addf %109, %128 : vector<16x128xf32>
    %c0_51 = arith.constant 0 : index
    %c12 = arith.constant 12 : index
    %c0_52 = arith.constant 0 : index
    %c0_53 = arith.constant 0 : index
    %130 = vector.load %arg2[%c0_51, %c12, %c0_52, %c0_53] : memref<1x75x16x128xf32, #tpu.memory_space<vmem>>, vector<1x1x16x128xf32>
    %131 = vector.shape_cast %130 : vector<1x1x16x128xf32> to vector<16x128xf32>
    %c12_54 = arith.constant 12 : index
    %132 = memref.load %arg1[%c12_54] : memref<152xf32, #tpu.memory_space<smem>>
    %133 = vector.broadcast %132 : f32 to vector<16x128xf32>
    %134 = arith.mulf %131, %133 : vector<16x128xf32>
    %135 = arith.addf %115, %134 : vector<16x128xf32>
    %c87 = arith.constant 87 : index
    %136 = memref.load %arg1[%c87] : memref<152xf32, #tpu.memory_space<smem>>
    %137 = vector.broadcast %136 : f32 to vector<16x128xf32>
    %138 = arith.mulf %131, %137 : vector<16x128xf32>
    %139 = arith.addf %119, %138 : vector<16x128xf32>
    %c0_55 = arith.constant 0 : index
    %c13 = arith.constant 13 : index
    %c0_56 = arith.constant 0 : index
    %c0_57 = arith.constant 0 : index
    %140 = vector.load %arg2[%c0_55, %c13, %c0_56, %c0_57] : memref<1x75x16x128xf32, #tpu.memory_space<vmem>>, vector<1x1x16x128xf32>
    %141 = vector.shape_cast %140 : vector<1x1x16x128xf32> to vector<16x128xf32>
    %c13_58 = arith.constant 13 : index
    %142 = memref.load %arg1[%c13_58] : memref<152xf32, #tpu.memory_space<smem>>
    %143 = vector.broadcast %142 : f32 to vector<16x128xf32>
    %144 = arith.mulf %141, %143 : vector<16x128xf32>
    %145 = arith.addf %125, %144 : vector<16x128xf32>
    %c88 = arith.constant 88 : index
    %146 = memref.load %arg1[%c88] : memref<152xf32, #tpu.memory_space<smem>>
    %147 = vector.broadcast %146 : f32 to vector<16x128xf32>
    %148 = arith.mulf %141, %147 : vector<16x128xf32>
    %149 = arith.addf %129, %148 : vector<16x128xf32>
    %c0_59 = arith.constant 0 : index
    %c14 = arith.constant 14 : index
    %c0_60 = arith.constant 0 : index
    %c0_61 = arith.constant 0 : index
    %150 = vector.load %arg2[%c0_59, %c14, %c0_60, %c0_61] : memref<1x75x16x128xf32, #tpu.memory_space<vmem>>, vector<1x1x16x128xf32>
    %151 = vector.shape_cast %150 : vector<1x1x16x128xf32> to vector<16x128xf32>
    %c14_62 = arith.constant 14 : index
    %152 = memref.load %arg1[%c14_62] : memref<152xf32, #tpu.memory_space<smem>>
    %153 = vector.broadcast %152 : f32 to vector<16x128xf32>
    %154 = arith.mulf %151, %153 : vector<16x128xf32>
    %155 = arith.addf %135, %154 : vector<16x128xf32>
    %c89 = arith.constant 89 : index
    %156 = memref.load %arg1[%c89] : memref<152xf32, #tpu.memory_space<smem>>
    %157 = vector.broadcast %156 : f32 to vector<16x128xf32>
    %158 = arith.mulf %151, %157 : vector<16x128xf32>
    %159 = arith.addf %139, %158 : vector<16x128xf32>
    %c0_63 = arith.constant 0 : index
    %c15 = arith.constant 15 : index
    %c0_64 = arith.constant 0 : index
    %c0_65 = arith.constant 0 : index
    %160 = vector.load %arg2[%c0_63, %c15, %c0_64, %c0_65] : memref<1x75x16x128xf32, #tpu.memory_space<vmem>>, vector<1x1x16x128xf32>
    %161 = vector.shape_cast %160 : vector<1x1x16x128xf32> to vector<16x128xf32>
    %c15_66 = arith.constant 15 : index
    %162 = memref.load %arg1[%c15_66] : memref<152xf32, #tpu.memory_space<smem>>
    %163 = vector.broadcast %162 : f32 to vector<16x128xf32>
    %164 = arith.mulf %161, %163 : vector<16x128xf32>
    %165 = arith.addf %145, %164 : vector<16x128xf32>
    %c90 = arith.constant 90 : index
    %166 = memref.load %arg1[%c90] : memref<152xf32, #tpu.memory_space<smem>>
    %167 = vector.broadcast %166 : f32 to vector<16x128xf32>
    %168 = arith.mulf %161, %167 : vector<16x128xf32>
    %169 = arith.addf %149, %168 : vector<16x128xf32>
    %c0_67 = arith.constant 0 : index
    %c16 = arith.constant 16 : index
    %c0_68 = arith.constant 0 : index
    %c0_69 = arith.constant 0 : index
    %170 = vector.load %arg2[%c0_67, %c16, %c0_68, %c0_69] : memref<1x75x16x128xf32, #tpu.memory_space<vmem>>, vector<1x1x16x128xf32>
    %171 = vector.shape_cast %170 : vector<1x1x16x128xf32> to vector<16x128xf32>
    %c16_70 = arith.constant 16 : index
    %172 = memref.load %arg1[%c16_70] : memref<152xf32, #tpu.memory_space<smem>>
    %173 = vector.broadcast %172 : f32 to vector<16x128xf32>
    %174 = arith.mulf %171, %173 : vector<16x128xf32>
    %175 = arith.addf %155, %174 : vector<16x128xf32>
    %c91 = arith.constant 91 : index
    %176 = memref.load %arg1[%c91] : memref<152xf32, #tpu.memory_space<smem>>
    %177 = vector.broadcast %176 : f32 to vector<16x128xf32>
    %178 = arith.mulf %171, %177 : vector<16x128xf32>
    %179 = arith.addf %159, %178 : vector<16x128xf32>
    %c0_71 = arith.constant 0 : index
    %c17 = arith.constant 17 : index
    %c0_72 = arith.constant 0 : index
    %c0_73 = arith.constant 0 : index
    %180 = vector.load %arg2[%c0_71, %c17, %c0_72, %c0_73] : memref<1x75x16x128xf32, #tpu.memory_space<vmem>>, vector<1x1x16x128xf32>
    %181 = vector.shape_cast %180 : vector<1x1x16x128xf32> to vector<16x128xf32>
    %c17_74 = arith.constant 17 : index
    %182 = memref.load %arg1[%c17_74] : memref<152xf32, #tpu.memory_space<smem>>
    %183 = vector.broadcast %182 : f32 to vector<16x128xf32>
    %184 = arith.mulf %181, %183 : vector<16x128xf32>
    %185 = arith.addf %165, %184 : vector<16x128xf32>
    %c92 = arith.constant 92 : index
    %186 = memref.load %arg1[%c92] : memref<152xf32, #tpu.memory_space<smem>>
    %187 = vector.broadcast %186 : f32 to vector<16x128xf32>
    %188 = arith.mulf %181, %187 : vector<16x128xf32>
    %189 = arith.addf %169, %188 : vector<16x128xf32>
    %c0_75 = arith.constant 0 : index
    %c18 = arith.constant 18 : index
    %c0_76 = arith.constant 0 : index
    %c0_77 = arith.constant 0 : index
    %190 = vector.load %arg2[%c0_75, %c18, %c0_76, %c0_77] : memref<1x75x16x128xf32, #tpu.memory_space<vmem>>, vector<1x1x16x128xf32>
    %191 = vector.shape_cast %190 : vector<1x1x16x128xf32> to vector<16x128xf32>
    %c18_78 = arith.constant 18 : index
    %192 = memref.load %arg1[%c18_78] : memref<152xf32, #tpu.memory_space<smem>>
    %193 = vector.broadcast %192 : f32 to vector<16x128xf32>
    %194 = arith.mulf %191, %193 : vector<16x128xf32>
    %195 = arith.addf %175, %194 : vector<16x128xf32>
    %c93 = arith.constant 93 : index
    %196 = memref.load %arg1[%c93] : memref<152xf32, #tpu.memory_space<smem>>
    %197 = vector.broadcast %196 : f32 to vector<16x128xf32>
    %198 = arith.mulf %191, %197 : vector<16x128xf32>
    %199 = arith.addf %179, %198 : vector<16x128xf32>
    %c0_79 = arith.constant 0 : index
    %c19 = arith.constant 19 : index
    %c0_80 = arith.constant 0 : index
    %c0_81 = arith.constant 0 : index
    %200 = vector.load %arg2[%c0_79, %c19, %c0_80, %c0_81] : memref<1x75x16x128xf32, #tpu.memory_space<vmem>>, vector<1x1x16x128xf32>
    %201 = vector.shape_cast %200 : vector<1x1x16x128xf32> to vector<16x128xf32>
    %c19_82 = arith.constant 19 : index
    %202 = memref.load %arg1[%c19_82] : memref<152xf32, #tpu.memory_space<smem>>
    %203 = vector.broadcast %202 : f32 to vector<16x128xf32>
    %204 = arith.mulf %201, %203 : vector<16x128xf32>
    %205 = arith.addf %185, %204 : vector<16x128xf32>
    %c94 = arith.constant 94 : index
    %206 = memref.load %arg1[%c94] : memref<152xf32, #tpu.memory_space<smem>>
    %207 = vector.broadcast %206 : f32 to vector<16x128xf32>
    %208 = arith.mulf %201, %207 : vector<16x128xf32>
    %209 = arith.addf %189, %208 : vector<16x128xf32>
    %c0_83 = arith.constant 0 : index
    %c20 = arith.constant 20 : index
    %c0_84 = arith.constant 0 : index
    %c0_85 = arith.constant 0 : index
    %210 = vector.load %arg2[%c0_83, %c20, %c0_84, %c0_85] : memref<1x75x16x128xf32, #tpu.memory_space<vmem>>, vector<1x1x16x128xf32>
    %211 = vector.shape_cast %210 : vector<1x1x16x128xf32> to vector<16x128xf32>
    %c20_86 = arith.constant 20 : index
    %212 = memref.load %arg1[%c20_86] : memref<152xf32, #tpu.memory_space<smem>>
    %213 = vector.broadcast %212 : f32 to vector<16x128xf32>
    %214 = arith.mulf %211, %213 : vector<16x128xf32>
    %215 = arith.addf %195, %214 : vector<16x128xf32>
    %c95 = arith.constant 95 : index
    %216 = memref.load %arg1[%c95] : memref<152xf32, #tpu.memory_space<smem>>
    %217 = vector.broadcast %216 : f32 to vector<16x128xf32>
    %218 = arith.mulf %211, %217 : vector<16x128xf32>
    %219 = arith.addf %199, %218 : vector<16x128xf32>
    %c0_87 = arith.constant 0 : index
    %c21 = arith.constant 21 : index
    %c0_88 = arith.constant 0 : index
    %c0_89 = arith.constant 0 : index
    %220 = vector.load %arg2[%c0_87, %c21, %c0_88, %c0_89] : memref<1x75x16x128xf32, #tpu.memory_space<vmem>>, vector<1x1x16x128xf32>
    %221 = vector.shape_cast %220 : vector<1x1x16x128xf32> to vector<16x128xf32>
    %c21_90 = arith.constant 21 : index
    %222 = memref.load %arg1[%c21_90] : memref<152xf32, #tpu.memory_space<smem>>
    %223 = vector.broadcast %222 : f32 to vector<16x128xf32>
    %224 = arith.mulf %221, %223 : vector<16x128xf32>
    %225 = arith.addf %205, %224 : vector<16x128xf32>
    %c96 = arith.constant 96 : index
    %226 = memref.load %arg1[%c96] : memref<152xf32, #tpu.memory_space<smem>>
    %227 = vector.broadcast %226 : f32 to vector<16x128xf32>
    %228 = arith.mulf %221, %227 : vector<16x128xf32>
    %229 = arith.addf %209, %228 : vector<16x128xf32>
    %c0_91 = arith.constant 0 : index
    %c22 = arith.constant 22 : index
    %c0_92 = arith.constant 0 : index
    %c0_93 = arith.constant 0 : index
    %230 = vector.load %arg2[%c0_91, %c22, %c0_92, %c0_93] : memref<1x75x16x128xf32, #tpu.memory_space<vmem>>, vector<1x1x16x128xf32>
    %231 = vector.shape_cast %230 : vector<1x1x16x128xf32> to vector<16x128xf32>
    %c22_94 = arith.constant 22 : index
    %232 = memref.load %arg1[%c22_94] : memref<152xf32, #tpu.memory_space<smem>>
    %233 = vector.broadcast %232 : f32 to vector<16x128xf32>
    %234 = arith.mulf %231, %233 : vector<16x128xf32>
    %235 = arith.addf %215, %234 : vector<16x128xf32>
    %c97 = arith.constant 97 : index
    %236 = memref.load %arg1[%c97] : memref<152xf32, #tpu.memory_space<smem>>
    %237 = vector.broadcast %236 : f32 to vector<16x128xf32>
    %238 = arith.mulf %231, %237 : vector<16x128xf32>
    %239 = arith.addf %219, %238 : vector<16x128xf32>
    %c0_95 = arith.constant 0 : index
    %c23 = arith.constant 23 : index
    %c0_96 = arith.constant 0 : index
    %c0_97 = arith.constant 0 : index
    %240 = vector.load %arg2[%c0_95, %c23, %c0_96, %c0_97] : memref<1x75x16x128xf32, #tpu.memory_space<vmem>>, vector<1x1x16x128xf32>
    %241 = vector.shape_cast %240 : vector<1x1x16x128xf32> to vector<16x128xf32>
    %c23_98 = arith.constant 23 : index
    %242 = memref.load %arg1[%c23_98] : memref<152xf32, #tpu.memory_space<smem>>
    %243 = vector.broadcast %242 : f32 to vector<16x128xf32>
    %244 = arith.mulf %241, %243 : vector<16x128xf32>
    %245 = arith.addf %225, %244 : vector<16x128xf32>
    %c98 = arith.constant 98 : index
    %246 = memref.load %arg1[%c98] : memref<152xf32, #tpu.memory_space<smem>>
    %247 = vector.broadcast %246 : f32 to vector<16x128xf32>
    %248 = arith.mulf %241, %247 : vector<16x128xf32>
    %249 = arith.addf %229, %248 : vector<16x128xf32>
    %c0_99 = arith.constant 0 : index
    %c24 = arith.constant 24 : index
    %c0_100 = arith.constant 0 : index
    %c0_101 = arith.constant 0 : index
    %250 = vector.load %arg2[%c0_99, %c24, %c0_100, %c0_101] : memref<1x75x16x128xf32, #tpu.memory_space<vmem>>, vector<1x1x16x128xf32>
    %251 = vector.shape_cast %250 : vector<1x1x16x128xf32> to vector<16x128xf32>
    %c24_102 = arith.constant 24 : index
    %252 = memref.load %arg1[%c24_102] : memref<152xf32, #tpu.memory_space<smem>>
    %253 = vector.broadcast %252 : f32 to vector<16x128xf32>
    %254 = arith.mulf %251, %253 : vector<16x128xf32>
    %255 = arith.addf %235, %254 : vector<16x128xf32>
    %c99 = arith.constant 99 : index
    %256 = memref.load %arg1[%c99] : memref<152xf32, #tpu.memory_space<smem>>
    %257 = vector.broadcast %256 : f32 to vector<16x128xf32>
    %258 = arith.mulf %251, %257 : vector<16x128xf32>
    %259 = arith.addf %239, %258 : vector<16x128xf32>
    %c0_103 = arith.constant 0 : index
    %c25 = arith.constant 25 : index
    %c0_104 = arith.constant 0 : index
    %c0_105 = arith.constant 0 : index
    %260 = vector.load %arg2[%c0_103, %c25, %c0_104, %c0_105] : memref<1x75x16x128xf32, #tpu.memory_space<vmem>>, vector<1x1x16x128xf32>
    %261 = vector.shape_cast %260 : vector<1x1x16x128xf32> to vector<16x128xf32>
    %c25_106 = arith.constant 25 : index
    %262 = memref.load %arg1[%c25_106] : memref<152xf32, #tpu.memory_space<smem>>
    %263 = vector.broadcast %262 : f32 to vector<16x128xf32>
    %264 = arith.mulf %261, %263 : vector<16x128xf32>
    %265 = arith.addf %245, %264 : vector<16x128xf32>
    %c100 = arith.constant 100 : index
    %266 = memref.load %arg1[%c100] : memref<152xf32, #tpu.memory_space<smem>>
    %267 = vector.broadcast %266 : f32 to vector<16x128xf32>
    %268 = arith.mulf %261, %267 : vector<16x128xf32>
    %269 = arith.addf %249, %268 : vector<16x128xf32>
    %c0_107 = arith.constant 0 : index
    %c26 = arith.constant 26 : index
    %c0_108 = arith.constant 0 : index
    %c0_109 = arith.constant 0 : index
    %270 = vector.load %arg2[%c0_107, %c26, %c0_108, %c0_109] : memref<1x75x16x128xf32, #tpu.memory_space<vmem>>, vector<1x1x16x128xf32>
    %271 = vector.shape_cast %270 : vector<1x1x16x128xf32> to vector<16x128xf32>
    %c26_110 = arith.constant 26 : index
    %272 = memref.load %arg1[%c26_110] : memref<152xf32, #tpu.memory_space<smem>>
    %273 = vector.broadcast %272 : f32 to vector<16x128xf32>
    %274 = arith.mulf %271, %273 : vector<16x128xf32>
    %275 = arith.addf %255, %274 : vector<16x128xf32>
    %c101 = arith.constant 101 : index
    %276 = memref.load %arg1[%c101] : memref<152xf32, #tpu.memory_space<smem>>
    %277 = vector.broadcast %276 : f32 to vector<16x128xf32>
    %278 = arith.mulf %271, %277 : vector<16x128xf32>
    %279 = arith.addf %259, %278 : vector<16x128xf32>
    %c0_111 = arith.constant 0 : index
    %c27 = arith.constant 27 : index
    %c0_112 = arith.constant 0 : index
    %c0_113 = arith.constant 0 : index
    %280 = vector.load %arg2[%c0_111, %c27, %c0_112, %c0_113] : memref<1x75x16x128xf32, #tpu.memory_space<vmem>>, vector<1x1x16x128xf32>
    %281 = vector.shape_cast %280 : vector<1x1x16x128xf32> to vector<16x128xf32>
    %c27_114 = arith.constant 27 : index
    %282 = memref.load %arg1[%c27_114] : memref<152xf32, #tpu.memory_space<smem>>
    %283 = vector.broadcast %282 : f32 to vector<16x128xf32>
    %284 = arith.mulf %281, %283 : vector<16x128xf32>
    %285 = arith.addf %265, %284 : vector<16x128xf32>
    %c102 = arith.constant 102 : index
    %286 = memref.load %arg1[%c102] : memref<152xf32, #tpu.memory_space<smem>>
    %287 = vector.broadcast %286 : f32 to vector<16x128xf32>
    %288 = arith.mulf %281, %287 : vector<16x128xf32>
    %289 = arith.addf %269, %288 : vector<16x128xf32>
    %c0_115 = arith.constant 0 : index
    %c28 = arith.constant 28 : index
    %c0_116 = arith.constant 0 : index
    %c0_117 = arith.constant 0 : index
    %290 = vector.load %arg2[%c0_115, %c28, %c0_116, %c0_117] : memref<1x75x16x128xf32, #tpu.memory_space<vmem>>, vector<1x1x16x128xf32>
    %291 = vector.shape_cast %290 : vector<1x1x16x128xf32> to vector<16x128xf32>
    %c28_118 = arith.constant 28 : index
    %292 = memref.load %arg1[%c28_118] : memref<152xf32, #tpu.memory_space<smem>>
    %293 = vector.broadcast %292 : f32 to vector<16x128xf32>
    %294 = arith.mulf %291, %293 : vector<16x128xf32>
    %295 = arith.addf %275, %294 : vector<16x128xf32>
    %c103 = arith.constant 103 : index
    %296 = memref.load %arg1[%c103] : memref<152xf32, #tpu.memory_space<smem>>
    %297 = vector.broadcast %296 : f32 to vector<16x128xf32>
    %298 = arith.mulf %291, %297 : vector<16x128xf32>
    %299 = arith.addf %279, %298 : vector<16x128xf32>
    %c0_119 = arith.constant 0 : index
    %c29 = arith.constant 29 : index
    %c0_120 = arith.constant 0 : index
    %c0_121 = arith.constant 0 : index
    %300 = vector.load %arg2[%c0_119, %c29, %c0_120, %c0_121] : memref<1x75x16x128xf32, #tpu.memory_space<vmem>>, vector<1x1x16x128xf32>
    %301 = vector.shape_cast %300 : vector<1x1x16x128xf32> to vector<16x128xf32>
    %c29_122 = arith.constant 29 : index
    %302 = memref.load %arg1[%c29_122] : memref<152xf32, #tpu.memory_space<smem>>
    %303 = vector.broadcast %302 : f32 to vector<16x128xf32>
    %304 = arith.mulf %301, %303 : vector<16x128xf32>
    %305 = arith.addf %285, %304 : vector<16x128xf32>
    %c104 = arith.constant 104 : index
    %306 = memref.load %arg1[%c104] : memref<152xf32, #tpu.memory_space<smem>>
    %307 = vector.broadcast %306 : f32 to vector<16x128xf32>
    %308 = arith.mulf %301, %307 : vector<16x128xf32>
    %309 = arith.addf %289, %308 : vector<16x128xf32>
    %c0_123 = arith.constant 0 : index
    %c30 = arith.constant 30 : index
    %c0_124 = arith.constant 0 : index
    %c0_125 = arith.constant 0 : index
    %310 = vector.load %arg2[%c0_123, %c30, %c0_124, %c0_125] : memref<1x75x16x128xf32, #tpu.memory_space<vmem>>, vector<1x1x16x128xf32>
    %311 = vector.shape_cast %310 : vector<1x1x16x128xf32> to vector<16x128xf32>
    %c30_126 = arith.constant 30 : index
    %312 = memref.load %arg1[%c30_126] : memref<152xf32, #tpu.memory_space<smem>>
    %313 = vector.broadcast %312 : f32 to vector<16x128xf32>
    %314 = arith.mulf %311, %313 : vector<16x128xf32>
    %315 = arith.addf %295, %314 : vector<16x128xf32>
    %c105 = arith.constant 105 : index
    %316 = memref.load %arg1[%c105] : memref<152xf32, #tpu.memory_space<smem>>
    %317 = vector.broadcast %316 : f32 to vector<16x128xf32>
    %318 = arith.mulf %311, %317 : vector<16x128xf32>
    %319 = arith.addf %299, %318 : vector<16x128xf32>
    %c0_127 = arith.constant 0 : index
    %c31 = arith.constant 31 : index
    %c0_128 = arith.constant 0 : index
    %c0_129 = arith.constant 0 : index
    %320 = vector.load %arg2[%c0_127, %c31, %c0_128, %c0_129] : memref<1x75x16x128xf32, #tpu.memory_space<vmem>>, vector<1x1x16x128xf32>
    %321 = vector.shape_cast %320 : vector<1x1x16x128xf32> to vector<16x128xf32>
    %c31_130 = arith.constant 31 : index
    %322 = memref.load %arg1[%c31_130] : memref<152xf32, #tpu.memory_space<smem>>
    %323 = vector.broadcast %322 : f32 to vector<16x128xf32>
    %324 = arith.mulf %321, %323 : vector<16x128xf32>
    %325 = arith.addf %305, %324 : vector<16x128xf32>
    %c106 = arith.constant 106 : index
    %326 = memref.load %arg1[%c106] : memref<152xf32, #tpu.memory_space<smem>>
    %327 = vector.broadcast %326 : f32 to vector<16x128xf32>
    %328 = arith.mulf %321, %327 : vector<16x128xf32>
    %329 = arith.addf %309, %328 : vector<16x128xf32>
    %c0_131 = arith.constant 0 : index
    %c32 = arith.constant 32 : index
    %c0_132 = arith.constant 0 : index
    %c0_133 = arith.constant 0 : index
    %330 = vector.load %arg2[%c0_131, %c32, %c0_132, %c0_133] : memref<1x75x16x128xf32, #tpu.memory_space<vmem>>, vector<1x1x16x128xf32>
    %331 = vector.shape_cast %330 : vector<1x1x16x128xf32> to vector<16x128xf32>
    %c32_134 = arith.constant 32 : index
    %332 = memref.load %arg1[%c32_134] : memref<152xf32, #tpu.memory_space<smem>>
    %333 = vector.broadcast %332 : f32 to vector<16x128xf32>
    %334 = arith.mulf %331, %333 : vector<16x128xf32>
    %335 = arith.addf %315, %334 : vector<16x128xf32>
    %c107 = arith.constant 107 : index
    %336 = memref.load %arg1[%c107] : memref<152xf32, #tpu.memory_space<smem>>
    %337 = vector.broadcast %336 : f32 to vector<16x128xf32>
    %338 = arith.mulf %331, %337 : vector<16x128xf32>
    %339 = arith.addf %319, %338 : vector<16x128xf32>
    %c0_135 = arith.constant 0 : index
    %c33 = arith.constant 33 : index
    %c0_136 = arith.constant 0 : index
    %c0_137 = arith.constant 0 : index
    %340 = vector.load %arg2[%c0_135, %c33, %c0_136, %c0_137] : memref<1x75x16x128xf32, #tpu.memory_space<vmem>>, vector<1x1x16x128xf32>
    %341 = vector.shape_cast %340 : vector<1x1x16x128xf32> to vector<16x128xf32>
    %c33_138 = arith.constant 33 : index
    %342 = memref.load %arg1[%c33_138] : memref<152xf32, #tpu.memory_space<smem>>
    %343 = vector.broadcast %342 : f32 to vector<16x128xf32>
    %344 = arith.mulf %341, %343 : vector<16x128xf32>
    %345 = arith.addf %325, %344 : vector<16x128xf32>
    %c108 = arith.constant 108 : index
    %346 = memref.load %arg1[%c108] : memref<152xf32, #tpu.memory_space<smem>>
    %347 = vector.broadcast %346 : f32 to vector<16x128xf32>
    %348 = arith.mulf %341, %347 : vector<16x128xf32>
    %349 = arith.addf %329, %348 : vector<16x128xf32>
    %c0_139 = arith.constant 0 : index
    %c34 = arith.constant 34 : index
    %c0_140 = arith.constant 0 : index
    %c0_141 = arith.constant 0 : index
    %350 = vector.load %arg2[%c0_139, %c34, %c0_140, %c0_141] : memref<1x75x16x128xf32, #tpu.memory_space<vmem>>, vector<1x1x16x128xf32>
    %351 = vector.shape_cast %350 : vector<1x1x16x128xf32> to vector<16x128xf32>
    %c34_142 = arith.constant 34 : index
    %352 = memref.load %arg1[%c34_142] : memref<152xf32, #tpu.memory_space<smem>>
    %353 = vector.broadcast %352 : f32 to vector<16x128xf32>
    %354 = arith.mulf %351, %353 : vector<16x128xf32>
    %355 = arith.addf %335, %354 : vector<16x128xf32>
    %c109 = arith.constant 109 : index
    %356 = memref.load %arg1[%c109] : memref<152xf32, #tpu.memory_space<smem>>
    %357 = vector.broadcast %356 : f32 to vector<16x128xf32>
    %358 = arith.mulf %351, %357 : vector<16x128xf32>
    %359 = arith.addf %339, %358 : vector<16x128xf32>
    %c0_143 = arith.constant 0 : index
    %c35 = arith.constant 35 : index
    %c0_144 = arith.constant 0 : index
    %c0_145 = arith.constant 0 : index
    %360 = vector.load %arg2[%c0_143, %c35, %c0_144, %c0_145] : memref<1x75x16x128xf32, #tpu.memory_space<vmem>>, vector<1x1x16x128xf32>
    %361 = vector.shape_cast %360 : vector<1x1x16x128xf32> to vector<16x128xf32>
    %c35_146 = arith.constant 35 : index
    %362 = memref.load %arg1[%c35_146] : memref<152xf32, #tpu.memory_space<smem>>
    %363 = vector.broadcast %362 : f32 to vector<16x128xf32>
    %364 = arith.mulf %361, %363 : vector<16x128xf32>
    %365 = arith.addf %345, %364 : vector<16x128xf32>
    %c110 = arith.constant 110 : index
    %366 = memref.load %arg1[%c110] : memref<152xf32, #tpu.memory_space<smem>>
    %367 = vector.broadcast %366 : f32 to vector<16x128xf32>
    %368 = arith.mulf %361, %367 : vector<16x128xf32>
    %369 = arith.addf %349, %368 : vector<16x128xf32>
    %c0_147 = arith.constant 0 : index
    %c36 = arith.constant 36 : index
    %c0_148 = arith.constant 0 : index
    %c0_149 = arith.constant 0 : index
    %370 = vector.load %arg2[%c0_147, %c36, %c0_148, %c0_149] : memref<1x75x16x128xf32, #tpu.memory_space<vmem>>, vector<1x1x16x128xf32>
    %371 = vector.shape_cast %370 : vector<1x1x16x128xf32> to vector<16x128xf32>
    %c36_150 = arith.constant 36 : index
    %372 = memref.load %arg1[%c36_150] : memref<152xf32, #tpu.memory_space<smem>>
    %373 = vector.broadcast %372 : f32 to vector<16x128xf32>
    %374 = arith.mulf %371, %373 : vector<16x128xf32>
    %375 = arith.addf %355, %374 : vector<16x128xf32>
    %c111 = arith.constant 111 : index
    %376 = memref.load %arg1[%c111] : memref<152xf32, #tpu.memory_space<smem>>
    %377 = vector.broadcast %376 : f32 to vector<16x128xf32>
    %378 = arith.mulf %371, %377 : vector<16x128xf32>
    %379 = arith.addf %359, %378 : vector<16x128xf32>
    %c0_151 = arith.constant 0 : index
    %c37 = arith.constant 37 : index
    %c0_152 = arith.constant 0 : index
    %c0_153 = arith.constant 0 : index
    %380 = vector.load %arg2[%c0_151, %c37, %c0_152, %c0_153] : memref<1x75x16x128xf32, #tpu.memory_space<vmem>>, vector<1x1x16x128xf32>
    %381 = vector.shape_cast %380 : vector<1x1x16x128xf32> to vector<16x128xf32>
    %c37_154 = arith.constant 37 : index
    %382 = memref.load %arg1[%c37_154] : memref<152xf32, #tpu.memory_space<smem>>
    %383 = vector.broadcast %382 : f32 to vector<16x128xf32>
    %384 = arith.mulf %381, %383 : vector<16x128xf32>
    %385 = arith.addf %365, %384 : vector<16x128xf32>
    %c112 = arith.constant 112 : index
    %386 = memref.load %arg1[%c112] : memref<152xf32, #tpu.memory_space<smem>>
    %387 = vector.broadcast %386 : f32 to vector<16x128xf32>
    %388 = arith.mulf %381, %387 : vector<16x128xf32>
    %389 = arith.addf %369, %388 : vector<16x128xf32>
    %c0_155 = arith.constant 0 : index
    %c38 = arith.constant 38 : index
    %c0_156 = arith.constant 0 : index
    %c0_157 = arith.constant 0 : index
    %390 = vector.load %arg2[%c0_155, %c38, %c0_156, %c0_157] : memref<1x75x16x128xf32, #tpu.memory_space<vmem>>, vector<1x1x16x128xf32>
    %391 = vector.shape_cast %390 : vector<1x1x16x128xf32> to vector<16x128xf32>
    %c38_158 = arith.constant 38 : index
    %392 = memref.load %arg1[%c38_158] : memref<152xf32, #tpu.memory_space<smem>>
    %393 = vector.broadcast %392 : f32 to vector<16x128xf32>
    %394 = arith.mulf %391, %393 : vector<16x128xf32>
    %395 = arith.addf %375, %394 : vector<16x128xf32>
    %c113 = arith.constant 113 : index
    %396 = memref.load %arg1[%c113] : memref<152xf32, #tpu.memory_space<smem>>
    %397 = vector.broadcast %396 : f32 to vector<16x128xf32>
    %398 = arith.mulf %391, %397 : vector<16x128xf32>
    %399 = arith.addf %379, %398 : vector<16x128xf32>
    %c0_159 = arith.constant 0 : index
    %c39 = arith.constant 39 : index
    %c0_160 = arith.constant 0 : index
    %c0_161 = arith.constant 0 : index
    %400 = vector.load %arg2[%c0_159, %c39, %c0_160, %c0_161] : memref<1x75x16x128xf32, #tpu.memory_space<vmem>>, vector<1x1x16x128xf32>
    %401 = vector.shape_cast %400 : vector<1x1x16x128xf32> to vector<16x128xf32>
    %c39_162 = arith.constant 39 : index
    %402 = memref.load %arg1[%c39_162] : memref<152xf32, #tpu.memory_space<smem>>
    %403 = vector.broadcast %402 : f32 to vector<16x128xf32>
    %404 = arith.mulf %401, %403 : vector<16x128xf32>
    %405 = arith.addf %385, %404 : vector<16x128xf32>
    %c114 = arith.constant 114 : index
    %406 = memref.load %arg1[%c114] : memref<152xf32, #tpu.memory_space<smem>>
    %407 = vector.broadcast %406 : f32 to vector<16x128xf32>
    %408 = arith.mulf %401, %407 : vector<16x128xf32>
    %409 = arith.addf %389, %408 : vector<16x128xf32>
    %c0_163 = arith.constant 0 : index
    %c40 = arith.constant 40 : index
    %c0_164 = arith.constant 0 : index
    %c0_165 = arith.constant 0 : index
    %410 = vector.load %arg2[%c0_163, %c40, %c0_164, %c0_165] : memref<1x75x16x128xf32, #tpu.memory_space<vmem>>, vector<1x1x16x128xf32>
    %411 = vector.shape_cast %410 : vector<1x1x16x128xf32> to vector<16x128xf32>
    %c40_166 = arith.constant 40 : index
    %412 = memref.load %arg1[%c40_166] : memref<152xf32, #tpu.memory_space<smem>>
    %413 = vector.broadcast %412 : f32 to vector<16x128xf32>
    %414 = arith.mulf %411, %413 : vector<16x128xf32>
    %415 = arith.addf %395, %414 : vector<16x128xf32>
    %c115 = arith.constant 115 : index
    %416 = memref.load %arg1[%c115] : memref<152xf32, #tpu.memory_space<smem>>
    %417 = vector.broadcast %416 : f32 to vector<16x128xf32>
    %418 = arith.mulf %411, %417 : vector<16x128xf32>
    %419 = arith.addf %399, %418 : vector<16x128xf32>
    %c0_167 = arith.constant 0 : index
    %c41 = arith.constant 41 : index
    %c0_168 = arith.constant 0 : index
    %c0_169 = arith.constant 0 : index
    %420 = vector.load %arg2[%c0_167, %c41, %c0_168, %c0_169] : memref<1x75x16x128xf32, #tpu.memory_space<vmem>>, vector<1x1x16x128xf32>
    %421 = vector.shape_cast %420 : vector<1x1x16x128xf32> to vector<16x128xf32>
    %c41_170 = arith.constant 41 : index
    %422 = memref.load %arg1[%c41_170] : memref<152xf32, #tpu.memory_space<smem>>
    %423 = vector.broadcast %422 : f32 to vector<16x128xf32>
    %424 = arith.mulf %421, %423 : vector<16x128xf32>
    %425 = arith.addf %405, %424 : vector<16x128xf32>
    %c116 = arith.constant 116 : index
    %426 = memref.load %arg1[%c116] : memref<152xf32, #tpu.memory_space<smem>>
    %427 = vector.broadcast %426 : f32 to vector<16x128xf32>
    %428 = arith.mulf %421, %427 : vector<16x128xf32>
    %429 = arith.addf %409, %428 : vector<16x128xf32>
    %c0_171 = arith.constant 0 : index
    %c42 = arith.constant 42 : index
    %c0_172 = arith.constant 0 : index
    %c0_173 = arith.constant 0 : index
    %430 = vector.load %arg2[%c0_171, %c42, %c0_172, %c0_173] : memref<1x75x16x128xf32, #tpu.memory_space<vmem>>, vector<1x1x16x128xf32>
    %431 = vector.shape_cast %430 : vector<1x1x16x128xf32> to vector<16x128xf32>
    %c42_174 = arith.constant 42 : index
    %432 = memref.load %arg1[%c42_174] : memref<152xf32, #tpu.memory_space<smem>>
    %433 = vector.broadcast %432 : f32 to vector<16x128xf32>
    %434 = arith.mulf %431, %433 : vector<16x128xf32>
    %435 = arith.addf %415, %434 : vector<16x128xf32>
    %c117 = arith.constant 117 : index
    %436 = memref.load %arg1[%c117] : memref<152xf32, #tpu.memory_space<smem>>
    %437 = vector.broadcast %436 : f32 to vector<16x128xf32>
    %438 = arith.mulf %431, %437 : vector<16x128xf32>
    %439 = arith.addf %419, %438 : vector<16x128xf32>
    %c0_175 = arith.constant 0 : index
    %c43 = arith.constant 43 : index
    %c0_176 = arith.constant 0 : index
    %c0_177 = arith.constant 0 : index
    %440 = vector.load %arg2[%c0_175, %c43, %c0_176, %c0_177] : memref<1x75x16x128xf32, #tpu.memory_space<vmem>>, vector<1x1x16x128xf32>
    %441 = vector.shape_cast %440 : vector<1x1x16x128xf32> to vector<16x128xf32>
    %c43_178 = arith.constant 43 : index
    %442 = memref.load %arg1[%c43_178] : memref<152xf32, #tpu.memory_space<smem>>
    %443 = vector.broadcast %442 : f32 to vector<16x128xf32>
    %444 = arith.mulf %441, %443 : vector<16x128xf32>
    %445 = arith.addf %425, %444 : vector<16x128xf32>
    %c118 = arith.constant 118 : index
    %446 = memref.load %arg1[%c118] : memref<152xf32, #tpu.memory_space<smem>>
    %447 = vector.broadcast %446 : f32 to vector<16x128xf32>
    %448 = arith.mulf %441, %447 : vector<16x128xf32>
    %449 = arith.addf %429, %448 : vector<16x128xf32>
    %c0_179 = arith.constant 0 : index
    %c44 = arith.constant 44 : index
    %c0_180 = arith.constant 0 : index
    %c0_181 = arith.constant 0 : index
    %450 = vector.load %arg2[%c0_179, %c44, %c0_180, %c0_181] : memref<1x75x16x128xf32, #tpu.memory_space<vmem>>, vector<1x1x16x128xf32>
    %451 = vector.shape_cast %450 : vector<1x1x16x128xf32> to vector<16x128xf32>
    %c44_182 = arith.constant 44 : index
    %452 = memref.load %arg1[%c44_182] : memref<152xf32, #tpu.memory_space<smem>>
    %453 = vector.broadcast %452 : f32 to vector<16x128xf32>
    %454 = arith.mulf %451, %453 : vector<16x128xf32>
    %455 = arith.addf %435, %454 : vector<16x128xf32>
    %c119 = arith.constant 119 : index
    %456 = memref.load %arg1[%c119] : memref<152xf32, #tpu.memory_space<smem>>
    %457 = vector.broadcast %456 : f32 to vector<16x128xf32>
    %458 = arith.mulf %451, %457 : vector<16x128xf32>
    %459 = arith.addf %439, %458 : vector<16x128xf32>
    %c0_183 = arith.constant 0 : index
    %c45 = arith.constant 45 : index
    %c0_184 = arith.constant 0 : index
    %c0_185 = arith.constant 0 : index
    %460 = vector.load %arg2[%c0_183, %c45, %c0_184, %c0_185] : memref<1x75x16x128xf32, #tpu.memory_space<vmem>>, vector<1x1x16x128xf32>
    %461 = vector.shape_cast %460 : vector<1x1x16x128xf32> to vector<16x128xf32>
    %c45_186 = arith.constant 45 : index
    %462 = memref.load %arg1[%c45_186] : memref<152xf32, #tpu.memory_space<smem>>
    %463 = vector.broadcast %462 : f32 to vector<16x128xf32>
    %464 = arith.mulf %461, %463 : vector<16x128xf32>
    %465 = arith.addf %445, %464 : vector<16x128xf32>
    %c120 = arith.constant 120 : index
    %466 = memref.load %arg1[%c120] : memref<152xf32, #tpu.memory_space<smem>>
    %467 = vector.broadcast %466 : f32 to vector<16x128xf32>
    %468 = arith.mulf %461, %467 : vector<16x128xf32>
    %469 = arith.addf %449, %468 : vector<16x128xf32>
    %c0_187 = arith.constant 0 : index
    %c46 = arith.constant 46 : index
    %c0_188 = arith.constant 0 : index
    %c0_189 = arith.constant 0 : index
    %470 = vector.load %arg2[%c0_187, %c46, %c0_188, %c0_189] : memref<1x75x16x128xf32, #tpu.memory_space<vmem>>, vector<1x1x16x128xf32>
    %471 = vector.shape_cast %470 : vector<1x1x16x128xf32> to vector<16x128xf32>
    %c46_190 = arith.constant 46 : index
    %472 = memref.load %arg1[%c46_190] : memref<152xf32, #tpu.memory_space<smem>>
    %473 = vector.broadcast %472 : f32 to vector<16x128xf32>
    %474 = arith.mulf %471, %473 : vector<16x128xf32>
    %475 = arith.addf %455, %474 : vector<16x128xf32>
    %c121 = arith.constant 121 : index
    %476 = memref.load %arg1[%c121] : memref<152xf32, #tpu.memory_space<smem>>
    %477 = vector.broadcast %476 : f32 to vector<16x128xf32>
    %478 = arith.mulf %471, %477 : vector<16x128xf32>
    %479 = arith.addf %459, %478 : vector<16x128xf32>
    %c0_191 = arith.constant 0 : index
    %c47 = arith.constant 47 : index
    %c0_192 = arith.constant 0 : index
    %c0_193 = arith.constant 0 : index
    %480 = vector.load %arg2[%c0_191, %c47, %c0_192, %c0_193] : memref<1x75x16x128xf32, #tpu.memory_space<vmem>>, vector<1x1x16x128xf32>
    %481 = vector.shape_cast %480 : vector<1x1x16x128xf32> to vector<16x128xf32>
    %c47_194 = arith.constant 47 : index
    %482 = memref.load %arg1[%c47_194] : memref<152xf32, #tpu.memory_space<smem>>
    %483 = vector.broadcast %482 : f32 to vector<16x128xf32>
    %484 = arith.mulf %481, %483 : vector<16x128xf32>
    %485 = arith.addf %465, %484 : vector<16x128xf32>
    %c122 = arith.constant 122 : index
    %486 = memref.load %arg1[%c122] : memref<152xf32, #tpu.memory_space<smem>>
    %487 = vector.broadcast %486 : f32 to vector<16x128xf32>
    %488 = arith.mulf %481, %487 : vector<16x128xf32>
    %489 = arith.addf %469, %488 : vector<16x128xf32>
    %c0_195 = arith.constant 0 : index
    %c48 = arith.constant 48 : index
    %c0_196 = arith.constant 0 : index
    %c0_197 = arith.constant 0 : index
    %490 = vector.load %arg2[%c0_195, %c48, %c0_196, %c0_197] : memref<1x75x16x128xf32, #tpu.memory_space<vmem>>, vector<1x1x16x128xf32>
    %491 = vector.shape_cast %490 : vector<1x1x16x128xf32> to vector<16x128xf32>
    %c48_198 = arith.constant 48 : index
    %492 = memref.load %arg1[%c48_198] : memref<152xf32, #tpu.memory_space<smem>>
    %493 = vector.broadcast %492 : f32 to vector<16x128xf32>
    %494 = arith.mulf %491, %493 : vector<16x128xf32>
    %495 = arith.addf %475, %494 : vector<16x128xf32>
    %c123 = arith.constant 123 : index
    %496 = memref.load %arg1[%c123] : memref<152xf32, #tpu.memory_space<smem>>
    %497 = vector.broadcast %496 : f32 to vector<16x128xf32>
    %498 = arith.mulf %491, %497 : vector<16x128xf32>
    %499 = arith.addf %479, %498 : vector<16x128xf32>
    %c0_199 = arith.constant 0 : index
    %c49 = arith.constant 49 : index
    %c0_200 = arith.constant 0 : index
    %c0_201 = arith.constant 0 : index
    %500 = vector.load %arg2[%c0_199, %c49, %c0_200, %c0_201] : memref<1x75x16x128xf32, #tpu.memory_space<vmem>>, vector<1x1x16x128xf32>
    %501 = vector.shape_cast %500 : vector<1x1x16x128xf32> to vector<16x128xf32>
    %c49_202 = arith.constant 49 : index
    %502 = memref.load %arg1[%c49_202] : memref<152xf32, #tpu.memory_space<smem>>
    %503 = vector.broadcast %502 : f32 to vector<16x128xf32>
    %504 = arith.mulf %501, %503 : vector<16x128xf32>
    %505 = arith.addf %485, %504 : vector<16x128xf32>
    %c124 = arith.constant 124 : index
    %506 = memref.load %arg1[%c124] : memref<152xf32, #tpu.memory_space<smem>>
    %507 = vector.broadcast %506 : f32 to vector<16x128xf32>
    %508 = arith.mulf %501, %507 : vector<16x128xf32>
    %509 = arith.addf %489, %508 : vector<16x128xf32>
    %c0_203 = arith.constant 0 : index
    %c50 = arith.constant 50 : index
    %c0_204 = arith.constant 0 : index
    %c0_205 = arith.constant 0 : index
    %510 = vector.load %arg2[%c0_203, %c50, %c0_204, %c0_205] : memref<1x75x16x128xf32, #tpu.memory_space<vmem>>, vector<1x1x16x128xf32>
    %511 = vector.shape_cast %510 : vector<1x1x16x128xf32> to vector<16x128xf32>
    %c50_206 = arith.constant 50 : index
    %512 = memref.load %arg1[%c50_206] : memref<152xf32, #tpu.memory_space<smem>>
    %513 = vector.broadcast %512 : f32 to vector<16x128xf32>
    %514 = arith.mulf %511, %513 : vector<16x128xf32>
    %515 = arith.addf %495, %514 : vector<16x128xf32>
    %c125 = arith.constant 125 : index
    %516 = memref.load %arg1[%c125] : memref<152xf32, #tpu.memory_space<smem>>
    %517 = vector.broadcast %516 : f32 to vector<16x128xf32>
    %518 = arith.mulf %511, %517 : vector<16x128xf32>
    %519 = arith.addf %499, %518 : vector<16x128xf32>
    %c0_207 = arith.constant 0 : index
    %c51 = arith.constant 51 : index
    %c0_208 = arith.constant 0 : index
    %c0_209 = arith.constant 0 : index
    %520 = vector.load %arg2[%c0_207, %c51, %c0_208, %c0_209] : memref<1x75x16x128xf32, #tpu.memory_space<vmem>>, vector<1x1x16x128xf32>
    %521 = vector.shape_cast %520 : vector<1x1x16x128xf32> to vector<16x128xf32>
    %c51_210 = arith.constant 51 : index
    %522 = memref.load %arg1[%c51_210] : memref<152xf32, #tpu.memory_space<smem>>
    %523 = vector.broadcast %522 : f32 to vector<16x128xf32>
    %524 = arith.mulf %521, %523 : vector<16x128xf32>
    %525 = arith.addf %505, %524 : vector<16x128xf32>
    %c126 = arith.constant 126 : index
    %526 = memref.load %arg1[%c126] : memref<152xf32, #tpu.memory_space<smem>>
    %527 = vector.broadcast %526 : f32 to vector<16x128xf32>
    %528 = arith.mulf %521, %527 : vector<16x128xf32>
    %529 = arith.addf %509, %528 : vector<16x128xf32>
    %c0_211 = arith.constant 0 : index
    %c52 = arith.constant 52 : index
    %c0_212 = arith.constant 0 : index
    %c0_213 = arith.constant 0 : index
    %530 = vector.load %arg2[%c0_211, %c52, %c0_212, %c0_213] : memref<1x75x16x128xf32, #tpu.memory_space<vmem>>, vector<1x1x16x128xf32>
    %531 = vector.shape_cast %530 : vector<1x1x16x128xf32> to vector<16x128xf32>
    %c52_214 = arith.constant 52 : index
    %532 = memref.load %arg1[%c52_214] : memref<152xf32, #tpu.memory_space<smem>>
    %533 = vector.broadcast %532 : f32 to vector<16x128xf32>
    %534 = arith.mulf %531, %533 : vector<16x128xf32>
    %535 = arith.addf %515, %534 : vector<16x128xf32>
    %c127 = arith.constant 127 : index
    %536 = memref.load %arg1[%c127] : memref<152xf32, #tpu.memory_space<smem>>
    %537 = vector.broadcast %536 : f32 to vector<16x128xf32>
    %538 = arith.mulf %531, %537 : vector<16x128xf32>
    %539 = arith.addf %519, %538 : vector<16x128xf32>
    %c0_215 = arith.constant 0 : index
    %c53 = arith.constant 53 : index
    %c0_216 = arith.constant 0 : index
    %c0_217 = arith.constant 0 : index
    %540 = vector.load %arg2[%c0_215, %c53, %c0_216, %c0_217] : memref<1x75x16x128xf32, #tpu.memory_space<vmem>>, vector<1x1x16x128xf32>
    %541 = vector.shape_cast %540 : vector<1x1x16x128xf32> to vector<16x128xf32>
    %c53_218 = arith.constant 53 : index
    %542 = memref.load %arg1[%c53_218] : memref<152xf32, #tpu.memory_space<smem>>
    %543 = vector.broadcast %542 : f32 to vector<16x128xf32>
    %544 = arith.mulf %541, %543 : vector<16x128xf32>
    %545 = arith.addf %525, %544 : vector<16x128xf32>
    %c128 = arith.constant 128 : index
    %546 = memref.load %arg1[%c128] : memref<152xf32, #tpu.memory_space<smem>>
    %547 = vector.broadcast %546 : f32 to vector<16x128xf32>
    %548 = arith.mulf %541, %547 : vector<16x128xf32>
    %549 = arith.addf %529, %548 : vector<16x128xf32>
    %c0_219 = arith.constant 0 : index
    %c54 = arith.constant 54 : index
    %c0_220 = arith.constant 0 : index
    %c0_221 = arith.constant 0 : index
    %550 = vector.load %arg2[%c0_219, %c54, %c0_220, %c0_221] : memref<1x75x16x128xf32, #tpu.memory_space<vmem>>, vector<1x1x16x128xf32>
    %551 = vector.shape_cast %550 : vector<1x1x16x128xf32> to vector<16x128xf32>
    %c54_222 = arith.constant 54 : index
    %552 = memref.load %arg1[%c54_222] : memref<152xf32, #tpu.memory_space<smem>>
    %553 = vector.broadcast %552 : f32 to vector<16x128xf32>
    %554 = arith.mulf %551, %553 : vector<16x128xf32>
    %555 = arith.addf %535, %554 : vector<16x128xf32>
    %c129 = arith.constant 129 : index
    %556 = memref.load %arg1[%c129] : memref<152xf32, #tpu.memory_space<smem>>
    %557 = vector.broadcast %556 : f32 to vector<16x128xf32>
    %558 = arith.mulf %551, %557 : vector<16x128xf32>
    %559 = arith.addf %539, %558 : vector<16x128xf32>
    %c0_223 = arith.constant 0 : index
    %c55 = arith.constant 55 : index
    %c0_224 = arith.constant 0 : index
    %c0_225 = arith.constant 0 : index
    %560 = vector.load %arg2[%c0_223, %c55, %c0_224, %c0_225] : memref<1x75x16x128xf32, #tpu.memory_space<vmem>>, vector<1x1x16x128xf32>
    %561 = vector.shape_cast %560 : vector<1x1x16x128xf32> to vector<16x128xf32>
    %c55_226 = arith.constant 55 : index
    %562 = memref.load %arg1[%c55_226] : memref<152xf32, #tpu.memory_space<smem>>
    %563 = vector.broadcast %562 : f32 to vector<16x128xf32>
    %564 = arith.mulf %561, %563 : vector<16x128xf32>
    %565 = arith.addf %545, %564 : vector<16x128xf32>
    %c130 = arith.constant 130 : index
    %566 = memref.load %arg1[%c130] : memref<152xf32, #tpu.memory_space<smem>>
    %567 = vector.broadcast %566 : f32 to vector<16x128xf32>
    %568 = arith.mulf %561, %567 : vector<16x128xf32>
    %569 = arith.addf %549, %568 : vector<16x128xf32>
    %c0_227 = arith.constant 0 : index
    %c56 = arith.constant 56 : index
    %c0_228 = arith.constant 0 : index
    %c0_229 = arith.constant 0 : index
    %570 = vector.load %arg2[%c0_227, %c56, %c0_228, %c0_229] : memref<1x75x16x128xf32, #tpu.memory_space<vmem>>, vector<1x1x16x128xf32>
    %571 = vector.shape_cast %570 : vector<1x1x16x128xf32> to vector<16x128xf32>
    %c56_230 = arith.constant 56 : index
    %572 = memref.load %arg1[%c56_230] : memref<152xf32, #tpu.memory_space<smem>>
    %573 = vector.broadcast %572 : f32 to vector<16x128xf32>
    %574 = arith.mulf %571, %573 : vector<16x128xf32>
    %575 = arith.addf %555, %574 : vector<16x128xf32>
    %c131 = arith.constant 131 : index
    %576 = memref.load %arg1[%c131] : memref<152xf32, #tpu.memory_space<smem>>
    %577 = vector.broadcast %576 : f32 to vector<16x128xf32>
    %578 = arith.mulf %571, %577 : vector<16x128xf32>
    %579 = arith.addf %559, %578 : vector<16x128xf32>
    %c0_231 = arith.constant 0 : index
    %c57 = arith.constant 57 : index
    %c0_232 = arith.constant 0 : index
    %c0_233 = arith.constant 0 : index
    %580 = vector.load %arg2[%c0_231, %c57, %c0_232, %c0_233] : memref<1x75x16x128xf32, #tpu.memory_space<vmem>>, vector<1x1x16x128xf32>
    %581 = vector.shape_cast %580 : vector<1x1x16x128xf32> to vector<16x128xf32>
    %c57_234 = arith.constant 57 : index
    %582 = memref.load %arg1[%c57_234] : memref<152xf32, #tpu.memory_space<smem>>
    %583 = vector.broadcast %582 : f32 to vector<16x128xf32>
    %584 = arith.mulf %581, %583 : vector<16x128xf32>
    %585 = arith.addf %565, %584 : vector<16x128xf32>
    %c132 = arith.constant 132 : index
    %586 = memref.load %arg1[%c132] : memref<152xf32, #tpu.memory_space<smem>>
    %587 = vector.broadcast %586 : f32 to vector<16x128xf32>
    %588 = arith.mulf %581, %587 : vector<16x128xf32>
    %589 = arith.addf %569, %588 : vector<16x128xf32>
    %c0_235 = arith.constant 0 : index
    %c58 = arith.constant 58 : index
    %c0_236 = arith.constant 0 : index
    %c0_237 = arith.constant 0 : index
    %590 = vector.load %arg2[%c0_235, %c58, %c0_236, %c0_237] : memref<1x75x16x128xf32, #tpu.memory_space<vmem>>, vector<1x1x16x128xf32>
    %591 = vector.shape_cast %590 : vector<1x1x16x128xf32> to vector<16x128xf32>
    %c58_238 = arith.constant 58 : index
    %592 = memref.load %arg1[%c58_238] : memref<152xf32, #tpu.memory_space<smem>>
    %593 = vector.broadcast %592 : f32 to vector<16x128xf32>
    %594 = arith.mulf %591, %593 : vector<16x128xf32>
    %595 = arith.addf %575, %594 : vector<16x128xf32>
    %c133 = arith.constant 133 : index
    %596 = memref.load %arg1[%c133] : memref<152xf32, #tpu.memory_space<smem>>
    %597 = vector.broadcast %596 : f32 to vector<16x128xf32>
    %598 = arith.mulf %591, %597 : vector<16x128xf32>
    %599 = arith.addf %579, %598 : vector<16x128xf32>
    %c0_239 = arith.constant 0 : index
    %c59 = arith.constant 59 : index
    %c0_240 = arith.constant 0 : index
    %c0_241 = arith.constant 0 : index
    %600 = vector.load %arg2[%c0_239, %c59, %c0_240, %c0_241] : memref<1x75x16x128xf32, #tpu.memory_space<vmem>>, vector<1x1x16x128xf32>
    %601 = vector.shape_cast %600 : vector<1x1x16x128xf32> to vector<16x128xf32>
    %c59_242 = arith.constant 59 : index
    %602 = memref.load %arg1[%c59_242] : memref<152xf32, #tpu.memory_space<smem>>
    %603 = vector.broadcast %602 : f32 to vector<16x128xf32>
    %604 = arith.mulf %601, %603 : vector<16x128xf32>
    %605 = arith.addf %585, %604 : vector<16x128xf32>
    %c134 = arith.constant 134 : index
    %606 = memref.load %arg1[%c134] : memref<152xf32, #tpu.memory_space<smem>>
    %607 = vector.broadcast %606 : f32 to vector<16x128xf32>
    %608 = arith.mulf %601, %607 : vector<16x128xf32>
    %609 = arith.addf %589, %608 : vector<16x128xf32>
    %c0_243 = arith.constant 0 : index
    %c60 = arith.constant 60 : index
    %c0_244 = arith.constant 0 : index
    %c0_245 = arith.constant 0 : index
    %610 = vector.load %arg2[%c0_243, %c60, %c0_244, %c0_245] : memref<1x75x16x128xf32, #tpu.memory_space<vmem>>, vector<1x1x16x128xf32>
    %611 = vector.shape_cast %610 : vector<1x1x16x128xf32> to vector<16x128xf32>
    %c60_246 = arith.constant 60 : index
    %612 = memref.load %arg1[%c60_246] : memref<152xf32, #tpu.memory_space<smem>>
    %613 = vector.broadcast %612 : f32 to vector<16x128xf32>
    %614 = arith.mulf %611, %613 : vector<16x128xf32>
    %615 = arith.addf %595, %614 : vector<16x128xf32>
    %c135 = arith.constant 135 : index
    %616 = memref.load %arg1[%c135] : memref<152xf32, #tpu.memory_space<smem>>
    %617 = vector.broadcast %616 : f32 to vector<16x128xf32>
    %618 = arith.mulf %611, %617 : vector<16x128xf32>
    %619 = arith.addf %599, %618 : vector<16x128xf32>
    %c0_247 = arith.constant 0 : index
    %c61 = arith.constant 61 : index
    %c0_248 = arith.constant 0 : index
    %c0_249 = arith.constant 0 : index
    %620 = vector.load %arg2[%c0_247, %c61, %c0_248, %c0_249] : memref<1x75x16x128xf32, #tpu.memory_space<vmem>>, vector<1x1x16x128xf32>
    %621 = vector.shape_cast %620 : vector<1x1x16x128xf32> to vector<16x128xf32>
    %c61_250 = arith.constant 61 : index
    %622 = memref.load %arg1[%c61_250] : memref<152xf32, #tpu.memory_space<smem>>
    %623 = vector.broadcast %622 : f32 to vector<16x128xf32>
    %624 = arith.mulf %621, %623 : vector<16x128xf32>
    %625 = arith.addf %605, %624 : vector<16x128xf32>
    %c136 = arith.constant 136 : index
    %626 = memref.load %arg1[%c136] : memref<152xf32, #tpu.memory_space<smem>>
    %627 = vector.broadcast %626 : f32 to vector<16x128xf32>
    %628 = arith.mulf %621, %627 : vector<16x128xf32>
    %629 = arith.addf %609, %628 : vector<16x128xf32>
    %c0_251 = arith.constant 0 : index
    %c62 = arith.constant 62 : index
    %c0_252 = arith.constant 0 : index
    %c0_253 = arith.constant 0 : index
    %630 = vector.load %arg2[%c0_251, %c62, %c0_252, %c0_253] : memref<1x75x16x128xf32, #tpu.memory_space<vmem>>, vector<1x1x16x128xf32>
    %631 = vector.shape_cast %630 : vector<1x1x16x128xf32> to vector<16x128xf32>
    %c62_254 = arith.constant 62 : index
    %632 = memref.load %arg1[%c62_254] : memref<152xf32, #tpu.memory_space<smem>>
    %633 = vector.broadcast %632 : f32 to vector<16x128xf32>
    %634 = arith.mulf %631, %633 : vector<16x128xf32>
    %635 = arith.addf %615, %634 : vector<16x128xf32>
    %c137 = arith.constant 137 : index
    %636 = memref.load %arg1[%c137] : memref<152xf32, #tpu.memory_space<smem>>
    %637 = vector.broadcast %636 : f32 to vector<16x128xf32>
    %638 = arith.mulf %631, %637 : vector<16x128xf32>
    %639 = arith.addf %619, %638 : vector<16x128xf32>
    %c0_255 = arith.constant 0 : index
    %c63 = arith.constant 63 : index
    %c0_256 = arith.constant 0 : index
    %c0_257 = arith.constant 0 : index
    %640 = vector.load %arg2[%c0_255, %c63, %c0_256, %c0_257] : memref<1x75x16x128xf32, #tpu.memory_space<vmem>>, vector<1x1x16x128xf32>
    %641 = vector.shape_cast %640 : vector<1x1x16x128xf32> to vector<16x128xf32>
    %c63_258 = arith.constant 63 : index
    %642 = memref.load %arg1[%c63_258] : memref<152xf32, #tpu.memory_space<smem>>
    %643 = vector.broadcast %642 : f32 to vector<16x128xf32>
    %644 = arith.mulf %641, %643 : vector<16x128xf32>
    %645 = arith.addf %625, %644 : vector<16x128xf32>
    %c138 = arith.constant 138 : index
    %646 = memref.load %arg1[%c138] : memref<152xf32, #tpu.memory_space<smem>>
    %647 = vector.broadcast %646 : f32 to vector<16x128xf32>
    %648 = arith.mulf %641, %647 : vector<16x128xf32>
    %649 = arith.addf %629, %648 : vector<16x128xf32>
    %c0_259 = arith.constant 0 : index
    %c64 = arith.constant 64 : index
    %c0_260 = arith.constant 0 : index
    %c0_261 = arith.constant 0 : index
    %650 = vector.load %arg2[%c0_259, %c64, %c0_260, %c0_261] : memref<1x75x16x128xf32, #tpu.memory_space<vmem>>, vector<1x1x16x128xf32>
    %651 = vector.shape_cast %650 : vector<1x1x16x128xf32> to vector<16x128xf32>
    %c64_262 = arith.constant 64 : index
    %652 = memref.load %arg1[%c64_262] : memref<152xf32, #tpu.memory_space<smem>>
    %653 = vector.broadcast %652 : f32 to vector<16x128xf32>
    %654 = arith.mulf %651, %653 : vector<16x128xf32>
    %655 = arith.addf %635, %654 : vector<16x128xf32>
    %c139 = arith.constant 139 : index
    %656 = memref.load %arg1[%c139] : memref<152xf32, #tpu.memory_space<smem>>
    %657 = vector.broadcast %656 : f32 to vector<16x128xf32>
    %658 = arith.mulf %651, %657 : vector<16x128xf32>
    %659 = arith.addf %639, %658 : vector<16x128xf32>
    %c0_263 = arith.constant 0 : index
    %c65 = arith.constant 65 : index
    %c0_264 = arith.constant 0 : index
    %c0_265 = arith.constant 0 : index
    %660 = vector.load %arg2[%c0_263, %c65, %c0_264, %c0_265] : memref<1x75x16x128xf32, #tpu.memory_space<vmem>>, vector<1x1x16x128xf32>
    %661 = vector.shape_cast %660 : vector<1x1x16x128xf32> to vector<16x128xf32>
    %c65_266 = arith.constant 65 : index
    %662 = memref.load %arg1[%c65_266] : memref<152xf32, #tpu.memory_space<smem>>
    %663 = vector.broadcast %662 : f32 to vector<16x128xf32>
    %664 = arith.mulf %661, %663 : vector<16x128xf32>
    %665 = arith.addf %645, %664 : vector<16x128xf32>
    %c140 = arith.constant 140 : index
    %666 = memref.load %arg1[%c140] : memref<152xf32, #tpu.memory_space<smem>>
    %667 = vector.broadcast %666 : f32 to vector<16x128xf32>
    %668 = arith.mulf %661, %667 : vector<16x128xf32>
    %669 = arith.addf %649, %668 : vector<16x128xf32>
    %c0_267 = arith.constant 0 : index
    %c66 = arith.constant 66 : index
    %c0_268 = arith.constant 0 : index
    %c0_269 = arith.constant 0 : index
    %670 = vector.load %arg2[%c0_267, %c66, %c0_268, %c0_269] : memref<1x75x16x128xf32, #tpu.memory_space<vmem>>, vector<1x1x16x128xf32>
    %671 = vector.shape_cast %670 : vector<1x1x16x128xf32> to vector<16x128xf32>
    %c66_270 = arith.constant 66 : index
    %672 = memref.load %arg1[%c66_270] : memref<152xf32, #tpu.memory_space<smem>>
    %673 = vector.broadcast %672 : f32 to vector<16x128xf32>
    %674 = arith.mulf %671, %673 : vector<16x128xf32>
    %675 = arith.addf %655, %674 : vector<16x128xf32>
    %c141 = arith.constant 141 : index
    %676 = memref.load %arg1[%c141] : memref<152xf32, #tpu.memory_space<smem>>
    %677 = vector.broadcast %676 : f32 to vector<16x128xf32>
    %678 = arith.mulf %671, %677 : vector<16x128xf32>
    %679 = arith.addf %659, %678 : vector<16x128xf32>
    %c0_271 = arith.constant 0 : index
    %c67 = arith.constant 67 : index
    %c0_272 = arith.constant 0 : index
    %c0_273 = arith.constant 0 : index
    %680 = vector.load %arg2[%c0_271, %c67, %c0_272, %c0_273] : memref<1x75x16x128xf32, #tpu.memory_space<vmem>>, vector<1x1x16x128xf32>
    %681 = vector.shape_cast %680 : vector<1x1x16x128xf32> to vector<16x128xf32>
    %c67_274 = arith.constant 67 : index
    %682 = memref.load %arg1[%c67_274] : memref<152xf32, #tpu.memory_space<smem>>
    %683 = vector.broadcast %682 : f32 to vector<16x128xf32>
    %684 = arith.mulf %681, %683 : vector<16x128xf32>
    %685 = arith.addf %665, %684 : vector<16x128xf32>
    %c142 = arith.constant 142 : index
    %686 = memref.load %arg1[%c142] : memref<152xf32, #tpu.memory_space<smem>>
    %687 = vector.broadcast %686 : f32 to vector<16x128xf32>
    %688 = arith.mulf %681, %687 : vector<16x128xf32>
    %689 = arith.addf %669, %688 : vector<16x128xf32>
    %c0_275 = arith.constant 0 : index
    %c68 = arith.constant 68 : index
    %c0_276 = arith.constant 0 : index
    %c0_277 = arith.constant 0 : index
    %690 = vector.load %arg2[%c0_275, %c68, %c0_276, %c0_277] : memref<1x75x16x128xf32, #tpu.memory_space<vmem>>, vector<1x1x16x128xf32>
    %691 = vector.shape_cast %690 : vector<1x1x16x128xf32> to vector<16x128xf32>
    %c68_278 = arith.constant 68 : index
    %692 = memref.load %arg1[%c68_278] : memref<152xf32, #tpu.memory_space<smem>>
    %693 = vector.broadcast %692 : f32 to vector<16x128xf32>
    %694 = arith.mulf %691, %693 : vector<16x128xf32>
    %695 = arith.addf %675, %694 : vector<16x128xf32>
    %c143 = arith.constant 143 : index
    %696 = memref.load %arg1[%c143] : memref<152xf32, #tpu.memory_space<smem>>
    %697 = vector.broadcast %696 : f32 to vector<16x128xf32>
    %698 = arith.mulf %691, %697 : vector<16x128xf32>
    %699 = arith.addf %679, %698 : vector<16x128xf32>
    %c0_279 = arith.constant 0 : index
    %c69 = arith.constant 69 : index
    %c0_280 = arith.constant 0 : index
    %c0_281 = arith.constant 0 : index
    %700 = vector.load %arg2[%c0_279, %c69, %c0_280, %c0_281] : memref<1x75x16x128xf32, #tpu.memory_space<vmem>>, vector<1x1x16x128xf32>
    %701 = vector.shape_cast %700 : vector<1x1x16x128xf32> to vector<16x128xf32>
    %c69_282 = arith.constant 69 : index
    %702 = memref.load %arg1[%c69_282] : memref<152xf32, #tpu.memory_space<smem>>
    %703 = vector.broadcast %702 : f32 to vector<16x128xf32>
    %704 = arith.mulf %701, %703 : vector<16x128xf32>
    %705 = arith.addf %685, %704 : vector<16x128xf32>
    %c144 = arith.constant 144 : index
    %706 = memref.load %arg1[%c144] : memref<152xf32, #tpu.memory_space<smem>>
    %707 = vector.broadcast %706 : f32 to vector<16x128xf32>
    %708 = arith.mulf %701, %707 : vector<16x128xf32>
    %709 = arith.addf %689, %708 : vector<16x128xf32>
    %c0_283 = arith.constant 0 : index
    %c70 = arith.constant 70 : index
    %c0_284 = arith.constant 0 : index
    %c0_285 = arith.constant 0 : index
    %710 = vector.load %arg2[%c0_283, %c70, %c0_284, %c0_285] : memref<1x75x16x128xf32, #tpu.memory_space<vmem>>, vector<1x1x16x128xf32>
    %711 = vector.shape_cast %710 : vector<1x1x16x128xf32> to vector<16x128xf32>
    %c70_286 = arith.constant 70 : index
    %712 = memref.load %arg1[%c70_286] : memref<152xf32, #tpu.memory_space<smem>>
    %713 = vector.broadcast %712 : f32 to vector<16x128xf32>
    %714 = arith.mulf %711, %713 : vector<16x128xf32>
    %715 = arith.addf %695, %714 : vector<16x128xf32>
    %c145 = arith.constant 145 : index
    %716 = memref.load %arg1[%c145] : memref<152xf32, #tpu.memory_space<smem>>
    %717 = vector.broadcast %716 : f32 to vector<16x128xf32>
    %718 = arith.mulf %711, %717 : vector<16x128xf32>
    %719 = arith.addf %699, %718 : vector<16x128xf32>
    %c0_287 = arith.constant 0 : index
    %c71 = arith.constant 71 : index
    %c0_288 = arith.constant 0 : index
    %c0_289 = arith.constant 0 : index
    %720 = vector.load %arg2[%c0_287, %c71, %c0_288, %c0_289] : memref<1x75x16x128xf32, #tpu.memory_space<vmem>>, vector<1x1x16x128xf32>
    %721 = vector.shape_cast %720 : vector<1x1x16x128xf32> to vector<16x128xf32>
    %c71_290 = arith.constant 71 : index
    %722 = memref.load %arg1[%c71_290] : memref<152xf32, #tpu.memory_space<smem>>
    %723 = vector.broadcast %722 : f32 to vector<16x128xf32>
    %724 = arith.mulf %721, %723 : vector<16x128xf32>
    %725 = arith.addf %705, %724 : vector<16x128xf32>
    %c146 = arith.constant 146 : index
    %726 = memref.load %arg1[%c146] : memref<152xf32, #tpu.memory_space<smem>>
    %727 = vector.broadcast %726 : f32 to vector<16x128xf32>
    %728 = arith.mulf %721, %727 : vector<16x128xf32>
    %729 = arith.addf %709, %728 : vector<16x128xf32>
    %c0_291 = arith.constant 0 : index
    %c72 = arith.constant 72 : index
    %c0_292 = arith.constant 0 : index
    %c0_293 = arith.constant 0 : index
    %730 = vector.load %arg2[%c0_291, %c72, %c0_292, %c0_293] : memref<1x75x16x128xf32, #tpu.memory_space<vmem>>, vector<1x1x16x128xf32>
    %731 = vector.shape_cast %730 : vector<1x1x16x128xf32> to vector<16x128xf32>
    %c72_294 = arith.constant 72 : index
    %732 = memref.load %arg1[%c72_294] : memref<152xf32, #tpu.memory_space<smem>>
    %733 = vector.broadcast %732 : f32 to vector<16x128xf32>
    %734 = arith.mulf %731, %733 : vector<16x128xf32>
    %735 = arith.addf %715, %734 : vector<16x128xf32>
    %c147 = arith.constant 147 : index
    %736 = memref.load %arg1[%c147] : memref<152xf32, #tpu.memory_space<smem>>
    %737 = vector.broadcast %736 : f32 to vector<16x128xf32>
    %738 = arith.mulf %731, %737 : vector<16x128xf32>
    %739 = arith.addf %719, %738 : vector<16x128xf32>
    %c0_295 = arith.constant 0 : index
    %c73 = arith.constant 73 : index
    %c0_296 = arith.constant 0 : index
    %c0_297 = arith.constant 0 : index
    %740 = vector.load %arg2[%c0_295, %c73, %c0_296, %c0_297] : memref<1x75x16x128xf32, #tpu.memory_space<vmem>>, vector<1x1x16x128xf32>
    %741 = vector.shape_cast %740 : vector<1x1x16x128xf32> to vector<16x128xf32>
    %c73_298 = arith.constant 73 : index
    %742 = memref.load %arg1[%c73_298] : memref<152xf32, #tpu.memory_space<smem>>
    %743 = vector.broadcast %742 : f32 to vector<16x128xf32>
    %744 = arith.mulf %741, %743 : vector<16x128xf32>
    %745 = arith.addf %725, %744 : vector<16x128xf32>
    %c148 = arith.constant 148 : index
    %746 = memref.load %arg1[%c148] : memref<152xf32, #tpu.memory_space<smem>>
    %747 = vector.broadcast %746 : f32 to vector<16x128xf32>
    %748 = arith.mulf %741, %747 : vector<16x128xf32>
    %749 = arith.addf %729, %748 : vector<16x128xf32>
    %c0_299 = arith.constant 0 : index
    %c74 = arith.constant 74 : index
    %c0_300 = arith.constant 0 : index
    %c0_301 = arith.constant 0 : index
    %750 = vector.load %arg2[%c0_299, %c74, %c0_300, %c0_301] : memref<1x75x16x128xf32, #tpu.memory_space<vmem>>, vector<1x1x16x128xf32>
    %751 = vector.shape_cast %750 : vector<1x1x16x128xf32> to vector<16x128xf32>
    %c74_302 = arith.constant 74 : index
    %752 = memref.load %arg1[%c74_302] : memref<152xf32, #tpu.memory_space<smem>>
    %753 = vector.broadcast %752 : f32 to vector<16x128xf32>
    %754 = arith.mulf %751, %753 : vector<16x128xf32>
    %755 = arith.addf %735, %754 : vector<16x128xf32>
    %c149 = arith.constant 149 : index
    %756 = memref.load %arg1[%c149] : memref<152xf32, #tpu.memory_space<smem>>
    %757 = vector.broadcast %756 : f32 to vector<16x128xf32>
    %758 = arith.mulf %751, %757 : vector<16x128xf32>
    %759 = arith.addf %739, %758 : vector<16x128xf32>
    %760 = arith.addf %755, %745 : vector<16x128xf32>
    %761 = arith.negf %760 : vector<16x128xf32>
    %762 = math.exp %761 : vector<16x128xf32>
    %cst_303 = arith.constant 1.000000e+00 : f32
    %763 = vector.broadcast %cst_303 : f32 to vector<16x128xf32>
    %764 = arith.addf %763, %762 : vector<16x128xf32>
    %765 = arith.divf %763, %764 : vector<16x128xf32>
    %c0_304 = arith.constant 0 : index
    %c0_305 = arith.constant 0 : index
    %c0_306 = arith.constant 0 : index
    %c0_307 = arith.constant 0 : index
    %766 = vector.load %arg3[%c0_304, %c0_305, %c0_306, %c0_307] : memref<1x2x16x128xf32, #tpu.memory_space<vmem>>, vector<1x1x16x128xf32>
    %767 = vector.shape_cast %766 : vector<1x1x16x128xf32> to vector<16x128xf32>
    %768 = vector.shape_cast %765 : vector<16x128xf32> to vector<1x1x16x128xf32>
    tpu.vector_store %arg3[%c0_304, %c0_305, %c0_306, %c0_307], %768 {strides = array<i32>} : memref<1x2x16x128xf32, #tpu.memory_space<vmem>>, vector<1x1x16x128xf32>,
    %769 = arith.addf %759, %749 : vector<16x128xf32>
    %770 = arith.negf %769 : vector<16x128xf32>
    %771 = math.exp %770 : vector<16x128xf32>
    %cst_308 = arith.constant 1.000000e+00 : f32
    %772 = vector.broadcast %cst_308 : f32 to vector<16x128xf32>
    %773 = arith.addf %772, %771 : vector<16x128xf32>
    %774 = arith.divf %772, %773 : vector<16x128xf32>
    %c0_309 = arith.constant 0 : index
    %c1_310 = arith.constant 1 : index
    %c0_311 = arith.constant 0 : index
    %c0_312 = arith.constant 0 : index
    %775 = vector.load %arg3[%c0_309, %c1_310, %c0_311, %c0_312] : memref<1x2x16x128xf32, #tpu.memory_space<vmem>>, vector<1x1x16x128xf32>
    %776 = vector.shape_cast %775 : vector<1x1x16x128xf32> to vector<16x128xf32>
    %777 = vector.shape_cast %774 : vector<16x128xf32> to vector<1x1x16x128xf32>
    tpu.vector_store %arg3[%c0_309, %c1_310, %c0_311, %c0_312], %777 {strides = array<i32>} : memref<1x2x16x128xf32, #tpu.memory_space<vmem>>, vector<1x1x16x128xf32>,
    return
  }
  func.func @transform_0(%arg0: i32) -> i32 {
    %c0_i32 = arith.constant 0 : i32
    %c0_i32_0 = arith.constant 0 : i32
    return %c0_i32 : i32
  }
  func.func @transform_1(%arg0: i32) -> (i32, i32, i32, i32) {
    %c0_i32 = arith.constant 0 : i32
    %c0_i32_0 = arith.constant 0 : i32
    %c0_i32_1 = arith.constant 0 : i32
    %c0_i32_2 = arith.constant 0 : i32
    return %arg0, %c0_i32, %c0_i32_0, %c0_i32_1 : i32, i32, i32, i32
  }
  func.func @transform_2(%arg0: i32) -> (i32, i32, i32, i32) {
    %c0_i32 = arith.constant 0 : i32
    %c0_i32_0 = arith.constant 0 : i32
    %c0_i32_1 = arith.constant 0 : i32
    %c0_i32_2 = arith.constant 0 : i32
    return %arg0, %c0_i32, %c0_i32_0, %c0_i32_1 : i32, i32, i32, i32
  }
}

</mosaic_0001>

<bundles_post_ra>
// kernel: tpu_custom_call.1
= control target key start
LH: loop header
LB: loop body
LE: loop exit
PB: predicated region body
PF: predicated region fallthrough
CT: control target
= control target key end

     0   :  { %7 = vsyncpa [#allocation5], 0  ;;  %s2733_s0 = inlined_call_operand.hbm [shape: f32[152], index: 0, kind: input, shape index: {}]   ;;  %s2734_s1 = inlined_call_operand.hbm [shape: f32[2,75,16,128], index: 1, kind: input, shape index: {}]   ;;  %s2735_s2 = inlined_call_operand.hbm [shape: f32[2,2,16,128], index: 2, kind: output, shape index: {}]  }
   0x1   :  { %8 = vsyncpa [#allocation3], 0 }
   0x2   :  { %10 = vsyncpa [#allocation3 + $0x1], 0 }
   0x3   :  { %11 = vsyncpa [#allocation4], 0 }
   0x4   :  { %13 = vsyncpa [#allocation4 + $0x1], 0  ;;  %s1966_s9 = smov 0   ;;  %s1968_s10 = smov 0  }
   0x5   :  { %s1970_s11 = smov 0   ;;  %s1972_s12 = smov 0  }
   0x6 LB: > { %s1987_s13 = sadd.s32 4294967295, %s1942_s12   ;;  %s1436_s14 = sadd.s32 4294967294, %s1942_s12   ;;  %s1942_s12 = sphi %s1972_s12, %s2757_s12   ;;  %s1938_s11 = sphi %s1970_s11, %s2756_s11   ;;  %s1934_s10 = sphi %s1968_s10, %s2755_s10   ;;  %s1930_s9 = sphi %s1966_s9, %s2754_s9  }
   0x7   : > { %s1991_s15 = sadd.s32 1, %s1942_s12   ;;  %s47_s16 = sadd.s32 1, %s1938_s11 }
   0x8   : > { %s44_s17 = ssub.s32 %s1942_s12, %s1991_s15  ;;  %p54_p0 = scmp.ne.s32.totalorder %s1938_s11, %s1934_s10 }
   0x9   : > { %p45_p1 = scmp.eq.s32.totalorder %s44_s17, 0  ;;  %p55_p2 = scmp.eq.s32.totalorder %s1942_s12, 0 }
   0xa   : > { %p60_p3 = scmp.ne.s32.totalorder %s1934_s10, %s1930_s9  ;;  %p2736_p4 = scmp.eq.s32.totalorder %s1987_s13, 0 }
   0xb   : > { %s2003_s18 = scalar_select %p45_p1, %s1938_s11, %s47_s16  }
   0xc   : > { %p2005_p5 = por %p55_p2, %p54_p0  ;;  %p2011_p6 = por %p2736_p4, %p60_p3 }
   0xd   : > { %p84_p7 = scmp.eq.s32.totalorder %s1987_s13, 1  ;;  %p90_p8 = scmp.eq.s32.totalorder %s1436_s14, 1 }
   0xe   : > { %s2741_s20 = scalar_select %p2011_p6, 1, 0 }
   0xf   : > { %p1437_p9 = scmp.ge.s32.totalorder %s1942_s12, 1  ;;  %p97_p10 = scmp.lt.s32.totalorder %s1942_s12, 3 }
  0x10   : > { %p2018_p11 = por %p84_p7, %p54_p0  ;;  %p2022_p12 = por %p90_p8, %p60_p3 }
  0x11   : > { %p2026_p13 = pnand %p1437_p9, %p97_p10  ;;  %p1779_p4 = scmp.lt.s32.totalorder %s1942_s12, 2 }
  0x12   : > { %s2742_s21 = scalar_select %p2018_p11, 1, 0 }
  0x13   : > { %s2743_s22 = scalar_select %p2022_p12, 1, 0 }
  0x14   : > { %s2744_s23 = scalar_select %p2026_p13, 1, 0 }
  0x15   : > { %p1766_p2 = pneg %p2026_p13  ;;  %s119_s24 = sand.u32 1, %s1938_s11  }
  0x16   : > { %s1756_s25 = smul.u32 19200, %s1942_s12  ;;  %p2745_p6 = scmp.eq.s32.totalorder %s1987_s13, 0 }
  0x17   : > { %p2040_p7 = pnand %p1779_p4, %p2005_p5  ;;  %s1755_s27 = smul.u32 1200, %s119_s24 }
  0x18   : > { %p1767_p0 = pnand %p1766_p2, %p2745_p6  ;;  %s1944_s28 = smov [#allocation2]  }
  0x19   : > { %s2050_s5 = scalar_lea.hbm %s2734_s1, %s1756_s25  ;;  %s123_s6 = scalar_lea.vmem [#allocation6], %s1755_s27 }
  0x1a   : > { %1769 = dma.hbm_to_smem (!%p1767_p0), %s2733_s0, 32, %s1944_s28, [#allocation5]  }
  0x1b   : > { %s130_s7 = sshll.u32 %s123_s6, 4  ;;  %s2054_s8 = scalar_lea.sflag [#allocation3], %s119_s24  ;;  %s2052_s7 = int_to_ptr.vmem [resolvable:$true] %s130_s7 }
  0x1c   : > { %s1846_s14 = scalar_lea.hbm %s2050_s5, 19200  ;;  %p1848_p4 = pneg %p2040_p7 }
  0x1d   : > { %p1847_p3 = scmp.ne.s32.totalorder %s2050_s5, %s1846_s14  ;;  %s1851_s19 = scalar_lea.hbm %s2734_s1, 38400 }
  0x1e   : > { %p1852_p8 = scmp.lt.s32.totalorder %s2050_s5, %s2734_s1  ;;  %p1853_p9 = scmp.lt.s32.totalorder %s1851_s19, %s1846_s14 }
  0x1f   : > { %p1849_p5 = pnand %p1848_p4, %p1847_p3 }
  0x20   : > { %p1854_p10 = por %p1853_p9, %p1852_p8 }
  0x21   : > { %p1850_p6 = pneg %p1849_p5 }
  0x23   : > { %p1855_p2 = pnand %p1854_p10, %p1850_p6 }
  0x25   : > { %1858 = shalt.err (!%p1855_p2)
}
  0x26   : > { %s1859_s24 = scalar_lea.vmem %s2052_s7, 19200  ;;  %s1945_s27 = smov [#allocation6]  }
  0x27   : > { %p1860_p0 = scmp.ne.s32.totalorder %s2052_s7, %s1859_s24  ;;  %s1864_s29 = sshll.u32 %s1945_s27, 4  ;;  %s1865_s29 = int_to_ptr.vmem [resolvable:$false] %s1864_s29 }
  0x28   : > { %s1866_s30 = scalar_lea.vmem %s1865_s29, 38400  ;;  %p1867_p5 = scmp.lt.s32.totalorder %s2052_s7, %s1865_s29 }
  0x29   : > { %p1862_p1 = pnand %p1860_p0, %p1848_p4  ;;  %p1868_p12 = scmp.lt.s32.totalorder %s1866_s30, %s1859_s24 }
  0x2b   : > { %p1863_p3 = pneg %p1862_p1  ;;  %p1869_p11 = por %p1868_p12, %p1867_p5 }
  0x2d   : > { %p1870_p13 = pnand %p1869_p11, %p1863_p3 }
  0x2f   : > { %1873 = shalt.err (!%p1870_p13)
}
  0x30   : > { %s1946_s3 = smov 128   ;;  %s1947_s4 = smov 8  }
  0x31   : > { %1773 = dma.hbm_to_vmem [thread:$0]  (!%p2040_p7), %s2050_s5, 19200, %s2052_s7, %s2054_s8, %s1946_s3, %s1946_s3, %s1947_s4  }
  0x32   : > { %p2747_p4 = scmp.ne.s32.totalorder %s2744_s23, 0 }
  0x33   : > { %p2748_p1 = scmp.eq.s32.totalorder (!%p2747_p4), %s1987_s13, 0 }
  0x34   : > { %142 = sbr.rel (%p2747_p4) target bundleno = 313 (0x139), region = 28 }
  0x39   : > { %1917 = dma.done.wait (%p2748_p1), [#allocation5], 32   ;;  %p2749_p6 = pmov %p2748_p1 }
  0x3a   : > { %s2082_s6 = sand.u32 1, %s1934_s10   ;;  %p2750_p11 = scmp.ne.s32.totalorder %s2741_s20, 0 }
  0x3b   : > { %1919 = vsyncadd (%p2749_p6), [#allocation5], 4294967264  ;;  %s1757_s14 = smul.u32 1200, %s2082_s6  ;;  %s149_s16 = scalar_lea.sflag [#allocation3], %s2082_s6 }
  0x3d   : > { %s2086_s17 = scalar_lea.vmem [#allocation6], %s1757_s14 }
  0x3e   : > { %1921 = dma.done.wait (%p2750_p11), %s149_s16, 19200  }
  0x3f   : > { %1923 = vsyncadd (%p2750_p11), %s149_s16, 4294948096 }
  0x40   : > { %157 = sfence }
  0x41   : > { %s1444_s23 = sld [smem:[#allocation2 + $0x96]]  ;;  %v180_v0 = vld [vmem:[%s2086_s17] sm:$0xff]  ;;  %v181_v1 = vld [vmem:[%s2086_s17 + $0x8] sm:$0xff]  ;;  %v1447_v7 = vld [vmem:[%s2086_s17 + $0x10] sm:$0xff]  ;;  %p2751_p13 = scmp.ne.s32.totalorder %s2742_s21, 0 }
  0x42   : > { %s2092_s26 = sld [smem:[#allocation2 + $0x97]]  ;;  %v1448_v8 = vld [vmem:[%s2086_s17 + $0x18] sm:$0xff]  ;;  %v1451_v13 = vld [vmem:[%s2086_s17 + $0x20] sm:$0xff]  ;;  %v1452_v14 = vld [vmem:[%s2086_s17 + $0x28] sm:$0xff] }
  0x43   : > { %s182_s5 = sld [smem:[#allocation2]]  ;;  %v1455_v25 = vld [vmem:[%s2086_s17 + $0x30] sm:$0xff]  ;;  %v1456_v26 = vld [vmem:[%s2086_s17 + $0x38] sm:$0xff]  ;;  %v1459_v35 = vld [vmem:[%s2086_s17 + $0x40] sm:$0xff] }
  0x44   : > { %s1446_s7 = sld [smem:[#allocation2 + $0x4b]]  ;;  %v1460_v36 = vld [vmem:[%s2086_s17 + $0x48] sm:$0xff]  ;;  %v1463_v49 = vld [vmem:[%s2086_s17 + $0x50] sm:$0xff]  ;;  %v1464_v50 = vld [vmem:[%s2086_s17 + $0x58] sm:$0xff] }
  0x45   : > { %s1449_s8 = sld [smem:[#allocation2 + $0x1]]  ;;  %v1467_v59 = vld [vmem:[%s2086_s17 + $0x60] sm:$0xff]  ;;  %v1468_v60 = vld [vmem:[%s2086_s17 + $0x68] sm:$0xff] }
  0x46   : > { %s2094_s19 = sld [smem:[#allocation2 + $0x4c]] }
  0x47   : > { %s1453_s25 = sld [smem:[#allocation2 + $0x2]]  ;;  %v175_v2 = vstv %s1444_s23 }
  0x48   : > { %s2098_s20 = sld [smem:[#allocation2 + $0x4d]]  ;;  %v178_v9 = vstv %s2092_s26 }
  0x49   : > { %v183_v3 = vstv %s182_s5  ;;  %s2100_s28 = sld [smem:[#allocation2 + $0x3]] }
  0x4a   : > { %v184_v4 = vmul.f32 %v183_v3, %v180_v0  ;;  %v185_v5 = vmul.f32 %v183_v3, %v181_v1  ;;  %v189_v6 = vstv %s1446_s7  ;;  %s2104_s24 = sld [smem:[#allocation2 + $0x4e]] }
  0x4b   : > { %v190_v10 = vmul.f32 %v189_v6, %v180_v0  ;;  %v191_v11 = vmul.f32 %v189_v6, %v181_v1  ;;  %v198_v12 = vstv %s1449_s8  ;;  %s2109_s27 = sld [smem:[#allocation2 + $0x4]] }
  0x4c   : > { %v186_v15 = vadd.f32 %v184_v4, %v175_v2  ;;  %v187_v16 = vadd.f32 %v185_v5, %v175_v2  ;;  %s2111_s29 = sld [smem:[#allocation2 + $0x4f]]  ;;  %v199_v17 = vmul.f32 %v1447_v7, %v198_v12  ;;  %v200_v18 = vmul.f32 %v1448_v8, %v198_v12 }
  0x4d   : > { %v204_v19 = vstv %s2094_s19  ;;  %v213_v20 = vstv %s1453_s25  ;;  %s2114_s30 = sld [smem:[#allocation2 + $0x5]]  ;;  %v192_v21 = vadd.f32 %v190_v10, %v178_v9  ;;  %v193_v22 = vadd.f32 %v191_v11, %v178_v9  ;;  %v1471_v9 = vld [vmem:[%s2086_s17 + $0x70] sm:$0xff]  ;;  %v1472_v10 = vld [vmem:[%s2086_s17 + $0x78] sm:$0xff] }
  0x4e   : > { %v214_v23 = vmul.f32 %v1451_v13, %v213_v20  ;;  %v215_v24 = vmul.f32 %v1452_v14, %v213_v20  ;;  %s2118_s3 = sld [smem:[#allocation2 + $0x50]]  ;;  %v205_v27 = vmul.f32 %v1447_v7, %v204_v19  ;;  %v206_v28 = vmul.f32 %v1448_v8, %v204_v19  ;;  %v1475_v19 = vld [vmem:[%s2086_s17 + $0x80] sm:$0xff]  ;;  %v1476_v20 = vld [vmem:[%s2086_s17 + $0x88] sm:$0xff] }
  0x4f   : > { %v219_v29 = vstv %s2098_s20  ;;  %v228_v30 = vstv %s2100_s28  ;;  %s2122_s4 = sld [smem:[#allocation2 + $0x6]] }
  0x50   : > { %v216_v31 = vadd.f32 %v214_v23, %v186_v15  ;;  %v217_v32 = vadd.f32 %v215_v24, %v187_v16  ;;  %v220_v33 = vmul.f32 %v1451_v13, %v219_v29  ;;  %v221_v34 = vmul.f32 %v1452_v14, %v219_v29  ;;  %s2126_s14 = sld [smem:[#allocation2 + $0x51]] }
  0x51   : > { %v229_v37 = vmul.f32 %v1455_v25, %v228_v30  ;;  %v230_v38 = vmul.f32 %v1456_v26, %v228_v30  ;;  %v234_v39 = vstv %s2104_s24  ;;  %v243_v40 = vstv %s2109_s27  ;;  %s2130_s16 = sld [smem:[#allocation2 + $0x7]] }
  0x52   : > { %v222_v41 = vadd.f32 %v220_v33, %v192_v21  ;;  %v223_v42 = vadd.f32 %v221_v34, %v193_v22  ;;  %v235_v43 = vmul.f32 %v1455_v25, %v234_v39  ;;  %v236_v44 = vmul.f32 %v1456_v26, %v234_v39  ;;  %s2132_s23 = sld [smem:[#allocation2 + $0x52]]  ;;  %v1479_v33 = vld [vmem:[%s2086_s17 + $0x90] sm:$0xff]  ;;  %v1480_v34 = vld [vmem:[%s2086_s17 + $0x98] sm:$0xff] }
  0x53   : > { %v231_v45 = vadd.f32 %v229_v37, %v199_v17  ;;  %v232_v46 = vadd.f32 %v230_v38, %v200_v18  ;;  %v244_v47 = vmul.f32 %v1459_v35, %v243_v40  ;;  %v245_v48 = vmul.f32 %v1460_v36, %v243_v40  ;;  %s2136_s26 = sld [smem:[#allocation2 + $0x8]] }
  0x54   : > { %v237_v51 = vadd.f32 %v235_v43, %v205_v27  ;;  %v238_v52 = vadd.f32 %v236_v44, %v206_v28  ;;  %v249_v53 = vstv %s2111_s29  ;;  %v258_v54 = vstv %s2114_s30  ;;  %s2142_s5 = sld [smem:[#allocation2 + $0x53]]  ;;  %v1483_v43 = vld [vmem:[%s2086_s17 + $0xa0] sm:$0xff]  ;;  %v1484_v44 = vld [vmem:[%s2086_s17 + $0xa8] sm:$0xff] }
  0x55   : > { %v246_v55 = vadd.f32 %v244_v47, %v216_v31  ;;  %v247_v56 = vadd.f32 %v245_v48, %v217_v32  ;;  %v250_v57 = vmul.f32 %v1459_v35, %v249_v53  ;;  %v251_v58 = vmul.f32 %v1460_v36, %v249_v53  ;;  %s2146_s7 = sld [smem:[#allocation2 + $0x9]] }
  0x56   : > { %v259_v61 = vmul.f32 %v1463_v49, %v258_v54  ;;  %v260_v62 = vmul.f32 %v1464_v50, %v258_v54  ;;  %v264_v63 = vstv %s2118_s3  ;;  %v273_v0 = vstv %s2122_s4  ;;  %s2148_s8 = sld [smem:[#allocation2 + $0x54]] }
  0x57   : > { %v252_v1 = vadd.f32 %v250_v57, %v222_v41  ;;  %v253_v2 = vadd.f32 %v251_v58, %v223_v42  ;;  %v265_v3 = vmul.f32 %v1463_v49, %v264_v63  ;;  %v266_v4 = vmul.f32 %v1464_v50, %v264_v63  ;;  %s2152_s19 = sld [smem:[#allocation2 + $0xa]]  ;;  %v1487_v57 = vld [vmem:[%s2086_s17 + $0xb0] sm:$0xff]  ;;  %v1488_v58 = vld [vmem:[%s2086_s17 + $0xb8] sm:$0xff] }
  0x58   : > { %v261_v5 = vadd.f32 %v259_v61, %v231_v45  ;;  %v262_v6 = vadd.f32 %v260_v62, %v232_v46  ;;  %v274_v7 = vmul.f32 %v1467_v59, %v273_v0  ;;  %v275_v8 = vmul.f32 %v1468_v60, %v273_v0  ;;  %s2158_s25 = sld [smem:[#allocation2 + $0x55]] }
  0x59   : > { %v267_v11 = vadd.f32 %v265_v3, %v237_v51  ;;  %v268_v12 = vadd.f32 %v266_v4, %v238_v52  ;;  %v279_v13 = vstv %s2126_s14  ;;  %v288_v14 = vstv %s2130_s16  ;;  %s2162_s20 = sld [smem:[#allocation2 + $0xb]]  ;;  %v1491_v3 = vld [vmem:[%s2086_s17 + $0xc0] sm:$0xff]  ;;  %v1492_v4 = vld [vmem:[%s2086_s17 + $0xc8] sm:$0xff] }
  0x5a   : > { %v276_v15 = vadd.f32 %v274_v7, %v246_v55  ;;  %v277_v16 = vadd.f32 %v275_v8, %v247_v56  ;;  %v280_v17 = vmul.f32 %v1467_v59, %v279_v13  ;;  %v281_v18 = vmul.f32 %v1468_v60, %v279_v13  ;;  %s2164_s28 = sld [smem:[#allocation2 + $0x56]] }
  0x5b   : > { %v289_v21 = vmul.f32 %v1471_v9, %v288_v14  ;;  %v290_v22 = vmul.f32 %v1472_v10, %v288_v14  ;;  %v294_v23 = vstv %s2132_s23  ;;  %v303_v24 = vstv %s2136_s26  ;;  %s2168_s24 = sld [smem:[#allocation2 + $0xc]] }
  0x5c   : > { %v282_v25 = vadd.f32 %v280_v17, %v252_v1  ;;  %v283_v26 = vadd.f32 %v281_v18, %v253_v2  ;;  %v295_v27 = vmul.f32 %v1471_v9, %v294_v23  ;;  %v296_v28 = vmul.f32 %v1472_v10, %v294_v23  ;;  %s2174_s27 = sld [smem:[#allocation2 + $0x57]]  ;;  %v1495_v17 = vld [vmem:[%s2086_s17 + $0xd0] sm:$0xff]  ;;  %v1496_v18 = vld [vmem:[%s2086_s17 + $0xd8] sm:$0xff] }
  0x5d   : > { %v291_v29 = vadd.f32 %v289_v21, %v261_v5  ;;  %v292_v30 = vadd.f32 %v290_v22, %v262_v6  ;;  %v304_v31 = vmul.f32 %v1475_v19, %v303_v24  ;;  %v305_v32 = vmul.f32 %v1476_v20, %v303_v24  ;;  %s2178_s29 = sld [smem:[#allocation2 + $0xd]] }
  0x5e   : > { %v297_v35 = vadd.f32 %v295_v27, %v267_v11  ;;  %v298_v36 = vadd.f32 %v296_v28, %v268_v12  ;;  %v309_v37 = vstv %s2142_s5  ;;  %v318_v38 = vstv %s2146_s7  ;;  %s2180_s30 = sld [smem:[#allocation2 + $0x58]]  ;;  %v1499_v27 = vld [vmem:[%s2086_s17 + $0xe0] sm:$0xff]  ;;  %v1500_v28 = vld [vmem:[%s2086_s17 + $0xe8] sm:$0xff] }
  0x5f   : > { %v306_v39 = vadd.f32 %v304_v31, %v276_v15  ;;  %v307_v40 = vadd.f32 %v305_v32, %v277_v16  ;;  %v310_v41 = vmul.f32 %v1475_v19, %v309_v37  ;;  %v311_v42 = vmul.f32 %v1476_v20, %v309_v37  ;;  %s2184_s3 = sld [smem:[#allocation2 + $0xe]] }
  0x60   : > { %v319_v45 = vmul.f32 %v1479_v33, %v318_v38  ;;  %v320_v46 = vmul.f32 %v1480_v34, %v318_v38  ;;  %v324_v47 = vstv %s2148_s8  ;;  %v333_v48 = vstv %s2152_s19  ;;  %s2190_s4 = sld [smem:[#allocation2 + $0x59]] }
  0x61   : > { %v312_v49 = vadd.f32 %v310_v41, %v282_v25  ;;  %v313_v50 = vadd.f32 %v311_v42, %v283_v26  ;;  %v325_v51 = vmul.f32 %v1479_v33, %v324_v47  ;;  %v326_v52 = vmul.f32 %v1480_v34, %v324_v47  ;;  %s2194_s14 = sld [smem:[#allocation2 + $0xf]]  ;;  %v1503_v41 = vld [vmem:[%s2086_s17 + $0xf0] sm:$0xff]  ;;  %v1504_v42 = vld [vmem:[%s2086_s17 + $0xf8] sm:$0xff] }
  0x62   : > { %v321_v53 = vadd.f32 %v319_v45, %v291_v29  ;;  %v322_v54 = vadd.f32 %v320_v46, %v292_v30  ;;  %v334_v55 = vmul.f32 %v1483_v43, %v333_v48  ;;  %v335_v56 = vmul.f32 %v1484_v44, %v333_v48  ;;  %s2196_s16 = sld [smem:[#allocation2 + $0x5a]] }
  0x63   : > { %v327_v59 = vadd.f32 %v325_v51, %v297_v35  ;;  %v328_v60 = vadd.f32 %v326_v52, %v298_v36  ;;  %v339_v61 = vstv %s2158_s25  ;;  %v348_v62 = vstv %s2162_s20  ;;  %s2200_s23 = sld [smem:[#allocation2 + $0x10]]  ;;  %v1507_v51 = vld [vmem:[%s2086_s17 + $0x100] sm:$0xff]  ;;  %v1508_v52 = vld [vmem:[%s2086_s17 + $0x108] sm:$0xff] }
  0x64   : > { %v336_v63 = vadd.f32 %v334_v55, %v306_v39  ;;  %v337_v0 = vadd.f32 %v335_v56, %v307_v40  ;;  %v340_v1 = vmul.f32 %v1483_v43, %v339_v61  ;;  %v341_v2 = vmul.f32 %v1484_v44, %v339_v61  ;;  %s2206_s26 = sld [smem:[#allocation2 + $0x5b]] }
  0x65   : > { %v349_v5 = vmul.f32 %v1487_v57, %v348_v62  ;;  %v350_v6 = vmul.f32 %v1488_v58, %v348_v62  ;;  %v354_v7 = vstv %s2164_s28  ;;  %v363_v8 = vstv %s2168_s24  ;;  %s2210_s5 = sld [smem:[#allocation2 + $0x11]] }
  0x66   : > { %v342_v9 = vadd.f32 %v340_v1, %v312_v49  ;;  %v343_v10 = vadd.f32 %v341_v2, %v313_v50  ;;  %v355_v11 = vmul.f32 %v1487_v57, %v354_v7  ;;  %v356_v12 = vmul.f32 %v1488_v58, %v354_v7  ;;  %s2212_s7 = sld [smem:[#allocation2 + $0x5c]]  ;;  %v1511_v1 = vld [vmem:[%s2086_s17 + $0x110] sm:$0xff]  ;;  %v1512_v2 = vld [vmem:[%s2086_s17 + $0x118] sm:$0xff] }
  0x67   : > { %v351_v13 = vadd.f32 %v349_v5, %v321_v53  ;;  %v352_v14 = vadd.f32 %v350_v6, %v322_v54  ;;  %v364_v15 = vmul.f32 %v1491_v3, %v363_v8  ;;  %v365_v16 = vmul.f32 %v1492_v4, %v363_v8  ;;  %s2216_s8 = sld [smem:[#allocation2 + $0x12]] }
  0x68   : > { %v357_v19 = vadd.f32 %v355_v11, %v327_v59  ;;  %v358_v20 = vadd.f32 %v356_v12, %v328_v60  ;;  %v369_v21 = vstv %s2174_s27  ;;  %v378_v22 = vstv %s2178_s29  ;;  %s2222_s19 = sld [smem:[#allocation2 + $0x5d]]  ;;  %v1515_v11 = vld [vmem:[%s2086_s17 + $0x120] sm:$0xff]  ;;  %v1516_v12 = vld [vmem:[%s2086_s17 + $0x128] sm:$0xff] }
  0x69   : > { %v366_v23 = vadd.f32 %v364_v15, %v336_v63  ;;  %v367_v24 = vadd.f32 %v365_v16, %v337_v0  ;;  %v370_v25 = vmul.f32 %v1491_v3, %v369_v21  ;;  %v371_v26 = vmul.f32 %v1492_v4, %v369_v21  ;;  %s2226_s25 = sld [smem:[#allocation2 + $0x13]] }
  0x6a   : > { %v379_v29 = vmul.f32 %v1495_v17, %v378_v22  ;;  %v380_v30 = vmul.f32 %v1496_v18, %v378_v22  ;;  %v384_v31 = vstv %s2180_s30  ;;  %v393_v32 = vstv %s2184_s3  ;;  %s2228_s20 = sld [smem:[#allocation2 + $0x5e]] }
  0x6b   : > { %v372_v33 = vadd.f32 %v370_v25, %v342_v9  ;;  %v373_v34 = vadd.f32 %v371_v26, %v343_v10  ;;  %v385_v35 = vmul.f32 %v1495_v17, %v384_v31  ;;  %v386_v36 = vmul.f32 %v1496_v18, %v384_v31  ;;  %s2232_s28 = sld [smem:[#allocation2 + $0x14]]  ;;  %v1519_v25 = vld [vmem:[%s2086_s17 + $0x130] sm:$0xff]  ;;  %v1520_v26 = vld [vmem:[%s2086_s17 + $0x138] sm:$0xff] }
  0x6c   : > { %v381_v37 = vadd.f32 %v379_v29, %v351_v13  ;;  %v382_v38 = vadd.f32 %v380_v30, %v352_v14  ;;  %v394_v39 = vmul.f32 %v1499_v27, %v393_v32  ;;  %v395_v40 = vmul.f32 %v1500_v28, %v393_v32  ;;  %s2238_s24 = sld [smem:[#allocation2 + $0x5f]] }
  0x6d   : > { %v387_v43 = vadd.f32 %v385_v35, %v357_v19  ;;  %v388_v44 = vadd.f32 %v386_v36, %v358_v20  ;;  %v399_v45 = vstv %s2190_s4  ;;  %v408_v46 = vstv %s2194_s14  ;;  %s2242_s27 = sld [smem:[#allocation2 + $0x15]]  ;;  %v1523_v35 = vld [vmem:[%s2086_s17 + $0x140] sm:$0xff]  ;;  %v1524_v36 = vld [vmem:[%s2086_s17 + $0x148] sm:$0xff] }
  0x6e   : > { %v396_v47 = vadd.f32 %v394_v39, %v366_v23  ;;  %v397_v48 = vadd.f32 %v395_v40, %v367_v24  ;;  %v400_v49 = vmul.f32 %v1499_v27, %v399_v45  ;;  %v401_v50 = vmul.f32 %v1500_v28, %v399_v45  ;;  %s2244_s29 = sld [smem:[#allocation2 + $0x60]] }
  0x6f   : > { %v409_v53 = vmul.f32 %v1503_v41, %v408_v46  ;;  %v410_v54 = vmul.f32 %v1504_v42, %v408_v46  ;;  %v414_v55 = vstv %s2196_s16  ;;  %v423_v56 = vstv %s2200_s23  ;;  %s2248_s30 = sld [smem:[#allocation2 + $0x16]] }
  0x70   : > { %v402_v57 = vadd.f32 %v400_v49, %v372_v33  ;;  %v403_v58 = vadd.f32 %v401_v50, %v373_v34  ;;  %v415_v59 = vmul.f32 %v1503_v41, %v414_v55  ;;  %v416_v60 = vmul.f32 %v1504_v42, %v414_v55  ;;  %s2254_s3 = sld [smem:[#allocation2 + $0x61]]  ;;  %v1527_v49 = vld [vmem:[%s2086_s17 + $0x150] sm:$0xff]  ;;  %v1528_v50 = vld [vmem:[%s2086_s17 + $0x158] sm:$0xff] }
  0x71   : > { %v411_v61 = vadd.f32 %v409_v53, %v381_v37  ;;  %v412_v62 = vadd.f32 %v410_v54, %v382_v38  ;;  %v424_v63 = vmul.f32 %v1507_v51, %v423_v56  ;;  %v425_v0 = vmul.f32 %v1508_v52, %v423_v56  ;;  %s2258_s4 = sld [smem:[#allocation2 + $0x17]] }
  0x72   : > { %v417_v3 = vadd.f32 %v415_v59, %v387_v43  ;;  %v418_v4 = vadd.f32 %v416_v60, %v388_v44  ;;  %v429_v5 = vstv %s2206_s26  ;;  %v438_v6 = vstv %s2210_s5  ;;  %s2260_s14 = sld [smem:[#allocation2 + $0x62]]  ;;  %v1531_v59 = vld [vmem:[%s2086_s17 + $0x160] sm:$0xff]  ;;  %v1532_v60 = vld [vmem:[%s2086_s17 + $0x168] sm:$0xff] }
  0x73   : > { %v426_v7 = vadd.f32 %v424_v63, %v396_v47  ;;  %v427_v8 = vadd.f32 %v425_v0, %v397_v48  ;;  %v430_v9 = vmul.f32 %v1507_v51, %v429_v5  ;;  %v431_v10 = vmul.f32 %v1508_v52, %v429_v5  ;;  %s2264_s16 = sld [smem:[#allocation2 + $0x18]] }
  0x74   : > { %v439_v13 = vmul.f32 %v1511_v1, %v438_v6  ;;  %v440_v14 = vmul.f32 %v1512_v2, %v438_v6  ;;  %v444_v15 = vstv %s2212_s7  ;;  %v453_v16 = vstv %s2216_s8  ;;  %s2270_s23 = sld [smem:[#allocation2 + $0x63]] }
  0x75   : > { %v432_v17 = vadd.f32 %v430_v9, %v402_v57  ;;  %v433_v18 = vadd.f32 %v431_v10, %v403_v58  ;;  %v445_v19 = vmul.f32 %v1511_v1, %v444_v15  ;;  %v446_v20 = vmul.f32 %v1512_v2, %v444_v15  ;;  %s2274_s26 = sld [smem:[#allocation2 + $0x19]]  ;;  %v1535_v9 = vld [vmem:[%s2086_s17 + $0x170] sm:$0xff]  ;;  %v1536_v10 = vld [vmem:[%s2086_s17 + $0x178] sm:$0xff] }
  0x76   : > { %v441_v21 = vadd.f32 %v439_v13, %v411_v61  ;;  %v442_v22 = vadd.f32 %v440_v14, %v412_v62  ;;  %v454_v23 = vmul.f32 %v1515_v11, %v453_v16  ;;  %v455_v24 = vmul.f32 %v1516_v12, %v453_v16  ;;  %s2276_s5 = sld [smem:[#allocation2 + $0x64]] }
  0x77   : > { %v447_v27 = vadd.f32 %v445_v19, %v417_v3  ;;  %v448_v28 = vadd.f32 %v446_v20, %v418_v4  ;;  %v459_v29 = vstv %s2222_s19  ;;  %v468_v30 = vstv %s2226_s25  ;;  %s2280_s7 = sld [smem:[#allocation2 + $0x1a]]  ;;  %v1539_v19 = vld [vmem:[%s2086_s17 + $0x180] sm:$0xff]  ;;  %v1540_v20 = vld [vmem:[%s2086_s17 + $0x188] sm:$0xff] }
  0x78   : > { %v456_v31 = vadd.f32 %v454_v23, %v426_v7  ;;  %v457_v32 = vadd.f32 %v455_v24, %v427_v8  ;;  %v460_v33 = vmul.f32 %v1515_v11, %v459_v29  ;;  %v461_v34 = vmul.f32 %v1516_v12, %v459_v29  ;;  %s2286_s8 = sld [smem:[#allocation2 + $0x65]] }
  0x79   : > { %v469_v37 = vmul.f32 %v1519_v25, %v468_v30  ;;  %v470_v38 = vmul.f32 %v1520_v26, %v468_v30  ;;  %v474_v39 = vstv %s2228_s20  ;;  %v483_v40 = vstv %s2232_s28  ;;  %s2290_s19 = sld [smem:[#allocation2 + $0x1b]] }
  0x7a   : > { %v462_v41 = vadd.f32 %v460_v33, %v432_v17  ;;  %v463_v42 = vadd.f32 %v461_v34, %v433_v18  ;;  %v475_v43 = vmul.f32 %v1519_v25, %v474_v39  ;;  %v476_v44 = vmul.f32 %v1520_v26, %v474_v39  ;;  %s2292_s25 = sld [smem:[#allocation2 + $0x66]]  ;;  %v1543_v33 = vld [vmem:[%s2086_s17 + $0x190] sm:$0xff]  ;;  %v1544_v34 = vld [vmem:[%s2086_s17 + $0x198] sm:$0xff] }
  0x7b   : > { %v471_v45 = vadd.f32 %v469_v37, %v441_v21  ;;  %v472_v46 = vadd.f32 %v470_v38, %v442_v22  ;;  %v484_v47 = vmul.f32 %v1523_v35, %v483_v40  ;;  %v485_v48 = vmul.f32 %v1524_v36, %v483_v40  ;;  %s2296_s20 = sld [smem:[#allocation2 + $0x1c]] }
  0x7c   : > { %v477_v51 = vadd.f32 %v475_v43, %v447_v27  ;;  %v478_v52 = vadd.f32 %v476_v44, %v448_v28  ;;  %v489_v53 = vstv %s2238_s24  ;;  %v498_v54 = vstv %s2242_s27  ;;  %v1547_v43 = vld [vmem:[%s2086_s17 + $0x1a0] sm:$0xff]  ;;  %v1548_v44 = vld [vmem:[%s2086_s17 + $0x1a8] sm:$0xff]  ;;  %s2302_s28 = sld [smem:[#allocation2 + $0x67]] }
  0x7d   : > { %v486_v55 = vadd.f32 %v484_v47, %v456_v31  ;;  %v487_v56 = vadd.f32 %v485_v48, %v457_v32  ;;  %v490_v57 = vmul.f32 %v1523_v35, %v489_v53  ;;  %v491_v58 = vmul.f32 %v1524_v36, %v489_v53  ;;  %s2306_s24 = sld [smem:[#allocation2 + $0x1d]] }
  0x7e   : > { %v499_v61 = vmul.f32 %v1527_v49, %v498_v54  ;;  %v500_v62 = vmul.f32 %v1528_v50, %v498_v54  ;;  %v504_v63 = vstv %s2244_s29  ;;  %v513_v0 = vstv %s2248_s30  ;;  %s2308_s27 = sld [smem:[#allocation2 + $0x68]] }
  0x7f   : > { %v492_v1 = vadd.f32 %v490_v57, %v462_v41  ;;  %v493_v2 = vadd.f32 %v491_v58, %v463_v42  ;;  %v505_v3 = vmul.f32 %v1527_v49, %v504_v63  ;;  %v506_v4 = vmul.f32 %v1528_v50, %v504_v63  ;;  %v1551_v57 = vld [vmem:[%s2086_s17 + $0x1b0] sm:$0xff]  ;;  %v1552_v58 = vld [vmem:[%s2086_s17 + $0x1b8] sm:$0xff]  ;;  %s2312_s29 = sld [smem:[#allocation2 + $0x1e]] }
  0x80   : > { %v501_v5 = vadd.f32 %v499_v61, %v471_v45  ;;  %v502_v6 = vadd.f32 %v500_v62, %v472_v46  ;;  %v514_v7 = vmul.f32 %v1531_v59, %v513_v0  ;;  %v515_v8 = vmul.f32 %v1532_v60, %v513_v0  ;;  %s2318_s30 = sld [smem:[#allocation2 + $0x69]] }
  0x81   : > { %v507_v11 = vadd.f32 %v505_v3, %v477_v51  ;;  %v508_v12 = vadd.f32 %v506_v4, %v478_v52  ;;  %v519_v13 = vstv %s2254_s3  ;;  %v528_v14 = vstv %s2258_s4  ;;  %v1555_v3 = vld [vmem:[%s2086_s17 + $0x1c0] sm:$0xff]  ;;  %v1556_v4 = vld [vmem:[%s2086_s17 + $0x1c8] sm:$0xff]  ;;  %s2322_s3 = sld [smem:[#allocation2 + $0x1f]] }
  0x82   : > { %v516_v15 = vadd.f32 %v514_v7, %v486_v55  ;;  %v517_v16 = vadd.f32 %v515_v8, %v487_v56  ;;  %v520_v17 = vmul.f32 %v1531_v59, %v519_v13  ;;  %v521_v18 = vmul.f32 %v1532_v60, %v519_v13  ;;  %s2324_s4 = sld [smem:[#allocation2 + $0x6a]] }
  0x83   : > { %v529_v21 = vmul.f32 %v1535_v9, %v528_v14  ;;  %v530_v22 = vmul.f32 %v1536_v10, %v528_v14  ;;  %v534_v23 = vstv %s2260_s14  ;;  %v543_v24 = vstv %s2264_s16  ;;  %s2328_s14 = sld [smem:[#allocation2 + $0x20]] }
  0x84   : > { %v522_v25 = vadd.f32 %v520_v17, %v492_v1  ;;  %v523_v26 = vadd.f32 %v521_v18, %v493_v2  ;;  %v535_v27 = vmul.f32 %v1535_v9, %v534_v23  ;;  %v536_v28 = vmul.f32 %v1536_v10, %v534_v23  ;;  %v1559_v17 = vld [vmem:[%s2086_s17 + $0x1d0] sm:$0xff]  ;;  %v1560_v18 = vld [vmem:[%s2086_s17 + $0x1d8] sm:$0xff]  ;;  %s2334_s16 = sld [smem:[#allocation2 + $0x6b]] }
  0x85   : > { %v531_v29 = vadd.f32 %v529_v21, %v501_v5  ;;  %v532_v30 = vadd.f32 %v530_v22, %v502_v6  ;;  %v544_v31 = vmul.f32 %v1539_v19, %v543_v24  ;;  %v545_v32 = vmul.f32 %v1540_v20, %v543_v24 }
  0x86   : > { %v537_v35 = vadd.f32 %v535_v27, %v507_v11  ;;  %v538_v36 = vadd.f32 %v536_v28, %v508_v12  ;;  %v549_v37 = vstv %s2270_s23  ;;  %v558_v38 = vstv %s2274_s26  ;;  %v1563_v27 = vld [vmem:[%s2086_s17 + $0x1e0] sm:$0xff]  ;;  %v1564_v28 = vld [vmem:[%s2086_s17 + $0x1e8] sm:$0xff]  ;;  %s2338_s23 = sld [smem:[#allocation2 + $0x21]] }
  0x87   : > { %v546_v39 = vadd.f32 %v544_v31, %v516_v15  ;;  %v547_v40 = vadd.f32 %v545_v32, %v517_v16  ;;  %v550_v41 = vmul.f32 %v1539_v19, %v549_v37  ;;  %v551_v42 = vmul.f32 %v1540_v20, %v549_v37  ;;  %s2340_s26 = sld [smem:[#allocation2 + $0x6c]] }
  0x88   : > { %v559_v45 = vmul.f32 %v1543_v33, %v558_v38  ;;  %v560_v46 = vmul.f32 %v1544_v34, %v558_v38  ;;  %v564_v47 = vstv %s2276_s5  ;;  %v573_v48 = vstv %s2280_s7  ;;  %s2344_s5 = sld [smem:[#allocation2 + $0x22]] }
  0x89   : > { %v552_v49 = vadd.f32 %v550_v41, %v522_v25  ;;  %v553_v50 = vadd.f32 %v551_v42, %v523_v26  ;;  %v565_v51 = vmul.f32 %v1543_v33, %v564_v47  ;;  %v566_v52 = vmul.f32 %v1544_v34, %v564_v47  ;;  %v1567_v41 = vld [vmem:[%s2086_s17 + $0x1f0] sm:$0xff]  ;;  %v1568_v42 = vld [vmem:[%s2086_s17 + $0x1f8] sm:$0xff]  ;;  %s2350_s7 = sld [smem:[#allocation2 + $0x6d]] }
  0x8a   : > { %v561_v53 = vadd.f32 %v559_v45, %v531_v29  ;;  %v562_v54 = vadd.f32 %v560_v46, %v532_v30  ;;  %v574_v55 = vmul.f32 %v1547_v43, %v573_v48  ;;  %v575_v56 = vmul.f32 %v1548_v44, %v573_v48 }
  0x8b   : > { %v567_v59 = vadd.f32 %v565_v51, %v537_v35  ;;  %v568_v60 = vadd.f32 %v566_v52, %v538_v36  ;;  %v579_v61 = vstv %s2286_s8  ;;  %v588_v62 = vstv %s2290_s19  ;;  %v1571_v51 = vld [vmem:[%s2086_s17 + $0x200] sm:$0xff]  ;;  %v1572_v52 = vld [vmem:[%s2086_s17 + $0x208] sm:$0xff]  ;;  %s2354_s8 = sld [smem:[#allocation2 + $0x23]] }
  0x8c   : > { %v576_v63 = vadd.f32 %v574_v55, %v546_v39  ;;  %v577_v0 = vadd.f32 %v575_v56, %v547_v40  ;;  %v580_v1 = vmul.f32 %v1547_v43, %v579_v61  ;;  %v581_v2 = vmul.f32 %v1548_v44, %v579_v61  ;;  %s2356_s19 = sld [smem:[#allocation2 + $0x6e]] }
  0x8d   : > { %v589_v5 = vmul.f32 %v1551_v57, %v588_v62  ;;  %v590_v6 = vmul.f32 %v1552_v58, %v588_v62  ;;  %v594_v7 = vstv %s2292_s25  ;;  %v603_v8 = vstv %s2296_s20  ;;  %s2360_s25 = sld [smem:[#allocation2 + $0x24]] }
  0x8e   : > { %v582_v9 = vadd.f32 %v580_v1, %v552_v49  ;;  %v583_v10 = vadd.f32 %v581_v2, %v553_v50  ;;  %v595_v11 = vmul.f32 %v1551_v57, %v594_v7  ;;  %v596_v12 = vmul.f32 %v1552_v58, %v594_v7  ;;  %v1575_v1 = vld [vmem:[%s2086_s17 + $0x210] sm:$0xff]  ;;  %v1576_v2 = vld [vmem:[%s2086_s17 + $0x218] sm:$0xff]  ;;  %s2366_s20 = sld [smem:[#allocation2 + $0x6f]] }
  0x8f   : > { %v591_v13 = vadd.f32 %v589_v5, %v561_v53  ;;  %v592_v14 = vadd.f32 %v590_v6, %v562_v54  ;;  %v604_v15 = vmul.f32 %v1555_v3, %v603_v8  ;;  %v605_v16 = vmul.f32 %v1556_v4, %v603_v8 }
  0x90   : > { %v597_v19 = vadd.f32 %v595_v11, %v567_v59  ;;  %v598_v20 = vadd.f32 %v596_v12, %v568_v60  ;;  %v609_v21 = vstv %s2302_s28  ;;  %v618_v22 = vstv %s2306_s24  ;;  %v1579_v11 = vld [vmem:[%s2086_s17 + $0x220] sm:$0xff]  ;;  %v1580_v12 = vld [vmem:[%s2086_s17 + $0x228] sm:$0xff]  ;;  %s2370_s28 = sld [smem:[#allocation2 + $0x25]] }
  0x91   : > { %v606_v23 = vadd.f32 %v604_v15, %v576_v63  ;;  %v607_v24 = vadd.f32 %v605_v16, %v577_v0  ;;  %v610_v25 = vmul.f32 %v1555_v3, %v609_v21  ;;  %v611_v26 = vmul.f32 %v1556_v4, %v609_v21  ;;  %s2372_s24 = sld [smem:[#allocation2 + $0x70]] }
  0x92   : > { %v619_v29 = vmul.f32 %v1559_v17, %v618_v22  ;;  %v620_v30 = vmul.f32 %v1560_v18, %v618_v22  ;;  %v624_v31 = vstv %s2308_s27  ;;  %v633_v32 = vstv %s2312_s29  ;;  %s2376_s27 = sld [smem:[#allocation2 + $0x26]] }
  0x93   : > { %v612_v33 = vadd.f32 %v610_v25, %v582_v9  ;;  %v613_v34 = vadd.f32 %v611_v26, %v583_v10  ;;  %v625_v35 = vmul.f32 %v1559_v17, %v624_v31  ;;  %v626_v36 = vmul.f32 %v1560_v18, %v624_v31  ;;  %v1583_v25 = vld [vmem:[%s2086_s17 + $0x230] sm:$0xff]  ;;  %v1584_v26 = vld [vmem:[%s2086_s17 + $0x238] sm:$0xff]  ;;  %s2382_s29 = sld [smem:[#allocation2 + $0x71]] }
  0x94   : > { %v621_v37 = vadd.f32 %v619_v29, %v591_v13  ;;  %v622_v38 = vadd.f32 %v620_v30, %v592_v14  ;;  %v634_v39 = vmul.f32 %v1563_v27, %v633_v32  ;;  %v635_v40 = vmul.f32 %v1564_v28, %v633_v32 }
  0x95   : > { %v627_v43 = vadd.f32 %v625_v35, %v597_v19  ;;  %v628_v44 = vadd.f32 %v626_v36, %v598_v20  ;;  %v639_v45 = vstv %s2318_s30  ;;  %v648_v46 = vstv %s2322_s3  ;;  %v1587_v35 = vld [vmem:[%s2086_s17 + $0x240] sm:$0xff]  ;;  %v1588_v36 = vld [vmem:[%s2086_s17 + $0x248] sm:$0xff]  ;;  %s2386_s30 = sld [smem:[#allocation2 + $0x27]] }
  0x96   : > { %v636_v47 = vadd.f32 %v634_v39, %v606_v23  ;;  %v637_v48 = vadd.f32 %v635_v40, %v607_v24  ;;  %v640_v49 = vmul.f32 %v1563_v27, %v639_v45  ;;  %v641_v50 = vmul.f32 %v1564_v28, %v639_v45  ;;  %s2388_s3 = sld [smem:[#allocation2 + $0x72]] }
  0x97   : > { %v649_v53 = vmul.f32 %v1567_v41, %v648_v46  ;;  %v650_v54 = vmul.f32 %v1568_v42, %v648_v46  ;;  %v654_v55 = vstv %s2324_s4  ;;  %v663_v56 = vstv %s2328_s14  ;;  %s2392_s4 = sld [smem:[#allocation2 + $0x28]] }
  0x98   : > { %v642_v57 = vadd.f32 %v640_v49, %v612_v33  ;;  %v643_v58 = vadd.f32 %v641_v50, %v613_v34  ;;  %v655_v59 = vmul.f32 %v1567_v41, %v654_v55  ;;  %v656_v60 = vmul.f32 %v1568_v42, %v654_v55  ;;  %v1591_v49 = vld [vmem:[%s2086_s17 + $0x250] sm:$0xff]  ;;  %v1592_v50 = vld [vmem:[%s2086_s17 + $0x258] sm:$0xff]  ;;  %s2398_s14 = sld [smem:[#allocation2 + $0x73]] }
  0x99   : > { %v651_v61 = vadd.f32 %v649_v53, %v621_v37  ;;  %v652_v62 = vadd.f32 %v650_v54, %v622_v38  ;;  %v664_v63 = vmul.f32 %v1571_v51, %v663_v56  ;;  %v665_v0 = vmul.f32 %v1572_v52, %v663_v56 }
  0x9a   : > { %v657_v3 = vadd.f32 %v655_v59, %v627_v43  ;;  %v658_v4 = vadd.f32 %v656_v60, %v628_v44  ;;  %v669_v5 = vstv %s2334_s16  ;;  %v678_v6 = vstv %s2338_s23  ;;  %v1595_v59 = vld [vmem:[%s2086_s17 + $0x260] sm:$0xff]  ;;  %v1596_v60 = vld [vmem:[%s2086_s17 + $0x268] sm:$0xff]  ;;  %s2402_s16 = sld [smem:[#allocation2 + $0x29]] }
  0x9b   : > { %v666_v7 = vadd.f32 %v664_v63, %v636_v47  ;;  %v667_v8 = vadd.f32 %v665_v0, %v637_v48  ;;  %v670_v9 = vmul.f32 %v1571_v51, %v669_v5  ;;  %v671_v10 = vmul.f32 %v1572_v52, %v669_v5  ;;  %s2404_s23 = sld [smem:[#allocation2 + $0x74]] }
  0x9c   : > { %v679_v13 = vmul.f32 %v1575_v1, %v678_v6  ;;  %v680_v14 = vmul.f32 %v1576_v2, %v678_v6  ;;  %v684_v15 = vstv %s2340_s26  ;;  %v693_v16 = vstv %s2344_s5  ;;  %s2408_s26 = sld [smem:[#allocation2 + $0x2a]] }
  0x9d   : > { %v672_v17 = vadd.f32 %v670_v9, %v642_v57  ;;  %v673_v18 = vadd.f32 %v671_v10, %v643_v58  ;;  %v685_v19 = vmul.f32 %v1575_v1, %v684_v15  ;;  %v686_v20 = vmul.f32 %v1576_v2, %v684_v15  ;;  %v1599_v9 = vld [vmem:[%s2086_s17 + $0x270] sm:$0xff]  ;;  %v1600_v10 = vld [vmem:[%s2086_s17 + $0x278] sm:$0xff]  ;;  %s2414_s5 = sld [smem:[#allocation2 + $0x75]] }
  0x9e   : > { %v681_v21 = vadd.f32 %v679_v13, %v651_v61  ;;  %v682_v22 = vadd.f32 %v680_v14, %v652_v62  ;;  %v694_v23 = vmul.f32 %v1579_v11, %v693_v16  ;;  %v695_v24 = vmul.f32 %v1580_v12, %v693_v16 }
  0x9f   : > { %v687_v27 = vadd.f32 %v685_v19, %v657_v3  ;;  %v688_v28 = vadd.f32 %v686_v20, %v658_v4  ;;  %v699_v29 = vstv %s2350_s7  ;;  %v708_v30 = vstv %s2354_s8  ;;  %v1603_v19 = vld [vmem:[%s2086_s17 + $0x280] sm:$0xff]  ;;  %v1604_v20 = vld [vmem:[%s2086_s17 + $0x288] sm:$0xff]  ;;  %s2418_s7 = sld [smem:[#allocation2 + $0x2b]] }
  0xa0   : > { %v696_v31 = vadd.f32 %v694_v23, %v666_v7  ;;  %v697_v32 = vadd.f32 %v695_v24, %v667_v8  ;;  %v700_v33 = vmul.f32 %v1579_v11, %v699_v29  ;;  %v701_v34 = vmul.f32 %v1580_v12, %v699_v29  ;;  %s2420_s8 = sld [smem:[#allocation2 + $0x76]] }
  0xa1   : > { %v709_v37 = vmul.f32 %v1583_v25, %v708_v30  ;;  %v710_v38 = vmul.f32 %v1584_v26, %v708_v30  ;;  %v714_v39 = vstv %s2356_s19  ;;  %v723_v40 = vstv %s2360_s25  ;;  %s2424_s19 = sld [smem:[#allocation2 + $0x2c]] }
  0xa2   : > { %v702_v41 = vadd.f32 %v700_v33, %v672_v17  ;;  %v703_v42 = vadd.f32 %v701_v34, %v673_v18  ;;  %v715_v43 = vmul.f32 %v1583_v25, %v714_v39  ;;  %v716_v44 = vmul.f32 %v1584_v26, %v714_v39  ;;  %v1607_v33 = vld [vmem:[%s2086_s17 + $0x290] sm:$0xff]  ;;  %v1608_v34 = vld [vmem:[%s2086_s17 + $0x298] sm:$0xff]  ;;  %s2430_s25 = sld [smem:[#allocation2 + $0x77]] }
  0xa3   : > { %v711_v45 = vadd.f32 %v709_v37, %v681_v21  ;;  %v712_v46 = vadd.f32 %v710_v38, %v682_v22  ;;  %v724_v47 = vmul.f32 %v1587_v35, %v723_v40  ;;  %v725_v48 = vmul.f32 %v1588_v36, %v723_v40 }
  0xa4   : > { %v717_v51 = vadd.f32 %v715_v43, %v687_v27  ;;  %v718_v52 = vadd.f32 %v716_v44, %v688_v28  ;;  %v729_v53 = vstv %s2366_s20  ;;  %v738_v54 = vstv %s2370_s28  ;;  %v1611_v43 = vld [vmem:[%s2086_s17 + $0x2a0] sm:$0xff]  ;;  %v1612_v44 = vld [vmem:[%s2086_s17 + $0x2a8] sm:$0xff]  ;;  %s2434_s20 = sld [smem:[#allocation2 + $0x2d]] }
  0xa5   : > { %v726_v55 = vadd.f32 %v724_v47, %v696_v31  ;;  %v727_v56 = vadd.f32 %v725_v48, %v697_v32  ;;  %v730_v57 = vmul.f32 %v1587_v35, %v729_v53  ;;  %v731_v58 = vmul.f32 %v1588_v36, %v729_v53  ;;  %s2436_s28 = sld [smem:[#allocation2 + $0x78]] }
  0xa6   : > { %v739_v61 = vmul.f32 %v1591_v49, %v738_v54  ;;  %v740_v62 = vmul.f32 %v1592_v50, %v738_v54  ;;  %v744_v63 = vstv %s2372_s24  ;;  %v753_v0 = vstv %s2376_s27  ;;  %s2440_s24 = sld [smem:[#allocation2 + $0x2e]] }
  0xa7   : > { %v732_v1 = vadd.f32 %v730_v57, %v702_v41  ;;  %v733_v2 = vadd.f32 %v731_v58, %v703_v42  ;;  %v745_v3 = vmul.f32 %v1591_v49, %v744_v63  ;;  %v746_v4 = vmul.f32 %v1592_v50, %v744_v63  ;;  %v1615_v57 = vld [vmem:[%s2086_s17 + $0x2b0] sm:$0xff]  ;;  %v1616_v58 = vld [vmem:[%s2086_s17 + $0x2b8] sm:$0xff]  ;;  %s2446_s27 = sld [smem:[#allocation2 + $0x79]] }
  0xa8   : > { %v741_v5 = vadd.f32 %v739_v61, %v711_v45  ;;  %v742_v6 = vadd.f32 %v740_v62, %v712_v46  ;;  %v754_v7 = vmul.f32 %v1595_v59, %v753_v0  ;;  %v755_v8 = vmul.f32 %v1596_v60, %v753_v0 }
  0xa9   : > { %v747_v11 = vadd.f32 %v745_v3, %v717_v51  ;;  %v748_v12 = vadd.f32 %v746_v4, %v718_v52  ;;  %v759_v13 = vstv %s2382_s29  ;;  %v768_v14 = vstv %s2386_s30  ;;  %v1619_v3 = vld [vmem:[%s2086_s17 + $0x2c0] sm:$0xff]  ;;  %v1620_v4 = vld [vmem:[%s2086_s17 + $0x2c8] sm:$0xff]  ;;  %s2450_s29 = sld [smem:[#allocation2 + $0x2f]] }
  0xaa   : > { %v756_v15 = vadd.f32 %v754_v7, %v726_v55  ;;  %v757_v16 = vadd.f32 %v755_v8, %v727_v56  ;;  %v760_v17 = vmul.f32 %v1595_v59, %v759_v13  ;;  %v761_v18 = vmul.f32 %v1596_v60, %v759_v13  ;;  %s2452_s30 = sld [smem:[#allocation2 + $0x7a]] }
  0xab   : > { %v769_v21 = vmul.f32 %v1599_v9, %v768_v14  ;;  %v770_v22 = vmul.f32 %v1600_v10, %v768_v14  ;;  %v774_v23 = vstv %s2388_s3  ;;  %v783_v24 = vstv %s2392_s4  ;;  %s2456_s3 = sld [smem:[#allocation2 + $0x30]] }
  0xac   : > { %v762_v25 = vadd.f32 %v760_v17, %v732_v1  ;;  %v763_v26 = vadd.f32 %v761_v18, %v733_v2  ;;  %v775_v27 = vmul.f32 %v1599_v9, %v774_v23  ;;  %v776_v28 = vmul.f32 %v1600_v10, %v774_v23  ;;  %v1623_v17 = vld [vmem:[%s2086_s17 + $0x2d0] sm:$0xff]  ;;  %v1624_v18 = vld [vmem:[%s2086_s17 + $0x2d8] sm:$0xff]  ;;  %s2462_s4 = sld [smem:[#allocation2 + $0x7b]] }
  0xad   : > { %v771_v29 = vadd.f32 %v769_v21, %v741_v5  ;;  %v772_v30 = vadd.f32 %v770_v22, %v742_v6  ;;  %v784_v31 = vmul.f32 %v1603_v19, %v783_v24  ;;  %v785_v32 = vmul.f32 %v1604_v20, %v783_v24 }
  0xae   : > { %v777_v35 = vadd.f32 %v775_v27, %v747_v11  ;;  %v778_v36 = vadd.f32 %v776_v28, %v748_v12  ;;  %v789_v37 = vstv %s2398_s14  ;;  %v798_v38 = vstv %s2402_s16  ;;  %v1627_v27 = vld [vmem:[%s2086_s17 + $0x2e0] sm:$0xff]  ;;  %v1628_v28 = vld [vmem:[%s2086_s17 + $0x2e8] sm:$0xff]  ;;  %s2466_s14 = sld [smem:[#allocation2 + $0x31]] }
  0xaf   : > { %v786_v39 = vadd.f32 %v784_v31, %v756_v15  ;;  %v787_v40 = vadd.f32 %v785_v32, %v757_v16  ;;  %v790_v41 = vmul.f32 %v1603_v19, %v789_v37  ;;  %v791_v42 = vmul.f32 %v1604_v20, %v789_v37  ;;  %s2468_s16 = sld [smem:[#allocation2 + $0x7c]] }
  0xb0   : > { %v799_v45 = vmul.f32 %v1607_v33, %v798_v38  ;;  %v800_v46 = vmul.f32 %v1608_v34, %v798_v38  ;;  %v804_v47 = vstv %s2404_s23  ;;  %v813_v48 = vstv %s2408_s26  ;;  %s2472_s23 = sld [smem:[#allocation2 + $0x32]] }
  0xb1   : > { %v792_v49 = vadd.f32 %v790_v41, %v762_v25  ;;  %v793_v50 = vadd.f32 %v791_v42, %v763_v26  ;;  %v805_v51 = vmul.f32 %v1607_v33, %v804_v47  ;;  %v806_v52 = vmul.f32 %v1608_v34, %v804_v47  ;;  %v1631_v41 = vld [vmem:[%s2086_s17 + $0x2f0] sm:$0xff]  ;;  %v1632_v42 = vld [vmem:[%s2086_s17 + $0x2f8] sm:$0xff]  ;;  %s2478_s26 = sld [smem:[#allocation2 + $0x7d]] }
  0xb2   : > { %v801_v53 = vadd.f32 %v799_v45, %v771_v29  ;;  %v802_v54 = vadd.f32 %v800_v46, %v772_v30  ;;  %v814_v55 = vmul.f32 %v1611_v43, %v813_v48  ;;  %v815_v56 = vmul.f32 %v1612_v44, %v813_v48 }
  0xb3   : > { %v807_v59 = vadd.f32 %v805_v51, %v777_v35  ;;  %v808_v60 = vadd.f32 %v806_v52, %v778_v36  ;;  %v819_v61 = vstv %s2414_s5  ;;  %v828_v62 = vstv %s2418_s7  ;;  %v1635_v51 = vld [vmem:[%s2086_s17 + $0x300] sm:$0xff]  ;;  %v1636_v52 = vld [vmem:[%s2086_s17 + $0x308] sm:$0xff]  ;;  %s2482_s5 = sld [smem:[#allocation2 + $0x33]] }
  0xb4   : > { %v816_v63 = vadd.f32 %v814_v55, %v786_v39  ;;  %v817_v0 = vadd.f32 %v815_v56, %v787_v40  ;;  %v820_v1 = vmul.f32 %v1611_v43, %v819_v61  ;;  %v821_v2 = vmul.f32 %v1612_v44, %v819_v61  ;;  %s2484_s7 = sld [smem:[#allocation2 + $0x7e]] }
  0xb5   : > { %v829_v5 = vmul.f32 %v1615_v57, %v828_v62  ;;  %v830_v6 = vmul.f32 %v1616_v58, %v828_v62  ;;  %v834_v7 = vstv %s2420_s8  ;;  %v843_v8 = vstv %s2424_s19  ;;  %s2488_s8 = sld [smem:[#allocation2 + $0x34]] }
  0xb6   : > { %v822_v9 = vadd.f32 %v820_v1, %v792_v49  ;;  %v823_v10 = vadd.f32 %v821_v2, %v793_v50  ;;  %v835_v11 = vmul.f32 %v1615_v57, %v834_v7  ;;  %v836_v12 = vmul.f32 %v1616_v58, %v834_v7  ;;  %v1639_v1 = vld [vmem:[%s2086_s17 + $0x310] sm:$0xff]  ;;  %v1640_v2 = vld [vmem:[%s2086_s17 + $0x318] sm:$0xff]  ;;  %s2494_s19 = sld [smem:[#allocation2 + $0x7f]] }
  0xb7   : > { %v831_v13 = vadd.f32 %v829_v5, %v801_v53  ;;  %v832_v14 = vadd.f32 %v830_v6, %v802_v54  ;;  %v844_v15 = vmul.f32 %v1619_v3, %v843_v8  ;;  %v845_v16 = vmul.f32 %v1620_v4, %v843_v8 }
  0xb8   : > { %v837_v19 = vadd.f32 %v835_v11, %v807_v59  ;;  %v838_v20 = vadd.f32 %v836_v12, %v808_v60  ;;  %v849_v21 = vstv %s2430_s25  ;;  %v858_v22 = vstv %s2434_s20  ;;  %v1643_v11 = vld [vmem:[%s2086_s17 + $0x320] sm:$0xff]  ;;  %v1644_v12 = vld [vmem:[%s2086_s17 + $0x328] sm:$0xff]  ;;  %s2498_s25 = sld [smem:[#allocation2 + $0x35]] }
  0xb9   : > { %v846_v23 = vadd.f32 %v844_v15, %v816_v63  ;;  %v847_v24 = vadd.f32 %v845_v16, %v817_v0  ;;  %v850_v25 = vmul.f32 %v1619_v3, %v849_v21  ;;  %v851_v26 = vmul.f32 %v1620_v4, %v849_v21  ;;  %s2500_s20 = sld [smem:[#allocation2 + $0x80]] }
  0xba   : > { %v859_v29 = vmul.f32 %v1623_v17, %v858_v22  ;;  %v860_v30 = vmul.f32 %v1624_v18, %v858_v22  ;;  %v864_v31 = vstv %s2436_s28  ;;  %v873_v32 = vstv %s2440_s24  ;;  %s2504_s28 = sld [smem:[#allocation2 + $0x36]] }
  0xbb   : > { %v852_v33 = vadd.f32 %v850_v25, %v822_v9  ;;  %v853_v34 = vadd.f32 %v851_v26, %v823_v10  ;;  %v865_v35 = vmul.f32 %v1623_v17, %v864_v31  ;;  %v866_v36 = vmul.f32 %v1624_v18, %v864_v31  ;;  %v1647_v25 = vld [vmem:[%s2086_s17 + $0x330] sm:$0xff]  ;;  %v1648_v26 = vld [vmem:[%s2086_s17 + $0x338] sm:$0xff]  ;;  %s2510_s24 = sld [smem:[#allocation2 + $0x81]] }
  0xbc   : > { %v861_v37 = vadd.f32 %v859_v29, %v831_v13  ;;  %v862_v38 = vadd.f32 %v860_v30, %v832_v14  ;;  %v874_v39 = vmul.f32 %v1627_v27, %v873_v32  ;;  %v875_v40 = vmul.f32 %v1628_v28, %v873_v32 }
  0xbd   : > { %v867_v43 = vadd.f32 %v865_v35, %v837_v19  ;;  %v868_v44 = vadd.f32 %v866_v36, %v838_v20  ;;  %v879_v45 = vstv %s2446_s27  ;;  %v888_v46 = vstv %s2450_s29  ;;  %v1651_v35 = vld [vmem:[%s2086_s17 + $0x340] sm:$0xff]  ;;  %v1652_v36 = vld [vmem:[%s2086_s17 + $0x348] sm:$0xff]  ;;  %s2514_s27 = sld [smem:[#allocation2 + $0x37]] }
  0xbe   : > { %v876_v47 = vadd.f32 %v874_v39, %v846_v23  ;;  %v877_v48 = vadd.f32 %v875_v40, %v847_v24  ;;  %v880_v49 = vmul.f32 %v1627_v27, %v879_v45  ;;  %v881_v50 = vmul.f32 %v1628_v28, %v879_v45  ;;  %s2516_s29 = sld [smem:[#allocation2 + $0x82]] }
  0xbf   : > { %v889_v53 = vmul.f32 %v1631_v41, %v888_v46  ;;  %v890_v54 = vmul.f32 %v1632_v42, %v888_v46  ;;  %v894_v55 = vstv %s2452_s30  ;;  %v903_v56 = vstv %s2456_s3  ;;  %s2520_s30 = sld [smem:[#allocation2 + $0x38]] }
  0xc0   : > { %v882_v57 = vadd.f32 %v880_v49, %v852_v33  ;;  %v883_v58 = vadd.f32 %v881_v50, %v853_v34  ;;  %v895_v59 = vmul.f32 %v1631_v41, %v894_v55  ;;  %v896_v60 = vmul.f32 %v1632_v42, %v894_v55  ;;  %v1655_v49 = vld [vmem:[%s2086_s17 + $0x350] sm:$0xff]  ;;  %v1656_v50 = vld [vmem:[%s2086_s17 + $0x358] sm:$0xff]  ;;  %s2526_s3 = sld [smem:[#allocation2 + $0x83]] }
  0xc1   : > { %v891_v61 = vadd.f32 %v889_v53, %v861_v37  ;;  %v892_v62 = vadd.f32 %v890_v54, %v862_v38  ;;  %v904_v63 = vmul.f32 %v1635_v51, %v903_v56  ;;  %v905_v0 = vmul.f32 %v1636_v52, %v903_v56 }
  0xc2   : > { %v897_v3 = vadd.f32 %v895_v59, %v867_v43  ;;  %v898_v4 = vadd.f32 %v896_v60, %v868_v44  ;;  %v909_v5 = vstv %s2462_s4  ;;  %v918_v6 = vstv %s2466_s14  ;;  %v1659_v59 = vld [vmem:[%s2086_s17 + $0x360] sm:$0xff]  ;;  %v1660_v60 = vld [vmem:[%s2086_s17 + $0x368] sm:$0xff]  ;;  %s2530_s4 = sld [smem:[#allocation2 + $0x39]] }
  0xc3   : > { %v906_v7 = vadd.f32 %v904_v63, %v876_v47  ;;  %v907_v8 = vadd.f32 %v905_v0, %v877_v48  ;;  %v910_v9 = vmul.f32 %v1635_v51, %v909_v5  ;;  %v911_v10 = vmul.f32 %v1636_v52, %v909_v5  ;;  %s2532_s14 = sld [smem:[#allocation2 + $0x84]] }
  0xc4   : > { %v919_v13 = vmul.f32 %v1639_v1, %v918_v6  ;;  %v920_v14 = vmul.f32 %v1640_v2, %v918_v6  ;;  %v924_v15 = vstv %s2468_s16  ;;  %v933_v16 = vstv %s2472_s23  ;;  %s2536_s16 = sld [smem:[#allocation2 + $0x3a]] }
  0xc5   : > { %v912_v17 = vadd.f32 %v910_v9, %v882_v57  ;;  %v913_v18 = vadd.f32 %v911_v10, %v883_v58  ;;  %v925_v19 = vmul.f32 %v1639_v1, %v924_v15  ;;  %v926_v20 = vmul.f32 %v1640_v2, %v924_v15  ;;  %v1663_v9 = vld [vmem:[%s2086_s17 + $0x370] sm:$0xff]  ;;  %v1664_v10 = vld [vmem:[%s2086_s17 + $0x378] sm:$0xff]  ;;  %s2542_s23 = sld [smem:[#allocation2 + $0x85]] }
  0xc6   : > { %v921_v21 = vadd.f32 %v919_v13, %v891_v61  ;;  %v922_v22 = vadd.f32 %v920_v14, %v892_v62  ;;  %v934_v23 = vmul.f32 %v1643_v11, %v933_v16  ;;  %v935_v24 = vmul.f32 %v1644_v12, %v933_v16 }
  0xc7   : > { %v927_v27 = vadd.f32 %v925_v19, %v897_v3  ;;  %v928_v28 = vadd.f32 %v926_v20, %v898_v4  ;;  %v939_v29 = vstv %s2478_s26  ;;  %v948_v30 = vstv %s2482_s5  ;;  %v1667_v19 = vld [vmem:[%s2086_s17 + $0x380] sm:$0xff]  ;;  %v1668_v20 = vld [vmem:[%s2086_s17 + $0x388] sm:$0xff]  ;;  %s2546_s26 = sld [smem:[#allocation2 + $0x3b]] }
  0xc8   : > { %v936_v31 = vadd.f32 %v934_v23, %v906_v7  ;;  %v937_v32 = vadd.f32 %v935_v24, %v907_v8  ;;  %v940_v33 = vmul.f32 %v1643_v11, %v939_v29  ;;  %v941_v34 = vmul.f32 %v1644_v12, %v939_v29  ;;  %s2548_s5 = sld [smem:[#allocation2 + $0x86]] }
  0xc9   : > { %v949_v37 = vmul.f32 %v1647_v25, %v948_v30  ;;  %v950_v38 = vmul.f32 %v1648_v26, %v948_v30  ;;  %v954_v39 = vstv %s2484_s7  ;;  %v963_v40 = vstv %s2488_s8  ;;  %s2552_s7 = sld [smem:[#allocation2 + $0x3c]] }
  0xca   : > { %v942_v41 = vadd.f32 %v940_v33, %v912_v17  ;;  %v943_v42 = vadd.f32 %v941_v34, %v913_v18  ;;  %v955_v43 = vmul.f32 %v1647_v25, %v954_v39  ;;  %v956_v44 = vmul.f32 %v1648_v26, %v954_v39  ;;  %v1671_v33 = vld [vmem:[%s2086_s17 + $0x390] sm:$0xff]  ;;  %v1672_v34 = vld [vmem:[%s2086_s17 + $0x398] sm:$0xff]  ;;  %s2558_s8 = sld [smem:[#allocation2 + $0x87]] }
  0xcb   : > { %v951_v45 = vadd.f32 %v949_v37, %v921_v21  ;;  %v952_v46 = vadd.f32 %v950_v38, %v922_v22  ;;  %v964_v47 = vmul.f32 %v1651_v35, %v963_v40  ;;  %v965_v48 = vmul.f32 %v1652_v36, %v963_v40 }
  0xcc   : > { %v957_v51 = vadd.f32 %v955_v43, %v927_v27  ;;  %v958_v52 = vadd.f32 %v956_v44, %v928_v28  ;;  %v969_v53 = vstv %s2494_s19  ;;  %v978_v54 = vstv %s2498_s25  ;;  %v1675_v43 = vld [vmem:[%s2086_s17 + $0x3a0] sm:$0xff]  ;;  %v1676_v44 = vld [vmem:[%s2086_s17 + $0x3a8] sm:$0xff]  ;;  %s2562_s19 = sld [smem:[#allocation2 + $0x3d]] }
  0xcd   : > { %v966_v55 = vadd.f32 %v964_v47, %v936_v31  ;;  %v967_v56 = vadd.f32 %v965_v48, %v937_v32  ;;  %v970_v57 = vmul.f32 %v1651_v35, %v969_v53  ;;  %v971_v58 = vmul.f32 %v1652_v36, %v969_v53  ;;  %s2564_s25 = sld [smem:[#allocation2 + $0x88]] }
  0xce   : > { %v979_v61 = vmul.f32 %v1655_v49, %v978_v54  ;;  %v980_v62 = vmul.f32 %v1656_v50, %v978_v54  ;;  %v984_v63 = vstv %s2500_s20  ;;  %v993_v0 = vstv %s2504_s28  ;;  %s2568_s20 = sld [smem:[#allocation2 + $0x3e]] }
  0xcf   : > { %v972_v1 = vadd.f32 %v970_v57, %v942_v41  ;;  %v973_v2 = vadd.f32 %v971_v58, %v943_v42  ;;  %v985_v3 = vmul.f32 %v1655_v49, %v984_v63  ;;  %v986_v4 = vmul.f32 %v1656_v50, %v984_v63  ;;  %v1679_v57 = vld [vmem:[%s2086_s17 + $0x3b0] sm:$0xff]  ;;  %v1680_v58 = vld [vmem:[%s2086_s17 + $0x3b8] sm:$0xff]  ;;  %s2574_s28 = sld [smem:[#allocation2 + $0x89]] }
  0xd0   : > { %v981_v5 = vadd.f32 %v979_v61, %v951_v45  ;;  %v982_v6 = vadd.f32 %v980_v62, %v952_v46  ;;  %v994_v7 = vmul.f32 %v1659_v59, %v993_v0  ;;  %v995_v8 = vmul.f32 %v1660_v60, %v993_v0 }
  0xd1   : > { %v987_v11 = vadd.f32 %v985_v3, %v957_v51  ;;  %v988_v12 = vadd.f32 %v986_v4, %v958_v52  ;;  %v999_v13 = vstv %s2510_s24  ;;  %v1008_v14 = vstv %s2514_s27  ;;  %v1683_v3 = vld [vmem:[%s2086_s17 + $0x3c0] sm:$0xff]  ;;  %v1684_v4 = vld [vmem:[%s2086_s17 + $0x3c8] sm:$0xff]  ;;  %s2578_s24 = sld [smem:[#allocation2 + $0x3f]] }
  0xd2   : > { %v996_v15 = vadd.f32 %v994_v7, %v966_v55  ;;  %v997_v16 = vadd.f32 %v995_v8, %v967_v56  ;;  %v1000_v17 = vmul.f32 %v1659_v59, %v999_v13  ;;  %v1001_v18 = vmul.f32 %v1660_v60, %v999_v13  ;;  %s2580_s27 = sld [smem:[#allocation2 + $0x8a]] }
  0xd3   : > { %v1009_v21 = vmul.f32 %v1663_v9, %v1008_v14  ;;  %v1010_v22 = vmul.f32 %v1664_v10, %v1008_v14  ;;  %v1014_v23 = vstv %s2516_s29  ;;  %v1023_v24 = vstv %s2520_s30  ;;  %s2584_s29 = sld [smem:[#allocation2 + $0x40]] }
  0xd4   : > { %v1002_v25 = vadd.f32 %v1000_v17, %v972_v1  ;;  %v1003_v26 = vadd.f32 %v1001_v18, %v973_v2  ;;  %v1015_v27 = vmul.f32 %v1663_v9, %v1014_v23  ;;  %v1016_v28 = vmul.f32 %v1664_v10, %v1014_v23  ;;  %v1687_v17 = vld [vmem:[%s2086_s17 + $0x3d0] sm:$0xff]  ;;  %v1688_v18 = vld [vmem:[%s2086_s17 + $0x3d8] sm:$0xff]  ;;  %s2590_s30 = sld [smem:[#allocation2 + $0x8b]] }
  0xd5   : > { %v1011_v29 = vadd.f32 %v1009_v21, %v981_v5  ;;  %v1012_v30 = vadd.f32 %v1010_v22, %v982_v6  ;;  %v1024_v31 = vmul.f32 %v1667_v19, %v1023_v24  ;;  %v1025_v32 = vmul.f32 %v1668_v20, %v1023_v24 }
  0xd6   : > { %v1017_v35 = vadd.f32 %v1015_v27, %v987_v11  ;;  %v1018_v36 = vadd.f32 %v1016_v28, %v988_v12  ;;  %v1029_v37 = vstv %s2526_s3  ;;  %v1038_v38 = vstv %s2530_s4  ;;  %v1691_v27 = vld [vmem:[%s2086_s17 + $0x3e0] sm:$0xff]  ;;  %v1692_v28 = vld [vmem:[%s2086_s17 + $0x3e8] sm:$0xff]  ;;  %s2594_s3 = sld [smem:[#allocation2 + $0x41]] }
  0xd7   : > { %v1026_v39 = vadd.f32 %v1024_v31, %v996_v15  ;;  %v1027_v40 = vadd.f32 %v1025_v32, %v997_v16  ;;  %v1030_v41 = vmul.f32 %v1667_v19, %v1029_v37  ;;  %v1031_v42 = vmul.f32 %v1668_v20, %v1029_v37  ;;  %s2596_s4 = sld [smem:[#allocation2 + $0x8c]] }
  0xd8   : > { %v1039_v45 = vmul.f32 %v1671_v33, %v1038_v38  ;;  %v1040_v46 = vmul.f32 %v1672_v34, %v1038_v38  ;;  %v1044_v47 = vstv %s2532_s14  ;;  %v1053_v48 = vstv %s2536_s16  ;;  %s2600_s14 = sld [smem:[#allocation2 + $0x42]] }
  0xd9   : > { %v1032_v49 = vadd.f32 %v1030_v41, %v1002_v25  ;;  %v1033_v50 = vadd.f32 %v1031_v42, %v1003_v26  ;;  %v1045_v51 = vmul.f32 %v1671_v33, %v1044_v47  ;;  %v1046_v52 = vmul.f32 %v1672_v34, %v1044_v47  ;;  %v1695_v41 = vld [vmem:[%s2086_s17 + $0x3f0] sm:$0xff]  ;;  %v1696_v42 = vld [vmem:[%s2086_s17 + $0x3f8] sm:$0xff]  ;;  %s2606_s16 = sld [smem:[#allocation2 + $0x8d]] }
  0xda   : > { %v1041_v53 = vadd.f32 %v1039_v45, %v1011_v29  ;;  %v1042_v54 = vadd.f32 %v1040_v46, %v1012_v30  ;;  %v1054_v55 = vmul.f32 %v1675_v43, %v1053_v48  ;;  %v1055_v56 = vmul.f32 %v1676_v44, %v1053_v48 }
  0xdb   : > { %v1047_v59 = vadd.f32 %v1045_v51, %v1017_v35  ;;  %v1048_v60 = vadd.f32 %v1046_v52, %v1018_v36  ;;  %v1059_v61 = vstv %s2542_s23  ;;  %v1068_v62 = vstv %s2546_s26  ;;  %v1699_v51 = vld [vmem:[%s2086_s17 + $0x400] sm:$0xff]  ;;  %v1700_v52 = vld [vmem:[%s2086_s17 + $0x408] sm:$0xff]  ;;  %s2610_s23 = sld [smem:[#allocation2 + $0x43]] }
  0xdc   : > { %v1056_v63 = vadd.f32 %v1054_v55, %v1026_v39  ;;  %v1057_v0 = vadd.f32 %v1055_v56, %v1027_v40  ;;  %v1060_v1 = vmul.f32 %v1675_v43, %v1059_v61  ;;  %v1061_v2 = vmul.f32 %v1676_v44, %v1059_v61  ;;  %s2612_s26 = sld [smem:[#allocation2 + $0x8e]] }
  0xdd   : > { %v1069_v5 = vmul.f32 %v1679_v57, %v1068_v62  ;;  %v1070_v6 = vmul.f32 %v1680_v58, %v1068_v62  ;;  %v1074_v7 = vstv %s2548_s5  ;;  %v1083_v8 = vstv %s2552_s7  ;;  %s2616_s5 = sld [smem:[#allocation2 + $0x44]] }
  0xde   : > { %v1062_v9 = vadd.f32 %v1060_v1, %v1032_v49  ;;  %v1063_v10 = vadd.f32 %v1061_v2, %v1033_v50  ;;  %v1075_v11 = vmul.f32 %v1679_v57, %v1074_v7  ;;  %v1076_v12 = vmul.f32 %v1680_v58, %v1074_v7  ;;  %v1703_v1 = vld [vmem:[%s2086_s17 + $0x410] sm:$0xff]  ;;  %v1704_v2 = vld [vmem:[%s2086_s17 + $0x418] sm:$0xff]  ;;  %s2622_s7 = sld [smem:[#allocation2 + $0x8f]] }
  0xdf   : > { %v1071_v13 = vadd.f32 %v1069_v5, %v1041_v53  ;;  %v1072_v14 = vadd.f32 %v1070_v6, %v1042_v54  ;;  %v1084_v15 = vmul.f32 %v1683_v3, %v1083_v8  ;;  %v1085_v16 = vmul.f32 %v1684_v4, %v1083_v8 }
  0xe0   : > { %v1077_v19 = vadd.f32 %v1075_v11, %v1047_v59  ;;  %v1078_v20 = vadd.f32 %v1076_v12, %v1048_v60  ;;  %v1089_v21 = vstv %s2558_s8  ;;  %v1098_v22 = vstv %s2562_s19  ;;  %v1707_v11 = vld [vmem:[%s2086_s17 + $0x420] sm:$0xff]  ;;  %v1708_v12 = vld [vmem:[%s2086_s17 + $0x428] sm:$0xff]  ;;  %s2626_s8 = sld [smem:[#allocation2 + $0x45]] }
  0xe1   : > { %v1086_v23 = vadd.f32 %v1084_v15, %v1056_v63  ;;  %v1087_v24 = vadd.f32 %v1085_v16, %v1057_v0  ;;  %v1090_v25 = vmul.f32 %v1683_v3, %v1089_v21  ;;  %v1091_v26 = vmul.f32 %v1684_v4, %v1089_v21  ;;  %s2628_s19 = sld [smem:[#allocation2 + $0x90]] }
  0xe2   : > { %v1099_v29 = vmul.f32 %v1687_v17, %v1098_v22  ;;  %v1100_v30 = vmul.f32 %v1688_v18, %v1098_v22  ;;  %v1104_v31 = vstv %s2564_s25  ;;  %v1113_v32 = vstv %s2568_s20  ;;  %s2632_s25 = sld [smem:[#allocation2 + $0x46]] }
  0xe3   : > { %v1092_v33 = vadd.f32 %v1090_v25, %v1062_v9  ;;  %v1093_v34 = vadd.f32 %v1091_v26, %v1063_v10  ;;  %v1105_v35 = vmul.f32 %v1687_v17, %v1104_v31  ;;  %v1106_v36 = vmul.f32 %v1688_v18, %v1104_v31  ;;  %v1711_v25 = vld [vmem:[%s2086_s17 + $0x430] sm:$0xff]  ;;  %v1712_v26 = vld [vmem:[%s2086_s17 + $0x438] sm:$0xff]  ;;  %s2638_s20 = sld [smem:[#allocation2 + $0x91]] }
  0xe4   : > { %v1101_v37 = vadd.f32 %v1099_v29, %v1071_v13  ;;  %v1102_v38 = vadd.f32 %v1100_v30, %v1072_v14  ;;  %v1114_v39 = vmul.f32 %v1691_v27, %v1113_v32  ;;  %v1115_v40 = vmul.f32 %v1692_v28, %v1113_v32 }
  0xe5   : > { %v1107_v43 = vadd.f32 %v1105_v35, %v1077_v19  ;;  %v1108_v44 = vadd.f32 %v1106_v36, %v1078_v20  ;;  %v1119_v45 = vstv %s2574_s28  ;;  %v1128_v46 = vstv %s2578_s24  ;;  %v1715_v35 = vld [vmem:[%s2086_s17 + $0x440] sm:$0xff]  ;;  %v1716_v36 = vld [vmem:[%s2086_s17 + $0x448] sm:$0xff]  ;;  %s2642_s28 = sld [smem:[#allocation2 + $0x47]] }
  0xe6   : > { %v1116_v47 = vadd.f32 %v1114_v39, %v1086_v23  ;;  %v1117_v48 = vadd.f32 %v1115_v40, %v1087_v24  ;;  %v1120_v49 = vmul.f32 %v1691_v27, %v1119_v45  ;;  %v1121_v50 = vmul.f32 %v1692_v28, %v1119_v45  ;;  %s2644_s24 = sld [smem:[#allocation2 + $0x92]] }
  0xe7   : > { %v1129_v53 = vmul.f32 %v1695_v41, %v1128_v46  ;;  %v1130_v54 = vmul.f32 %v1696_v42, %v1128_v46  ;;  %v1134_v55 = vstv %s2580_s27  ;;  %v1143_v56 = vstv %s2584_s29  ;;  %s2648_s27 = sld [smem:[#allocation2 + $0x48]] }
  0xe8   : > { %v1122_v57 = vadd.f32 %v1120_v49, %v1092_v33  ;;  %v1123_v58 = vadd.f32 %v1121_v50, %v1093_v34  ;;  %v1135_v59 = vmul.f32 %v1695_v41, %v1134_v55  ;;  %v1136_v60 = vmul.f32 %v1696_v42, %v1134_v55  ;;  %v1719_v49 = vld [vmem:[%s2086_s17 + $0x450] sm:$0xff]  ;;  %v1720_v50 = vld [vmem:[%s2086_s17 + $0x458] sm:$0xff]  ;;  %s2654_s29 = sld [smem:[#allocation2 + $0x93]] }
  0xe9   : > { %v1131_v61 = vadd.f32 %v1129_v53, %v1101_v37  ;;  %v1132_v62 = vadd.f32 %v1130_v54, %v1102_v38  ;;  %v1144_v63 = vmul.f32 %v1699_v51, %v1143_v56  ;;  %v1145_v0 = vmul.f32 %v1700_v52, %v1143_v56 }
  0xea   : > { %v1137_v3 = vadd.f32 %v1135_v59, %v1107_v43  ;;  %v1138_v4 = vadd.f32 %v1136_v60, %v1108_v44  ;;  %v1149_v5 = vstv %s2590_s30  ;;  %v1158_v6 = vstv %s2594_s3  ;;  %v1723_v59 = vld [vmem:[%s2086_s17 + $0x460] sm:$0xff]  ;;  %v1724_v60 = vld [vmem:[%s2086_s17 + $0x468] sm:$0xff]  ;;  %s2658_s30 = sld [smem:[#allocation2 + $0x49]] }
  0xeb   : > { %v1146_v7 = vadd.f32 %v1144_v63, %v1116_v47  ;;  %v1147_v8 = vadd.f32 %v1145_v0, %v1117_v48  ;;  %v1150_v9 = vmul.f32 %v1699_v51, %v1149_v5  ;;  %v1151_v10 = vmul.f32 %v1700_v52, %v1149_v5  ;;  %s2660_s3 = sld [smem:[#allocation2 + $0x94]] }
  0xec   : > { %v1159_v13 = vmul.f32 %v1703_v1, %v1158_v6  ;;  %v1160_v14 = vmul.f32 %v1704_v2, %v1158_v6  ;;  %v1164_v15 = vstv %s2596_s4  ;;  %v1173_v16 = vstv %s2600_s14  ;;  %s2664_s4 = sld [smem:[#allocation2 + $0x4a]] }
  0xed   : > { %v1152_v17 = vadd.f32 %v1150_v9, %v1122_v57  ;;  %v1153_v18 = vadd.f32 %v1151_v10, %v1123_v58  ;;  %v1165_v19 = vmul.f32 %v1703_v1, %v1164_v15  ;;  %v1166_v20 = vmul.f32 %v1704_v2, %v1164_v15  ;;  %v1727_v9 = vld [vmem:[%s2086_s17 + $0x470] sm:$0xff]  ;;  %v1728_v10 = vld [vmem:[%s2086_s17 + $0x478] sm:$0xff]  ;;  %s2672_s14 = sld [smem:[#allocation2 + $0x95]] }
  0xee   : > { %v1161_v21 = vadd.f32 %v1159_v13, %v1131_v61  ;;  %v1162_v22 = vadd.f32 %v1160_v14, %v1132_v62  ;;  %v1174_v23 = vmul.f32 %v1707_v11, %v1173_v16  ;;  %v1175_v24 = vmul.f32 %v1708_v12, %v1173_v16 }
  0xef   : > { %v1167_v27 = vadd.f32 %v1165_v19, %v1137_v3  ;;  %v1168_v28 = vadd.f32 %v1166_v20, %v1138_v4  ;;  %v1179_v29 = vstv %s2606_s16  ;;  %v1188_v30 = vstv %s2610_s23  ;;  %v1731_v19 = vld [vmem:[%s2086_s17 + $0x480] sm:$0xff]  ;;  %v1732_v20 = vld [vmem:[%s2086_s17 + $0x488] sm:$0xff]  ;;  %s1754_s16 = sshll.u32 %s1987_s13, 9  ;;  %s1338_s13 = scalar_lea.sflag [#allocation4], %s2082_s6 }
  0xf0   : > { %v1176_v31 = vadd.f32 %v1174_v23, %v1146_v7  ;;  %v1177_v32 = vadd.f32 %v1175_v24, %v1147_v8  ;;  %v1180_v33 = vmul.f32 %v1707_v11, %v1179_v29  ;;  %v1181_v34 = vmul.f32 %v1708_v12, %v1179_v29 }
  0xf1   : > { %v1189_v37 = vmul.f32 %v1711_v25, %v1188_v30  ;;  %v1190_v38 = vmul.f32 %v1712_v26, %v1188_v30  ;;  %v1194_v39 = vstv %s2612_s26  ;;  %v1203_v40 = vstv %s2616_s5 }
  0xf2   : > { %v1182_v41 = vadd.f32 %v1180_v33, %v1152_v17  ;;  %v1183_v42 = vadd.f32 %v1181_v34, %v1153_v18  ;;  %v1195_v43 = vmul.f32 %v1711_v25, %v1194_v39  ;;  %v1196_v44 = vmul.f32 %v1712_v26, %v1194_v39  ;;  %v1735_v33 = vld [vmem:[%s2086_s17 + $0x490] sm:$0xff]  ;;  %v1736_v34 = vld [vmem:[%s2086_s17 + $0x498] sm:$0xff] }
  0xf3   : > { %v1191_v45 = vadd.f32 %v1189_v37, %v1161_v21  ;;  %v1192_v46 = vadd.f32 %v1190_v38, %v1162_v22  ;;  %v1204_v47 = vmul.f32 %v1715_v35, %v1203_v40  ;;  %v1205_v48 = vmul.f32 %v1716_v36, %v1203_v40 }
  0xf4   : > { %v1197_v51 = vadd.f32 %v1195_v43, %v1167_v27  ;;  %v1198_v52 = vadd.f32 %v1196_v44, %v1168_v28  ;;  %v1209_v53 = vstv %s2622_s7  ;;  %v1218_v54 = vstv %s2626_s8  ;;  %v1739_v43 = vld [vmem:[%s2086_s17 + $0x4a0] sm:$0xff]  ;;  %v1740_v44 = vld [vmem:[%s2086_s17 + $0x4a8] sm:$0xff]  ;;  %s1443_s17 = sshll.u32 %s2082_s6, 5  ;;  %s2688_s8 = scalar_lea.hbm %s2735_s2, %s1754_s16 }
  0xf5   : > { %v1206_v55 = vadd.f32 %v1204_v47, %v1176_v31  ;;  %v1207_v56 = vadd.f32 %v1205_v48, %v1177_v32  ;;  %v1210_v57 = vmul.f32 %v1715_v35, %v1209_v53  ;;  %v1211_v58 = vmul.f32 %v1716_v36, %v1209_v53  ;;  %s173_s23 = scalar_lea.vmem [#allocation7], %s1443_s17 }
  0xf6   : > { %v1219_v61 = vmul.f32 %v1719_v49, %v1218_v54  ;;  %v1220_v62 = vmul.f32 %v1720_v50, %v1218_v54  ;;  %v1224_v63 = vstv %s2628_s19  ;;  %v1233_v0 = vstv %s2632_s25  ;;  %s1351_s26 = sshll.u32 %s173_s23, 4  ;;  %s1948_s25 = smov [#allocation7]   ;;  %s2690_s26 = int_to_ptr.vmem [resolvable:$true] %s1351_s26 }
  0xf7   : > { %v1212_v1 = vadd.f32 %v1210_v57, %v1182_v41  ;;  %v1213_v2 = vadd.f32 %v1211_v58, %v1183_v42  ;;  %v1225_v3 = vmul.f32 %v1719_v49, %v1224_v63  ;;  %v1226_v4 = vmul.f32 %v1720_v50, %v1224_v63  ;;  %s1874_s19 = scalar_lea.vmem %s2690_s26, 512 }
  0xf8   : > { %v1221_v5 = vadd.f32 %v1219_v61, %v1191_v45  ;;  %v1222_v6 = vadd.f32 %v1220_v62, %v1192_v46  ;;  %v1234_v7 = vmul.f32 %v1723_v59, %v1233_v0  ;;  %v1235_v8 = vmul.f32 %v1724_v60, %v1233_v0  ;;  %p1875_p12 = scmp.ne.s32.totalorder %s2690_s26, %s1874_s19 }
  0xf9   : > { %v1227_v11 = vadd.f32 %v1225_v3, %v1197_v51  ;;  %v1228_v12 = vadd.f32 %v1226_v4, %v1198_v52  ;;  %v1239_v13 = vstv %s2638_s20  ;;  %v1248_v14 = vstv %s2642_s28  ;;  %s1878_s20 = sshll.u32 %s1948_s25, 4  ;;  %s1879_s20 = int_to_ptr.vmem [resolvable:$false] %s1878_s20 }
  0xfa   : > { %v1236_v15 = vadd.f32 %v1234_v7, %v1206_v55  ;;  %v1237_v16 = vadd.f32 %v1235_v8, %v1207_v56  ;;  %v1240_v17 = vmul.f32 %v1723_v59, %v1239_v13  ;;  %v1241_v18 = vmul.f32 %v1724_v60, %v1239_v13  ;;  %p1876_p7 = pnand %p1875_p12, %p2751_p13  ;;  %s1880_s28 = scalar_lea.vmem %s1879_s20, 1024 }
  0xfb   : > { %v1249_v21 = vmul.f32 %v1727_v9, %v1248_v14  ;;  %v1250_v22 = vmul.f32 %v1728_v10, %v1248_v14  ;;  %v1254_v23 = vstv %s2644_s24  ;;  %v1263_v24 = vstv %s2648_s27  ;;  %p1881_p9 = scmp.lt.s32.totalorder %s2690_s26, %s1879_s20  ;;  %p1882_p10 = scmp.lt.s32.totalorder %s1880_s28, %s1874_s19 }
  0xfc   : > { %v1242_v25 = vadd.f32 %v1240_v17, %v1212_v1  ;;  %v1243_v26 = vadd.f32 %v1241_v18, %v1213_v2  ;;  %v1255_v27 = vmul.f32 %v1727_v9, %v1254_v23  ;;  %v1256_v28 = vmul.f32 %v1728_v10, %v1254_v23  ;;  %p1877_p8 = pneg %p1876_p7 }
  0xfd   : > { %v1251_v29 = vadd.f32 %v1249_v21, %v1221_v5  ;;  %v1252_v30 = vadd.f32 %v1250_v22, %v1222_v6  ;;  %v1264_v31 = vmul.f32 %v1731_v19, %v1263_v24  ;;  %v1265_v32 = vmul.f32 %v1732_v20, %v1263_v24  ;;  %p1883_p2 = por %p1882_p10, %p1881_p9 }
  0xfe   : > { %v1257_v35 = vadd.f32 %v1255_v27, %v1227_v11  ;;  %v1258_v36 = vadd.f32 %v1256_v28, %v1228_v12  ;;  %v1269_v37 = vstv %s2654_s29  ;;  %v1278_v38 = vstv %s2658_s30 }
  0xff   : > { %v1266_v39 = vadd.f32 %v1264_v31, %v1236_v15  ;;  %v1267_v40 = vadd.f32 %v1265_v32, %v1237_v16  ;;  %v1270_v41 = vmul.f32 %v1731_v19, %v1269_v37  ;;  %v1271_v42 = vmul.f32 %v1732_v20, %v1269_v37  ;;  %p1884_p0 = pnand %p1883_p2, %p1877_p8 }
 0x100   : > { %v1279_v45 = vmul.f32 %v1735_v33, %v1278_v38  ;;  %v1280_v46 = vmul.f32 %v1736_v34, %v1278_v38  ;;  %v1284_v47 = vstv %s2660_s3  ;;  %v1293_v48 = vstv %s2664_s4 }
 0x101   : > { %v1272_v49 = vadd.f32 %v1270_v41, %v1242_v25  ;;  %v1273_v50 = vadd.f32 %v1271_v42, %v1243_v26  ;;  %v1285_v51 = vmul.f32 %v1735_v33, %v1284_v47  ;;  %v1286_v52 = vmul.f32 %v1736_v34, %v1284_v47 }
 0x102   : > { %v1281_v53 = vadd.f32 %v1279_v45, %v1251_v29  ;;  %v1282_v54 = vadd.f32 %v1280_v46, %v1252_v30  ;;  %v1294_v55 = vmul.f32 %v1739_v43, %v1293_v48  ;;  %v1295_v56 = vmul.f32 %v1740_v44, %v1293_v48 }
 0x103   : > { %v1287_v57 = vadd.f32 %v1285_v51, %v1257_v35  ;;  %v1288_v58 = vadd.f32 %v1286_v52, %v1258_v36  ;;  %v1299_v59 = vstv %s2672_s14 }
 0x104   : > { %v1296_v60 = vadd.f32 %v1294_v55, %v1266_v39  ;;  %v1297_v61 = vadd.f32 %v1295_v56, %v1267_v40  ;;  %v1300_v62 = vmul.f32 %v1739_v43, %v1299_v59  ;;  %v1301_v63 = vmul.f32 %v1740_v44, %v1299_v59 }
 0x106   : > { %v1302_v0 = vadd.f32 %v1300_v62, %v1272_v49  ;;  %v1303_v1 = vadd.f32 %v1301_v63, %v1273_v50  ;;  %v1304_v2 = vadd.f32 %v1296_v60, %v1281_v53  ;;  %v1305_v3 = vadd.f32 %v1297_v61, %v1282_v54 }
 0x108   : > { %v1743_v4 = vmul.f32 -1.442695, %v1304_v2  ;;  %v1744_v5 = vmul.f32 -1.442695, %v1305_v3  ;;  %v1320_v6 = vadd.f32 %v1302_v0, %v1287_v57  ;;  %v1321_v7 = vadd.f32 %v1303_v1, %v1288_v58 }
 0x10a   : > { %1819 = vpow2.f32 %v1743_v4  ;;  %v1745_v8 = vmul.f32 -1.442695, %v1320_v6  ;;  %v1746_v9 = vmul.f32 -1.442695, %v1321_v7 }
 0x10b   : > { %1821 = vpow2.f32 %v1744_v5 }
 0x10c   : > { %1823 = vpow2.f32 %v1745_v8 }
 0x10d   : > { %1825 = vpow2.f32 %v1746_v9 }
 0x117   : > { %v1820_v10 = vpop.eup %1819 }
 0x118   : > { %v1822_v11 = vpop.eup %1821  ;;  %v1312_v12 = vadd.f32 1.0, %v1820_v10 }
 0x119   : > { %v1824_v13 = vpop.eup %1823  ;;  %v1313_v14 = vadd.f32 1.0, %v1822_v11 }
 0x11a   : > { %v1826_v15 = vpop.eup %1825  ;;  %1827 = vrcp.f32 %v1312_v12  ;;  %v1328_v16 = vadd.f32 1.0, %v1824_v13 }
 0x11b   : > { %1829 = vrcp.f32 %v1313_v14  ;;  %v1329_v17 = vadd.f32 1.0, %v1826_v15 }
 0x11c   : > { %1831 = vrcp.f32 %v1328_v16 }
 0x11d   : > { %1833 = vrcp.f32 %v1329_v17 }
 0x127   : > { %v1828_v18 = vpop.eup %1827 }
 0x128   : > { %v1830_v19 = vpop.eup %1829  ;;  %1318 = vst [vmem:[%s173_s23] sm:$0xff] %v1828_v18 }
 0x129   : > { %v1832_v20 = vpop.eup %1831  ;;  %1319 = vst [vmem:[%s173_s23 + $0x8] sm:$0xff] %v1830_v19 }
 0x12a   : > { %v1834_v21 = vpop.eup %1833  ;;  %1747 = vst [vmem:[%s173_s23 + $0x10] sm:$0xff] %v1832_v20 }
 0x12b   : > { %1748 = vst [vmem:[%s173_s23 + $0x18] sm:$0xff] %v1834_v21 }
 0x12c   : > { %1887 = shalt.err (!%p1884_p0)
}
 0x12d   : > { %s1888_s24 = scalar_lea.hbm %s2688_s8, 512  ;;  %s1892_s30 = scalar_lea.hbm %s2735_s2, 1024 }
 0x12e   : > { %p1889_p3 = scmp.ne.s32.totalorder %s2688_s8, %s1888_s24  ;;  %p1893_p1 = scmp.lt.s32.totalorder %s2688_s8, %s2735_s2 }
 0x12f   : > { %p1894_p6 = scmp.lt.s32.totalorder %s1892_s30, %s1888_s24 }
 0x130   : > { %p1890_p5 = pnand %p1889_p3, %p2751_p13 }
 0x131   : > { %p1895_p11 = por %p1894_p6, %p1893_p1 }
 0x132   : > { %p1891_p4 = pneg %p1890_p5 }
 0x134   : > { %p1896_p12 = pnand %p1895_p11, %p1891_p4 }
 0x136   : > { %1899 = shalt.err (!%p1896_p12)
}
 0x137   : > { %s1949_s14 = smov 128   ;;  %s1950_s17 = smov 8  }
 0x138   : > { %1764 = dma.vmem_to_hbm [thread:$0]  (%p2751_p13), %s2690_s26, 512, %s2688_s8, %s1338_s13, %s1949_s14, %s1949_s14, %s1950_s17  }
 0x139 PF: > { %s1366_s16 = sand.u32 1, %s1930_s9   ;;  %p2752_p7 = scmp.ne.s32.totalorder %s2743_s22, 0 }
 0x13a   : > { %p2753_p8 = scmp.ge.s32.totalorder %s1942_s12, 2  ;;  %s1367_s23 = scalar_lea.sflag [#allocation4], %s1366_s16 }
 0x13c   : > { %p1775_p9 = pnand %p2753_p8, %p2752_p7 }
 0x13e   : > { %p1776_p10 = pneg %p1775_p9 }
 0x140   : > { %1925 = dma.done.wait (%p1776_p10), %s1367_s23, 512  }
 0x141   : > { %1927 = vsyncadd (%p1776_p10), %s1367_s23, 4294966784  ;;  %p16_p2 = scmp.ge.s32.totalorder %s1991_s15, 4   ;;  %s2754_s9 = smov %s1934_s10 }
 0x142   : > { %s2755_s10 = smov %s1938_s11  ;;  %s2756_s11 = smov %s2003_s18 }
 0x143   : > { %s2757_s12 = smov %s1991_s15  ;;  %18 = sbr.rel (!%p16_p2) target bundleno = 6 (0x6), region = 153 }
 0x148   :  { %1372 = vsyncpa [#allocation3], 1 }
 0x149   :  { %1374 = vsyncpa [#allocation3 + $0x1], 1 }
 0x14a   :  { %1375 = vsyncpa [#allocation4], 1 }
 0x14b   :  { %1377 = vsyncpa [#allocation4 + $0x1], 1 }
 0x14c   :  { %1378 = vsyncpa [#allocation5], 1 }
 0x14d   :  { %1380 = vsyncpa [#allocation5 + $0x1], 1 }

</bundles_post_ra>
